<compile_context>
chip_gen: v5e
topology: v5e:2x2
jax: 0.10.0
libtpu: 0.0.40
codegen_flags: <defaults>
</compile_context>

<pallas_src>
import functools

import jax
import jax.numpy as jnp
from jax import lax
from jax.experimental import pallas as pl
from jax.experimental.pallas import tpu as pltpu

# Exact-f32 matmuls: faithful to the f32 PyTorch module and keeps the
# kernel-vs-reference check tight.
_HIGH = lax.Precision.HIGHEST


def _round_up(a, m):
    return ((a + m - 1) // m) * m


def _vmem_capacity_bytes():
    """Per-TensorCore VMEM capacity (generation-aware), with a safe fallback."""
    try:
        cap = getattr(pltpu.get_tpu_info(), "vmem_capacity_bytes", None)
        if cap:
            return int(cap)
    except Exception:
        pass
    return 64 * 1024 * 1024        # conservative: v7x per-TensorCore VMEM


# -----------------------------------------------------------------------------
# Kernel 1: small channel counts (VPU scalar-weight path, resize fused).
# Blocks are NCHW tiles [Bt, C, tr, Wg]; weights/biases live in SMEM.
# -----------------------------------------------------------------------------
def attention_gate_small_kernel(*refs, bt, f_g, f_l, f_int, fuse_resize):
    if fuse_resize:
        (g_ref, x_ref, r_ref, c_ref,
         wg_ref, bg_ref, wx_ref, bx_ref, wpsi_ref, bpsi_ref, out_ref) = refs
        R = r_ref[...].astype(jnp.float32)          # [tr, Hx]
        C = c_ref[...].astype(jnp.float32)          # [Wx, Wg]
    else:
        (g_ref, x_ref,
         wg_ref, bg_ref, wx_ref, bx_ref, wpsi_ref, bpsi_ref, out_ref) = refs

    for b in range(bt):                             # static batch-block loop
        # Skip connection channels, spatially aligned with g.  When fusing the
        # resize this is x_aligned = R @ x[b, f] @ C: two tiny exact-f32 MXU
        # matmuls per channel, entirely in VMEM.
        if fuse_resize:
            xa = [jnp.dot(jnp.dot(R, x_ref[b, f].astype(jnp.float32),
                                  preferred_element_type=jnp.float32,
                                  precision=_HIGH),
                          C, preferred_element_type=jnp.float32,
                          precision=_HIGH)
                  for f in range(f_l)]
        else:
            xa = [x_ref[b, f].astype(jnp.float32) for f in range(f_l)]
        gc = [g_ref[b, c].astype(jnp.float32) for c in range(f_g)]

        # psi = sigmoid(Wpsi . relu(Wg g + Wx x_aligned + b)); all weights are
        # SMEM scalars, so every FMA is a free-splat scalar * [tr, Wg] vector op
        # on the VPU (no broadcast_in_dim, no MXU for the tiny channel convs).
        psi = None
        for i in range(f_int):
            a = gc[0] * wg_ref[i, 0]
            for c in range(1, f_g):
                a = a + gc[c] * wg_ref[i, c]
            for c in range(f_l):
                a = a + xa[c] * wx_ref[i, c]
            r = jnp.maximum(a + (bg_ref[i] + bx_ref[i]), 0.0)
            t = r * wpsi_ref[i]
            psi = t if psi is None else psi + t
        psi = jax.nn.sigmoid(psi + bpsi_ref[0])     # [tr, Wg]

        for f in range(f_l):
            out_ref[b, f] = (xa[f] * psi).astype(out_ref.dtype)


# -----------------------------------------------------------------------------
# Kernel 2: large channel counts (MXU path, flattened lane-dense layout).
# Blocks are [Bt, C, tn] with channels on sublanes, spatial on lanes.
# -----------------------------------------------------------------------------
def attention_gate_mxu_kernel(g_ref, x_ref, wg_ref, bg_ref, wx_ref, bx_ref,
                              wpsi_ref, bpsi_ref, out_ref, *, bt):
    wg = wg_ref[...]
    bg = bg_ref[...]
    wx = wx_ref[...]
    bx = bx_ref[...]
    wpsi = wpsi_ref[...]
    bpsi = bpsi_ref[...]
    for b in range(bt):                             # static batch-block loop
        g = g_ref[b].astype(jnp.float32)            # [F_g, tn]
        x = x_ref[b].astype(jnp.float32)            # [F_l, tn]
        g1 = jnp.dot(wg, g, preferred_element_type=jnp.float32,
                     precision=_HIGH) + bg
        x1 = jnp.dot(wx, x, preferred_element_type=jnp.float32,
                     precision=_HIGH) + bx
        r = jnp.maximum(g1 + x1, 0.0)               # [F_int, tn]
        # psi's 1-output-channel conv: VPU multiply + sublane (XLU) reduce
        # instead of a 1-lane matmul.
        p = jax.nn.sigmoid(jnp.sum(r * wpsi, axis=0, keepdims=True) + bpsi)
        out_ref[b] = (x * p).astype(out_ref.dtype)


# -----------------------------------------------------------------------------
# Tile choosers (VMEM-budget aware).
# -----------------------------------------------------------------------------
def _choose_small_tiles(B, F_g, F_l, F_int, Hg, Wg, Hx, Wx, dbytes,
                        fuse_resize, budget):
    wg_pad = _round_up(Wg, 128)
    wx_pad = _round_up(Wx, 128)
    unroll = F_int * (F_g + F_l + 1)

    def est(bt, tr):
        rows = _round_up(tr, 8)
        # Double-buffered I/O blocks; VMEM buffers are (8,128)-tile padded.
        io = 2 * dbytes * bt * (F_g + F_l) * rows * wg_pad            # g + out
        if fuse_resize:
            io += 2 * dbytes * bt * F_l * _round_up(Hx, 8) * wx_pad   # full x
            io += 2 * 4 * (rows * _round_up(Hx, 128)
                           + _round_up(Wx, 8) * wg_pad)               # R, C
        else:
            io += 2 * dbytes * bt * F_l * rows * wg_pad
        # In-kernel f32 working set (per-batch channel upcasts + temps).
        work = 4 * (F_g + 2 * F_l + 4) * rows * wg_pad
        return io + work

    # Row block: full Hg if it fits (contiguous per-channel DMA chunks), else
    # the largest multiple of 8 (BlockSpec sublane rule) that fits the budget.
    tr = Hg
    if Hg > 8 and est(1, tr) > budget:
        tr = (Hg // 8) * 8
        while tr > 8 and est(1, tr) > budget:
            tr -= 8

    # Batch blocking amortizes the ~0.35us per-grid-step overhead when HW is
    # small.  The 32K-column / 2K-statement caps keep several grid steps alive
    # (v7x megacore) and keep the unrolled kernel compile-friendly.
    bt = 1
    for d in range(2, B + 1):
        if B % d:
            continue
        if est(d, tr) <= budget and d * tr * Wg <= 32768 and d * unroll <= 2048:
            bt = d
    return bt, tr


def _choose_mxu_tiles(B, F_g, F_l, F_int, HW, dbytes, budget):
    # Per spatial column: double-buffered g/x/out I/O + f32 upcasts and g1/x1/r
    # intermediates (these scale with F_int and dominate for large channels).
    per_col = 2 * dbytes * (F_g + 2 * F_l) + 4 * (F_g + F_l + 3 * F_int)
    cols = max(128, (budget // max(per_col, 1)) // 128 * 128)
    cols = min(cols, 32768)                 # keep a few grid steps for megacore
    tn = HW if cols >= HW else cols
    bt = 1
    for d in range(2, B + 1):
        if B % d:
            continue
        if d * tn * per_col <= budget and d * tn <= 32768:
            bt = d
    return bt, tn


# -----------------------------------------------------------------------------
# pallas_call wrappers.
# -----------------------------------------------------------------------------
@functools.partial(jax.jit,
                   static_argnames=("bt", "tr", "fuse_resize", "vmem_limit"))
def _attention_gate_small(g, x, R, C, wg, bg, wx, bx, wpsi, bpsi, *,
                          bt, tr, fuse_resize, vmem_limit):
    B, F_g, Hg, Wg = g.shape
    F_l = x.shape[1]
    F_int = wg.shape[0]
    grid = (pl.cdiv(B, bt), pl.cdiv(Hg, tr))

    smem = pl.BlockSpec(memory_space=pltpu.MemorySpace.SMEM)
    g_spec = pl.BlockSpec((bt, F_g, tr, Wg), lambda b, j: (b, 0, j, 0))
    out_spec = pl.BlockSpec((bt, F_l, tr, Wg), lambda b, j: (b, 0, j, 0))
    if fuse_resize:
        Hx, Wx = x.shape[2], x.shape[3]
        x_spec = pl.BlockSpec((bt, F_l, Hx, Wx), lambda b, j: (b, 0, 0, 0))
        extra_specs = [pl.BlockSpec((tr, Hx), lambda b, j: (j, 0)),
                       pl.BlockSpec((Wx, Wg), lambda b, j: (0, 0))]
        extra_args = (R, C)
    else:
        x_spec = pl.BlockSpec((bt, F_l, tr, Wg), lambda b, j: (b, 0, j, 0))
        extra_specs = []
        extra_args = ()

    kernel = functools.partial(attention_gate_small_kernel, bt=bt, f_g=F_g,
                               f_l=F_l, f_int=F_int, fuse_resize=fuse_resize)
    return pl.pallas_call(
        kernel,
        out_shape=jax.ShapeDtypeStruct((B, F_l, Hg, Wg), x.dtype),
        grid_spec=pltpu.PrefetchScalarGridSpec(
            num_scalar_prefetch=0,
            grid=grid,
            in_specs=[g_spec, x_spec, *extra_specs,
                      smem, smem, smem, smem, smem, smem],
            out_specs=out_spec,
        ),
        compiler_params=pltpu.CompilerParams(
            dimension_semantics=("parallel", "parallel"),
            vmem_limit_bytes=vmem_limit,
        ),
    )(g, x, *extra_args, wg, bg, wx, bx, wpsi, bpsi)


@functools.partial(jax.jit, static_argnames=("bt", "tn", "vmem_limit"))
def _attention_gate_mxu(g3, x3, wg, bg, wx, bx, wpsi, bpsi, *,
                        bt, tn, vmem_limit):
    B, F_g, HW = g3.shape
    F_l = x3.shape[1]
    grid = (pl.cdiv(B, bt), pl.cdiv(HW, tn))

    def _rep(arr):                              # small param: replicated block
        return pl.BlockSpec(arr.shape, lambda b, j: (0,) * arr.ndim)

    kernel = functools.partial(attention_gate_mxu_kernel, bt=bt)
    return pl.pallas_call(
        kernel,
        out_shape=jax.ShapeDtypeStruct((B, F_l, HW), x3.dtype),
        grid_spec=pltpu.PrefetchScalarGridSpec(
            num_scalar_prefetch=0,
            grid=grid,
            in_specs=[pl.BlockSpec((bt, F_g, tn), lambda b, j: (b, 0, j)),
                      pl.BlockSpec((bt, F_l, tn), lambda b, j: (b, 0, j)),
                      _rep(wg), _rep(bg), _rep(wx), _rep(bx),
                      _rep(wpsi), _rep(bpsi)],
            out_specs=pl.BlockSpec((bt, F_l, tn), lambda b, j: (b, 0, j)),
        ),
        compiler_params=pltpu.CompilerParams(
            dimension_semantics=("parallel", "parallel"),
            vmem_limit_bytes=vmem_limit,
        ),
    )(g3, x3, wg, bg, wx, bx, wpsi, bpsi)


# -----------------------------------------------------------------------------
# Glue: interpolation matrices, out-of-kernel resize (MXU path), BN folding.
# -----------------------------------------------------------------------------
def _interp_matrix(out_size, in_size, dtype=jnp.float32):
    """[out_size, in_size] bilinear (align_corners=True) interpolation matrix."""
    if out_size == 1:
        src = jnp.zeros((1,), jnp.float32)
    else:
        src = jnp.arange(out_size, dtype=jnp.float32) * (
            (in_size - 1) / (out_size - 1))
    i0 = jnp.clip(jnp.floor(src).astype(jnp.int32), 0, in_size - 1)
    i1 = jnp.clip(i0 + 1, 0, in_size - 1)
    w = src - i0.astype(jnp.float32)
    m = (jax.nn.one_hot(i0, in_size, dtype=jnp.float32) * (1.0 - w)[:, None]
         + jax.nn.one_hot(i1, in_size, dtype=jnp.float32) * w[:, None])
    return m.astype(dtype)


def bilinear_resize_align_corners(x, out_h, out_w):
    """x: [B, C, H, W] -> [B, C, out_h, out_w] (F.interpolate align_corners=True)."""
    B, C, H, W = x.shape
    if H == out_h and W == out_w:
        return x

    def coords(out_size, in_size):
        if out_size == 1:
            src = jnp.zeros((1,), jnp.float32)
        else:
            src = jnp.arange(out_size, dtype=jnp.float32) * (
                (in_size - 1) / (out_size - 1))
        i0 = jnp.clip(jnp.floor(src).astype(jnp.int32), 0, in_size - 1)
        i1 = jnp.clip(i0 + 1, 0, in_size - 1)
        w = src - i0.astype(jnp.float32)
        return i0, i1, w

    r0, r1, wr = coords(out_h, H)
    c0, c1, wc = coords(out_w, W)
    top = x[:, :, r0, :]
    bot = x[:, :, r1, :]
    rows = top * (1.0 - wr)[None, None, :, None] + bot * wr[None, None, :, None]
    left = rows[:, :, :, c0]
    right = rows[:, :, :, c1]
    return left * (1.0 - wc)[None, None, None, :] + right * wc[None, None, None, :]


def fold_conv_bn(w, b, gamma, beta, running_mean, running_var, eps=1e-5):
    """Fold eval-mode BatchNorm into a preceding 1x1 conv ([C_out, C_in], [C_out])."""
    s = gamma / jnp.sqrt(running_var + eps)
    w_f = w * s[:, None]
    b_f = (b - running_mean) * s + beta
    return w_f, b_f


class AttentionGateParams:
    """Deterministic synthetic parameters mirroring the PyTorch module shapes."""

    def __init__(self, key, F_g, F_l, F_int):
        ks = jax.random.split(key, 8)
        wg = jax.random.normal(ks[0], (F_int, F_g), jnp.float32) * 0.2
        bg = jax.random.normal(ks[1], (F_int,), jnp.float32) * 0.1
        wx = jax.random.normal(ks[2], (F_int, F_l), jnp.float32) * 0.2
        bx = jax.random.normal(ks[3], (F_int,), jnp.float32) * 0.1
        wpsi = jax.random.normal(ks[4], (1, F_int), jnp.float32) * 0.2
        bpsi = jax.random.normal(ks[5], (1,), jnp.float32) * 0.1

        gamma_g = 1.0 + 0.05 * jax.random.normal(ks[6], (F_int,), jnp.float32)
        beta_g = jnp.zeros((F_int,), jnp.float32)
        gamma_x = 1.0 + 0.05 * jax.random.normal(ks[7], (F_int,), jnp.float32)
        beta_x = jnp.zeros((F_int,), jnp.float32)
        gamma_p = jnp.ones((1,), jnp.float32)
        beta_p = jnp.zeros((1,), jnp.float32)
        zero_i = jnp.zeros((F_int,), jnp.float32)
        one_i = jnp.ones((F_int,), jnp.float32)

        self.wg, self.bg = fold_conv_bn(wg, bg, gamma_g, beta_g, zero_i, one_i)
        self.wx, self.bx = fold_conv_bn(wx, bx, gamma_x, beta_x, zero_i, one_i)
        wpsi_f, bpsi_f = fold_conv_bn(wpsi, bpsi, gamma_p, beta_p,
                                      jnp.zeros((1,)), jnp.ones((1,)))
        self.wpsi = wpsi_f.reshape(F_int)
        self.bpsi = bpsi_f.reshape(1)


def attention_gate(params, g, x):
    """g: [B, F_g, Hg, Wg], x: [B, F_l, Hx, Wx] -> [B, F_l, Hg, Wg] (NCHW)."""
    B, F_g, Hg, Wg = g.shape
    _, F_l, Hx, Wx = x.shape
    F_int = params.wg.shape[0]
    needs_resize = (Hx, Wx) != (Hg, Wg)
    dbytes = jnp.dtype(x.dtype).itemsize

    cap = _vmem_capacity_bytes()
    budget = int(0.35 * cap)
    vmem_limit = int(min(0.60 * cap, cap - (16 << 20)))

    small = F_int * (F_g + F_l + 1) <= 1024        # unroll budget for the VPU path
    if small and needs_resize:
        # Resize fusion holds the full x spatial extent per grid step; fall back
        # to the MXU path for pathologically large skip maps.
        x_block = 2 * dbytes * F_l * _round_up(Hx, 8) * _round_up(Wx, 128)
        if x_block > budget // 2:
            small = False

    if small:
        bt, tr = _choose_small_tiles(B, F_g, F_l, F_int, Hg, Wg, Hx, Wx,
                                     dbytes, needs_resize, budget)
        if needs_resize:
            R = _interp_matrix(Hg, Hx)                    # [Hg, Hx]
            C = jnp.transpose(_interp_matrix(Wg, Wx))     # [Wx, Wg]
            rows = pl.cdiv(Hg, tr) * tr
            if rows != Hg:                                # zero-pad ragged row tiles
                R = jnp.pad(R, ((0, rows - Hg), (0, 0)))
        else:
            R = jnp.zeros((1, 1), jnp.float32)            # unused dummies
            C = jnp.zeros((1, 1), jnp.float32)
        return _attention_gate_small(
            g, x, R, C, params.wg, params.bg, params.wx, params.bx,
            params.wpsi, params.bpsi,
            bt=bt, tr=tr, fuse_resize=needs_resize, vmem_limit=vmem_limit)

    # Large channel counts: flattened lane-dense layout + MXU matmuls.
    # TODO(synk): fuse the bilinear resize into this path too; today it
    # materializes x_aligned in HBM when a resize is required.
    if needs_resize:
        x = bilinear_resize_align_corners(x, Hg, Wg)
    HW = Hg * Wg
    g3 = g.reshape(B, F_g, HW)
    x3 = x.reshape(B, F_l, HW)
    bt, tn = _choose_mxu_tiles(B, F_g, F_l, F_int, HW, dbytes, budget)
    out3 = _attention_gate_mxu(
        g3, x3, params.wg, params.bg.reshape(F_int, 1),
        params.wx, params.bx.reshape(F_int, 1),
        params.wpsi.reshape(F_int, 1), params.bpsi.reshape(1, 1),
        bt=bt, tn=tn, vmem_limit=vmem_limit)
    return out3.reshape(B, F_l, Hg, Wg)


# -----------------------------------------------------------------------------
# Reference (pure JAX) for sanity checking the kernels.
# -----------------------------------------------------------------------------
def attention_gate_ref(params, g, x):
    B, F_g, Hg, Wg = g.shape
    F_l = x.shape[1]
    xa = bilinear_resize_align_corners(x.astype(jnp.float32), Hg, Wg)
    g3 = g.reshape(B, F_g, -1).astype(jnp.float32)
    x3 = xa.reshape(B, F_l, -1)
    g1 = jnp.einsum('oc,bcn->bon', params.wg, g3,
                    precision=_HIGH) + params.bg[None, :, None]
    x1 = jnp.einsum('oc,bcn->bon', params.wx, x3,
                    precision=_HIGH) + params.bx[None, :, None]
    r = jnp.maximum(g1 + x1, 0.0)
    p = jax.nn.sigmoid(jnp.einsum('c,bcn->bn', params.wpsi, r,
                                  precision=_HIGH)[:, None, :]
                       + params.bpsi[None, :, None])
    out = x3 * p
    return out.reshape(B, F_l, Hg, Wg)


if __name__ == "__main__":
    key = jax.random.PRNGKey(0)

    def check(name, B, F_g, F_l, F_int, Hg, Wg, Hx, Wx, k):
        kg, kx, kp = jax.random.split(k, 3)
        g = jax.random.normal(kg, (B, F_g, Hg, Wg), jnp.float32)
        x = jax.random.normal(kx, (B, F_l, Hx, Wx), jnp.float32)
        params = AttentionGateParams(kp, F_g, F_l, F_int)
        out = jax.block_until_ready(attention_gate(params, g, x))
        assert out.shape == (B, F_l, Hg, Wg), (name, out.shape)
        ref = jax.block_until_ready(attention_gate_ref(params, g, x))
        err = float(jnp.max(jnp.abs(out - ref)))
        assert err < 1e-4, (name, err)

    k1, k2, k3 = jax.random.split(key, 3)
    # Small-channel VPU path with the bilinear resize fused into the kernel.
    check("small_fused_resize", 2, 6, 4, 8, 16, 16, 8, 8, k1)
    # Small-channel path, x already spatially aligned with g (no resize).
    check("small_no_resize", 1, 4, 4, 8, 16, 16, 16, 16, k2)
    # Larger channel counts -> flattened lane-dense MXU path.
    check("mxu", 2, 32, 32, 32, 16, 16, 16, 16, k3)
    print("KERNEL_OK")
</pallas_src>

<mosaic_0001>
module attributes {stable_mosaic.version = 11 : i64} {
  func.func @attention_gate_small_kernel(%arg0: i32, %arg1: i32, %arg2: memref<2x6x16x16xf32, #tpu.memory_space<vmem>>, %arg3: memref<2x4x8x8xf32, #tpu.memory_space<vmem>>, %arg4: memref<16x8xf32, #tpu.memory_space<vmem>>, %arg5: memref<8x16xf32, #tpu.memory_space<vmem>>, %arg6: memref<8x6xf32, #tpu.memory_space<smem>>, %arg7: memref<8xf32, #tpu.memory_space<smem>>, %arg8: memref<8x4xf32, #tpu.memory_space<smem>>, %arg9: memref<8xf32, #tpu.memory_space<smem>>, %arg10: memref<8xf32, #tpu.memory_space<smem>>, %arg11: memref<1xf32, #tpu.memory_space<smem>>, %arg12: memref<2x4x16x16xf32, #tpu.memory_space<vmem>>) attributes {dimension_semantics = [#tpu.dimension_semantics<parallel>, #tpu.dimension_semantics<parallel>], iteration_bounds = array<i64: 1, 1>, scalar_prefetch = 0 : i64, scratch_operands = 0 : i64, tpu.core_type = #tpu.core_type<tc>, window_params = [{transform_indices = @transform_0, window_bounds = array<i64: 2, 6, 16, 16>}, {transform_indices = @transform_1, window_bounds = array<i64: 2, 4, 8, 8>}, {transform_indices = @transform_2, window_bounds = array<i64: 16, 8>}, {pipeline_mode = #tpu.pipeline_mode<synchronous>, transform_indices = @transform_3, window_bounds = array<i64: 8, 16>}, {transform_indices = @transform_4, window_bounds = array<i64: 8, 6>}, {transform_indices = @transform_5, window_bounds = array<i64: 8>}, {transform_indices = @transform_6, window_bounds = array<i64: 8, 4>}, {transform_indices = @transform_7, window_bounds = array<i64: 8>}, {transform_indices = @transform_8, window_bounds = array<i64: 8>}, {transform_indices = @transform_9, window_bounds = array<i64: 1>}, {transform_indices = @transform_10, window_bounds = array<i64: 2, 4, 16, 16>}]} {
    %c0 = arith.constant 0 : index
    %c0_0 = arith.constant 0 : index
    %0 = vector.load %arg4[%c0, %c0_0] : memref<16x8xf32, #tpu.memory_space<vmem>>, vector<16x8xf32>
    %c0_1 = arith.constant 0 : index
    %c0_2 = arith.constant 0 : index
    %1 = vector.load %arg5[%c0_1, %c0_2] : memref<8x16xf32, #tpu.memory_space<vmem>>, vector<8x16xf32>
    %c0_3 = arith.constant 0 : index
    %c0_4 = arith.constant 0 : index
    %c0_5 = arith.constant 0 : index
    %c0_6 = arith.constant 0 : index
    %2 = vector.load %arg3[%c0_3, %c0_4, %c0_5, %c0_6] : memref<2x4x8x8xf32, #tpu.memory_space<vmem>>, vector<1x1x8x8xf32>
    %3 = vector.shape_cast %2 : vector<1x1x8x8xf32> to vector<8x8xf32>
    %cst = arith.constant dense<0.000000e+00> : vector<16x8xf32>
    %4 = tpu.matmul %0, %3, %cst {dimension_numbers = #tpu.dot_dimension_numbers<[1], [0], [0], [1], [0, 0, 1, 1], [], []>, precision = #tpu.contract_precision<fp32>} : vector<16x8xf32>, vector<8x8xf32>, vector<16x8xf32> -> vector<16x8xf32>
    %cst_7 = arith.constant dense<0.000000e+00> : vector<16x16xf32>
    %5 = tpu.matmul %4, %1, %cst_7 {dimension_numbers = #tpu.dot_dimension_numbers<[1], [0], [0], [1], [0, 0, 1, 1], [], []>, precision = #tpu.contract_precision<fp32>} : vector<16x8xf32>, vector<8x16xf32>, vector<16x16xf32> -> vector<16x16xf32>
    %c0_8 = arith.constant 0 : index
    %c1 = arith.constant 1 : index
    %c0_9 = arith.constant 0 : index
    %c0_10 = arith.constant 0 : index
    %6 = vector.load %arg3[%c0_8, %c1, %c0_9, %c0_10] : memref<2x4x8x8xf32, #tpu.memory_space<vmem>>, vector<1x1x8x8xf32>
    %7 = vector.shape_cast %6 : vector<1x1x8x8xf32> to vector<8x8xf32>
    %cst_11 = arith.constant dense<0.000000e+00> : vector<16x8xf32>
    %8 = tpu.matmul %0, %7, %cst_11 {dimension_numbers = #tpu.dot_dimension_numbers<[1], [0], [0], [1], [0, 0, 1, 1], [], []>, precision = #tpu.contract_precision<fp32>} : vector<16x8xf32>, vector<8x8xf32>, vector<16x8xf32> -> vector<16x8xf32>
    %cst_12 = arith.constant dense<0.000000e+00> : vector<16x16xf32>
    %9 = tpu.matmul %8, %1, %cst_12 {dimension_numbers = #tpu.dot_dimension_numbers<[1], [0], [0], [1], [0, 0, 1, 1], [], []>, precision = #tpu.contract_precision<fp32>} : vector<16x8xf32>, vector<8x16xf32>, vector<16x16xf32> -> vector<16x16xf32>
    %c0_13 = arith.constant 0 : index
    %c2 = arith.constant 2 : index
    %c0_14 = arith.constant 0 : index
    %c0_15 = arith.constant 0 : index
    %10 = vector.load %arg3[%c0_13, %c2, %c0_14, %c0_15] : memref<2x4x8x8xf32, #tpu.memory_space<vmem>>, vector<1x1x8x8xf32>
    %11 = vector.shape_cast %10 : vector<1x1x8x8xf32> to vector<8x8xf32>
    %cst_16 = arith.constant dense<0.000000e+00> : vector<16x8xf32>
    %12 = tpu.matmul %0, %11, %cst_16 {dimension_numbers = #tpu.dot_dimension_numbers<[1], [0], [0], [1], [0, 0, 1, 1], [], []>, precision = #tpu.contract_precision<fp32>} : vector<16x8xf32>, vector<8x8xf32>, vector<16x8xf32> -> vector<16x8xf32>
    %cst_17 = arith.constant dense<0.000000e+00> : vector<16x16xf32>
    %13 = tpu.matmul %12, %1, %cst_17 {dimension_numbers = #tpu.dot_dimension_numbers<[1], [0], [0], [1], [0, 0, 1, 1], [], []>, precision = #tpu.contract_precision<fp32>} : vector<16x8xf32>, vector<8x16xf32>, vector<16x16xf32> -> vector<16x16xf32>
    %c0_18 = arith.constant 0 : index
    %c3 = arith.constant 3 : index
    %c0_19 = arith.constant 0 : index
    %c0_20 = arith.constant 0 : index
    %14 = vector.load %arg3[%c0_18, %c3, %c0_19, %c0_20] : memref<2x4x8x8xf32, #tpu.memory_space<vmem>>, vector<1x1x8x8xf32>
    %15 = vector.shape_cast %14 : vector<1x1x8x8xf32> to vector<8x8xf32>
    %cst_21 = arith.constant dense<0.000000e+00> : vector<16x8xf32>
    %16 = tpu.matmul %0, %15, %cst_21 {dimension_numbers = #tpu.dot_dimension_numbers<[1], [0], [0], [1], [0, 0, 1, 1], [], []>, precision = #tpu.contract_precision<fp32>} : vector<16x8xf32>, vector<8x8xf32>, vector<16x8xf32> -> vector<16x8xf32>
    %cst_22 = arith.constant dense<0.000000e+00> : vector<16x16xf32>
    %17 = tpu.matmul %16, %1, %cst_22 {dimension_numbers = #tpu.dot_dimension_numbers<[1], [0], [0], [1], [0, 0, 1, 1], [], []>, precision = #tpu.contract_precision<fp32>} : vector<16x8xf32>, vector<8x16xf32>, vector<16x16xf32> -> vector<16x16xf32>
    %c0_23 = arith.constant 0 : index
    %c0_24 = arith.constant 0 : index
    %c0_25 = arith.constant 0 : index
    %c0_26 = arith.constant 0 : index
    %18 = vector.load %arg2[%c0_23, %c0_24, %c0_25, %c0_26] : memref<2x6x16x16xf32, #tpu.memory_space<vmem>>, vector<1x1x16x16xf32>
    %19 = vector.shape_cast %18 : vector<1x1x16x16xf32> to vector<16x16xf32>
    %c0_27 = arith.constant 0 : index
    %c1_28 = arith.constant 1 : index
    %c0_29 = arith.constant 0 : index
    %c0_30 = arith.constant 0 : index
    %20 = vector.load %arg2[%c0_27, %c1_28, %c0_29, %c0_30] : memref<2x6x16x16xf32, #tpu.memory_space<vmem>>, vector<1x1x16x16xf32>
    %21 = vector.shape_cast %20 : vector<1x1x16x16xf32> to vector<16x16xf32>
    %c0_31 = arith.constant 0 : index
    %c2_32 = arith.constant 2 : index
    %c0_33 = arith.constant 0 : index
    %c0_34 = arith.constant 0 : index
    %22 = vector.load %arg2[%c0_31, %c2_32, %c0_33, %c0_34] : memref<2x6x16x16xf32, #tpu.memory_space<vmem>>, vector<1x1x16x16xf32>
    %23 = vector.shape_cast %22 : vector<1x1x16x16xf32> to vector<16x16xf32>
    %c0_35 = arith.constant 0 : index
    %c3_36 = arith.constant 3 : index
    %c0_37 = arith.constant 0 : index
    %c0_38 = arith.constant 0 : index
    %24 = vector.load %arg2[%c0_35, %c3_36, %c0_37, %c0_38] : memref<2x6x16x16xf32, #tpu.memory_space<vmem>>, vector<1x1x16x16xf32>
    %25 = vector.shape_cast %24 : vector<1x1x16x16xf32> to vector<16x16xf32>
    %c0_39 = arith.constant 0 : index
    %c4 = arith.constant 4 : index
    %c0_40 = arith.constant 0 : index
    %c0_41 = arith.constant 0 : index
    %26 = vector.load %arg2[%c0_39, %c4, %c0_40, %c0_41] : memref<2x6x16x16xf32, #tpu.memory_space<vmem>>, vector<1x1x16x16xf32>
    %27 = vector.shape_cast %26 : vector<1x1x16x16xf32> to vector<16x16xf32>
    %c0_42 = arith.constant 0 : index
    %c5 = arith.constant 5 : index
    %c0_43 = arith.constant 0 : index
    %c0_44 = arith.constant 0 : index
    %28 = vector.load %arg2[%c0_42, %c5, %c0_43, %c0_44] : memref<2x6x16x16xf32, #tpu.memory_space<vmem>>, vector<1x1x16x16xf32>
    %29 = vector.shape_cast %28 : vector<1x1x16x16xf32> to vector<16x16xf32>
    %c0_45 = arith.constant 0 : index
    %c0_46 = arith.constant 0 : index
    %30 = memref.load %arg6[%c0_45, %c0_46] : memref<8x6xf32, #tpu.memory_space<smem>>
    %31 = vector.broadcast %30 : f32 to vector<16x16xf32>
    %32 = arith.mulf %19, %31 : vector<16x16xf32>
    %c0_47 = arith.constant 0 : index
    %c1_48 = arith.constant 1 : index
    %33 = memref.load %arg6[%c0_47, %c1_48] : memref<8x6xf32, #tpu.memory_space<smem>>
    %34 = vector.broadcast %33 : f32 to vector<16x16xf32>
    %35 = arith.mulf %21, %34 : vector<16x16xf32>
    %36 = arith.addf %32, %35 : vector<16x16xf32>
    %c0_49 = arith.constant 0 : index
    %c2_50 = arith.constant 2 : index
    %37 = memref.load %arg6[%c0_49, %c2_50] : memref<8x6xf32, #tpu.memory_space<smem>>
    %38 = vector.broadcast %37 : f32 to vector<16x16xf32>
    %39 = arith.mulf %23, %38 : vector<16x16xf32>
    %40 = arith.addf %36, %39 : vector<16x16xf32>
    %c0_51 = arith.constant 0 : index
    %c3_52 = arith.constant 3 : index
    %41 = memref.load %arg6[%c0_51, %c3_52] : memref<8x6xf32, #tpu.memory_space<smem>>
    %42 = vector.broadcast %41 : f32 to vector<16x16xf32>
    %43 = arith.mulf %25, %42 : vector<16x16xf32>
    %44 = arith.addf %40, %43 : vector<16x16xf32>
    %c0_53 = arith.constant 0 : index
    %c4_54 = arith.constant 4 : index
    %45 = memref.load %arg6[%c0_53, %c4_54] : memref<8x6xf32, #tpu.memory_space<smem>>
    %46 = vector.broadcast %45 : f32 to vector<16x16xf32>
    %47 = arith.mulf %27, %46 : vector<16x16xf32>
    %48 = arith.addf %44, %47 : vector<16x16xf32>
    %c0_55 = arith.constant 0 : index
    %c5_56 = arith.constant 5 : index
    %49 = memref.load %arg6[%c0_55, %c5_56] : memref<8x6xf32, #tpu.memory_space<smem>>
    %50 = vector.broadcast %49 : f32 to vector<16x16xf32>
    %51 = arith.mulf %29, %50 : vector<16x16xf32>
    %52 = arith.addf %48, %51 : vector<16x16xf32>
    %c0_57 = arith.constant 0 : index
    %c0_58 = arith.constant 0 : index
    %53 = memref.load %arg8[%c0_57, %c0_58] : memref<8x4xf32, #tpu.memory_space<smem>>
    %54 = vector.broadcast %53 : f32 to vector<16x16xf32>
    %55 = arith.mulf %5, %54 : vector<16x16xf32>
    %56 = arith.addf %52, %55 : vector<16x16xf32>
    %c0_59 = arith.constant 0 : index
    %c1_60 = arith.constant 1 : index
    %57 = memref.load %arg8[%c0_59, %c1_60] : memref<8x4xf32, #tpu.memory_space<smem>>
    %58 = vector.broadcast %57 : f32 to vector<16x16xf32>
    %59 = arith.mulf %9, %58 : vector<16x16xf32>
    %60 = arith.addf %56, %59 : vector<16x16xf32>
    %c0_61 = arith.constant 0 : index
    %c2_62 = arith.constant 2 : index
    %61 = memref.load %arg8[%c0_61, %c2_62] : memref<8x4xf32, #tpu.memory_space<smem>>
    %62 = vector.broadcast %61 : f32 to vector<16x16xf32>
    %63 = arith.mulf %13, %62 : vector<16x16xf32>
    %64 = arith.addf %60, %63 : vector<16x16xf32>
    %c0_63 = arith.constant 0 : index
    %c3_64 = arith.constant 3 : index
    %65 = memref.load %arg8[%c0_63, %c3_64] : memref<8x4xf32, #tpu.memory_space<smem>>
    %66 = vector.broadcast %65 : f32 to vector<16x16xf32>
    %67 = arith.mulf %17, %66 : vector<16x16xf32>
    %68 = arith.addf %64, %67 : vector<16x16xf32>
    %c0_65 = arith.constant 0 : index
    %69 = memref.load %arg7[%c0_65] : memref<8xf32, #tpu.memory_space<smem>>
    %c0_66 = arith.constant 0 : index
    %70 = memref.load %arg9[%c0_66] : memref<8xf32, #tpu.memory_space<smem>>
    %71 = arith.addf %69, %70 : f32
    %72 = vector.broadcast %71 : f32 to vector<16x16xf32>
    %73 = arith.addf %68, %72 : vector<16x16xf32>
    %cst_67 = arith.constant 0.000000e+00 : f32
    %74 = vector.broadcast %cst_67 : f32 to vector<16x16xf32>
    %75 = arith.maximumf %73, %74 : vector<16x16xf32>
    %c0_68 = arith.constant 0 : index
    %76 = memref.load %arg10[%c0_68] : memref<8xf32, #tpu.memory_space<smem>>
    %77 = vector.broadcast %76 : f32 to vector<16x16xf32>
    %78 = arith.mulf %75, %77 : vector<16x16xf32>
    %c1_69 = arith.constant 1 : index
    %c0_70 = arith.constant 0 : index
    %79 = memref.load %arg6[%c1_69, %c0_70] : memref<8x6xf32, #tpu.memory_space<smem>>
    %80 = vector.broadcast %79 : f32 to vector<16x16xf32>
    %81 = arith.mulf %19, %80 : vector<16x16xf32>
    %c1_71 = arith.constant 1 : index
    %c1_72 = arith.constant 1 : index
    %82 = memref.load %arg6[%c1_71, %c1_72] : memref<8x6xf32, #tpu.memory_space<smem>>
    %83 = vector.broadcast %82 : f32 to vector<16x16xf32>
    %84 = arith.mulf %21, %83 : vector<16x16xf32>
    %85 = arith.addf %81, %84 : vector<16x16xf32>
    %c1_73 = arith.constant 1 : index
    %c2_74 = arith.constant 2 : index
    %86 = memref.load %arg6[%c1_73, %c2_74] : memref<8x6xf32, #tpu.memory_space<smem>>
    %87 = vector.broadcast %86 : f32 to vector<16x16xf32>
    %88 = arith.mulf %23, %87 : vector<16x16xf32>
    %89 = arith.addf %85, %88 : vector<16x16xf32>
    %c1_75 = arith.constant 1 : index
    %c3_76 = arith.constant 3 : index
    %90 = memref.load %arg6[%c1_75, %c3_76] : memref<8x6xf32, #tpu.memory_space<smem>>
    %91 = vector.broadcast %90 : f32 to vector<16x16xf32>
    %92 = arith.mulf %25, %91 : vector<16x16xf32>
    %93 = arith.addf %89, %92 : vector<16x16xf32>
    %c1_77 = arith.constant 1 : index
    %c4_78 = arith.constant 4 : index
    %94 = memref.load %arg6[%c1_77, %c4_78] : memref<8x6xf32, #tpu.memory_space<smem>>
    %95 = vector.broadcast %94 : f32 to vector<16x16xf32>
    %96 = arith.mulf %27, %95 : vector<16x16xf32>
    %97 = arith.addf %93, %96 : vector<16x16xf32>
    %c1_79 = arith.constant 1 : index
    %c5_80 = arith.constant 5 : index
    %98 = memref.load %arg6[%c1_79, %c5_80] : memref<8x6xf32, #tpu.memory_space<smem>>
    %99 = vector.broadcast %98 : f32 to vector<16x16xf32>
    %100 = arith.mulf %29, %99 : vector<16x16xf32>
    %101 = arith.addf %97, %100 : vector<16x16xf32>
    %c1_81 = arith.constant 1 : index
    %c0_82 = arith.constant 0 : index
    %102 = memref.load %arg8[%c1_81, %c0_82] : memref<8x4xf32, #tpu.memory_space<smem>>
    %103 = vector.broadcast %102 : f32 to vector<16x16xf32>
    %104 = arith.mulf %5, %103 : vector<16x16xf32>
    %105 = arith.addf %101, %104 : vector<16x16xf32>
    %c1_83 = arith.constant 1 : index
    %c1_84 = arith.constant 1 : index
    %106 = memref.load %arg8[%c1_83, %c1_84] : memref<8x4xf32, #tpu.memory_space<smem>>
    %107 = vector.broadcast %106 : f32 to vector<16x16xf32>
    %108 = arith.mulf %9, %107 : vector<16x16xf32>
    %109 = arith.addf %105, %108 : vector<16x16xf32>
    %c1_85 = arith.constant 1 : index
    %c2_86 = arith.constant 2 : index
    %110 = memref.load %arg8[%c1_85, %c2_86] : memref<8x4xf32, #tpu.memory_space<smem>>
    %111 = vector.broadcast %110 : f32 to vector<16x16xf32>
    %112 = arith.mulf %13, %111 : vector<16x16xf32>
    %113 = arith.addf %109, %112 : vector<16x16xf32>
    %c1_87 = arith.constant 1 : index
    %c3_88 = arith.constant 3 : index
    %114 = memref.load %arg8[%c1_87, %c3_88] : memref<8x4xf32, #tpu.memory_space<smem>>
    %115 = vector.broadcast %114 : f32 to vector<16x16xf32>
    %116 = arith.mulf %17, %115 : vector<16x16xf32>
    %117 = arith.addf %113, %116 : vector<16x16xf32>
    %c1_89 = arith.constant 1 : index
    %118 = memref.load %arg7[%c1_89] : memref<8xf32, #tpu.memory_space<smem>>
    %c1_90 = arith.constant 1 : index
    %119 = memref.load %arg9[%c1_90] : memref<8xf32, #tpu.memory_space<smem>>
    %120 = arith.addf %118, %119 : f32
    %121 = vector.broadcast %120 : f32 to vector<16x16xf32>
    %122 = arith.addf %117, %121 : vector<16x16xf32>
    %cst_91 = arith.constant 0.000000e+00 : f32
    %123 = vector.broadcast %cst_91 : f32 to vector<16x16xf32>
    %124 = arith.maximumf %122, %123 : vector<16x16xf32>
    %c1_92 = arith.constant 1 : index
    %125 = memref.load %arg10[%c1_92] : memref<8xf32, #tpu.memory_space<smem>>
    %126 = vector.broadcast %125 : f32 to vector<16x16xf32>
    %127 = arith.mulf %124, %126 : vector<16x16xf32>
    %128 = arith.addf %78, %127 : vector<16x16xf32>
    %c2_93 = arith.constant 2 : index
    %c0_94 = arith.constant 0 : index
    %129 = memref.load %arg6[%c2_93, %c0_94] : memref<8x6xf32, #tpu.memory_space<smem>>
    %130 = vector.broadcast %129 : f32 to vector<16x16xf32>
    %131 = arith.mulf %19, %130 : vector<16x16xf32>
    %c2_95 = arith.constant 2 : index
    %c1_96 = arith.constant 1 : index
    %132 = memref.load %arg6[%c2_95, %c1_96] : memref<8x6xf32, #tpu.memory_space<smem>>
    %133 = vector.broadcast %132 : f32 to vector<16x16xf32>
    %134 = arith.mulf %21, %133 : vector<16x16xf32>
    %135 = arith.addf %131, %134 : vector<16x16xf32>
    %c2_97 = arith.constant 2 : index
    %c2_98 = arith.constant 2 : index
    %136 = memref.load %arg6[%c2_97, %c2_98] : memref<8x6xf32, #tpu.memory_space<smem>>
    %137 = vector.broadcast %136 : f32 to vector<16x16xf32>
    %138 = arith.mulf %23, %137 : vector<16x16xf32>
    %139 = arith.addf %135, %138 : vector<16x16xf32>
    %c2_99 = arith.constant 2 : index
    %c3_100 = arith.constant 3 : index
    %140 = memref.load %arg6[%c2_99, %c3_100] : memref<8x6xf32, #tpu.memory_space<smem>>
    %141 = vector.broadcast %140 : f32 to vector<16x16xf32>
    %142 = arith.mulf %25, %141 : vector<16x16xf32>
    %143 = arith.addf %139, %142 : vector<16x16xf32>
    %c2_101 = arith.constant 2 : index
    %c4_102 = arith.constant 4 : index
    %144 = memref.load %arg6[%c2_101, %c4_102] : memref<8x6xf32, #tpu.memory_space<smem>>
    %145 = vector.broadcast %144 : f32 to vector<16x16xf32>
    %146 = arith.mulf %27, %145 : vector<16x16xf32>
    %147 = arith.addf %143, %146 : vector<16x16xf32>
    %c2_103 = arith.constant 2 : index
    %c5_104 = arith.constant 5 : index
    %148 = memref.load %arg6[%c2_103, %c5_104] : memref<8x6xf32, #tpu.memory_space<smem>>
    %149 = vector.broadcast %148 : f32 to vector<16x16xf32>
    %150 = arith.mulf %29, %149 : vector<16x16xf32>
    %151 = arith.addf %147, %150 : vector<16x16xf32>
    %c2_105 = arith.constant 2 : index
    %c0_106 = arith.constant 0 : index
    %152 = memref.load %arg8[%c2_105, %c0_106] : memref<8x4xf32, #tpu.memory_space<smem>>
    %153 = vector.broadcast %152 : f32 to vector<16x16xf32>
    %154 = arith.mulf %5, %153 : vector<16x16xf32>
    %155 = arith.addf %151, %154 : vector<16x16xf32>
    %c2_107 = arith.constant 2 : index
    %c1_108 = arith.constant 1 : index
    %156 = memref.load %arg8[%c2_107, %c1_108] : memref<8x4xf32, #tpu.memory_space<smem>>
    %157 = vector.broadcast %156 : f32 to vector<16x16xf32>
    %158 = arith.mulf %9, %157 : vector<16x16xf32>
    %159 = arith.addf %155, %158 : vector<16x16xf32>
    %c2_109 = arith.constant 2 : index
    %c2_110 = arith.constant 2 : index
    %160 = memref.load %arg8[%c2_109, %c2_110] : memref<8x4xf32, #tpu.memory_space<smem>>
    %161 = vector.broadcast %160 : f32 to vector<16x16xf32>
    %162 = arith.mulf %13, %161 : vector<16x16xf32>
    %163 = arith.addf %159, %162 : vector<16x16xf32>
    %c2_111 = arith.constant 2 : index
    %c3_112 = arith.constant 3 : index
    %164 = memref.load %arg8[%c2_111, %c3_112] : memref<8x4xf32, #tpu.memory_space<smem>>
    %165 = vector.broadcast %164 : f32 to vector<16x16xf32>
    %166 = arith.mulf %17, %165 : vector<16x16xf32>
    %167 = arith.addf %163, %166 : vector<16x16xf32>
    %c2_113 = arith.constant 2 : index
    %168 = memref.load %arg7[%c2_113] : memref<8xf32, #tpu.memory_space<smem>>
    %c2_114 = arith.constant 2 : index
    %169 = memref.load %arg9[%c2_114] : memref<8xf32, #tpu.memory_space<smem>>
    %170 = arith.addf %168, %169 : f32
    %171 = vector.broadcast %170 : f32 to vector<16x16xf32>
    %172 = arith.addf %167, %171 : vector<16x16xf32>
    %cst_115 = arith.constant 0.000000e+00 : f32
    %173 = vector.broadcast %cst_115 : f32 to vector<16x16xf32>
    %174 = arith.maximumf %172, %173 : vector<16x16xf32>
    %c2_116 = arith.constant 2 : index
    %175 = memref.load %arg10[%c2_116] : memref<8xf32, #tpu.memory_space<smem>>
    %176 = vector.broadcast %175 : f32 to vector<16x16xf32>
    %177 = arith.mulf %174, %176 : vector<16x16xf32>
    %178 = arith.addf %128, %177 : vector<16x16xf32>
    %c3_117 = arith.constant 3 : index
    %c0_118 = arith.constant 0 : index
    %179 = memref.load %arg6[%c3_117, %c0_118] : memref<8x6xf32, #tpu.memory_space<smem>>
    %180 = vector.broadcast %179 : f32 to vector<16x16xf32>
    %181 = arith.mulf %19, %180 : vector<16x16xf32>
    %c3_119 = arith.constant 3 : index
    %c1_120 = arith.constant 1 : index
    %182 = memref.load %arg6[%c3_119, %c1_120] : memref<8x6xf32, #tpu.memory_space<smem>>
    %183 = vector.broadcast %182 : f32 to vector<16x16xf32>
    %184 = arith.mulf %21, %183 : vector<16x16xf32>
    %185 = arith.addf %181, %184 : vector<16x16xf32>
    %c3_121 = arith.constant 3 : index
    %c2_122 = arith.constant 2 : index
    %186 = memref.load %arg6[%c3_121, %c2_122] : memref<8x6xf32, #tpu.memory_space<smem>>
    %187 = vector.broadcast %186 : f32 to vector<16x16xf32>
    %188 = arith.mulf %23, %187 : vector<16x16xf32>
    %189 = arith.addf %185, %188 : vector<16x16xf32>
    %c3_123 = arith.constant 3 : index
    %c3_124 = arith.constant 3 : index
    %190 = memref.load %arg6[%c3_123, %c3_124] : memref<8x6xf32, #tpu.memory_space<smem>>
    %191 = vector.broadcast %190 : f32 to vector<16x16xf32>
    %192 = arith.mulf %25, %191 : vector<16x16xf32>
    %193 = arith.addf %189, %192 : vector<16x16xf32>
    %c3_125 = arith.constant 3 : index
    %c4_126 = arith.constant 4 : index
    %194 = memref.load %arg6[%c3_125, %c4_126] : memref<8x6xf32, #tpu.memory_space<smem>>
    %195 = vector.broadcast %194 : f32 to vector<16x16xf32>
    %196 = arith.mulf %27, %195 : vector<16x16xf32>
    %197 = arith.addf %193, %196 : vector<16x16xf32>
    %c3_127 = arith.constant 3 : index
    %c5_128 = arith.constant 5 : index
    %198 = memref.load %arg6[%c3_127, %c5_128] : memref<8x6xf32, #tpu.memory_space<smem>>
    %199 = vector.broadcast %198 : f32 to vector<16x16xf32>
    %200 = arith.mulf %29, %199 : vector<16x16xf32>
    %201 = arith.addf %197, %200 : vector<16x16xf32>
    %c3_129 = arith.constant 3 : index
    %c0_130 = arith.constant 0 : index
    %202 = memref.load %arg8[%c3_129, %c0_130] : memref<8x4xf32, #tpu.memory_space<smem>>
    %203 = vector.broadcast %202 : f32 to vector<16x16xf32>
    %204 = arith.mulf %5, %203 : vector<16x16xf32>
    %205 = arith.addf %201, %204 : vector<16x16xf32>
    %c3_131 = arith.constant 3 : index
    %c1_132 = arith.constant 1 : index
    %206 = memref.load %arg8[%c3_131, %c1_132] : memref<8x4xf32, #tpu.memory_space<smem>>
    %207 = vector.broadcast %206 : f32 to vector<16x16xf32>
    %208 = arith.mulf %9, %207 : vector<16x16xf32>
    %209 = arith.addf %205, %208 : vector<16x16xf32>
    %c3_133 = arith.constant 3 : index
    %c2_134 = arith.constant 2 : index
    %210 = memref.load %arg8[%c3_133, %c2_134] : memref<8x4xf32, #tpu.memory_space<smem>>
    %211 = vector.broadcast %210 : f32 to vector<16x16xf32>
    %212 = arith.mulf %13, %211 : vector<16x16xf32>
    %213 = arith.addf %209, %212 : vector<16x16xf32>
    %c3_135 = arith.constant 3 : index
    %c3_136 = arith.constant 3 : index
    %214 = memref.load %arg8[%c3_135, %c3_136] : memref<8x4xf32, #tpu.memory_space<smem>>
    %215 = vector.broadcast %214 : f32 to vector<16x16xf32>
    %216 = arith.mulf %17, %215 : vector<16x16xf32>
    %217 = arith.addf %213, %216 : vector<16x16xf32>
    %c3_137 = arith.constant 3 : index
    %218 = memref.load %arg7[%c3_137] : memref<8xf32, #tpu.memory_space<smem>>
    %c3_138 = arith.constant 3 : index
    %219 = memref.load %arg9[%c3_138] : memref<8xf32, #tpu.memory_space<smem>>
    %220 = arith.addf %218, %219 : f32
    %221 = vector.broadcast %220 : f32 to vector<16x16xf32>
    %222 = arith.addf %217, %221 : vector<16x16xf32>
    %cst_139 = arith.constant 0.000000e+00 : f32
    %223 = vector.broadcast %cst_139 : f32 to vector<16x16xf32>
    %224 = arith.maximumf %222, %223 : vector<16x16xf32>
    %c3_140 = arith.constant 3 : index
    %225 = memref.load %arg10[%c3_140] : memref<8xf32, #tpu.memory_space<smem>>
    %226 = vector.broadcast %225 : f32 to vector<16x16xf32>
    %227 = arith.mulf %224, %226 : vector<16x16xf32>
    %228 = arith.addf %178, %227 : vector<16x16xf32>
    %c4_141 = arith.constant 4 : index
    %c0_142 = arith.constant 0 : index
    %229 = memref.load %arg6[%c4_141, %c0_142] : memref<8x6xf32, #tpu.memory_space<smem>>
    %230 = vector.broadcast %229 : f32 to vector<16x16xf32>
    %231 = arith.mulf %19, %230 : vector<16x16xf32>
    %c4_143 = arith.constant 4 : index
    %c1_144 = arith.constant 1 : index
    %232 = memref.load %arg6[%c4_143, %c1_144] : memref<8x6xf32, #tpu.memory_space<smem>>
    %233 = vector.broadcast %232 : f32 to vector<16x16xf32>
    %234 = arith.mulf %21, %233 : vector<16x16xf32>
    %235 = arith.addf %231, %234 : vector<16x16xf32>
    %c4_145 = arith.constant 4 : index
    %c2_146 = arith.constant 2 : index
    %236 = memref.load %arg6[%c4_145, %c2_146] : memref<8x6xf32, #tpu.memory_space<smem>>
    %237 = vector.broadcast %236 : f32 to vector<16x16xf32>
    %238 = arith.mulf %23, %237 : vector<16x16xf32>
    %239 = arith.addf %235, %238 : vector<16x16xf32>
    %c4_147 = arith.constant 4 : index
    %c3_148 = arith.constant 3 : index
    %240 = memref.load %arg6[%c4_147, %c3_148] : memref<8x6xf32, #tpu.memory_space<smem>>
    %241 = vector.broadcast %240 : f32 to vector<16x16xf32>
    %242 = arith.mulf %25, %241 : vector<16x16xf32>
    %243 = arith.addf %239, %242 : vector<16x16xf32>
    %c4_149 = arith.constant 4 : index
    %c4_150 = arith.constant 4 : index
    %244 = memref.load %arg6[%c4_149, %c4_150] : memref<8x6xf32, #tpu.memory_space<smem>>
    %245 = vector.broadcast %244 : f32 to vector<16x16xf32>
    %246 = arith.mulf %27, %245 : vector<16x16xf32>
    %247 = arith.addf %243, %246 : vector<16x16xf32>
    %c4_151 = arith.constant 4 : index
    %c5_152 = arith.constant 5 : index
    %248 = memref.load %arg6[%c4_151, %c5_152] : memref<8x6xf32, #tpu.memory_space<smem>>
    %249 = vector.broadcast %248 : f32 to vector<16x16xf32>
    %250 = arith.mulf %29, %249 : vector<16x16xf32>
    %251 = arith.addf %247, %250 : vector<16x16xf32>
    %c4_153 = arith.constant 4 : index
    %c0_154 = arith.constant 0 : index
    %252 = memref.load %arg8[%c4_153, %c0_154] : memref<8x4xf32, #tpu.memory_space<smem>>
    %253 = vector.broadcast %252 : f32 to vector<16x16xf32>
    %254 = arith.mulf %5, %253 : vector<16x16xf32>
    %255 = arith.addf %251, %254 : vector<16x16xf32>
    %c4_155 = arith.constant 4 : index
    %c1_156 = arith.constant 1 : index
    %256 = memref.load %arg8[%c4_155, %c1_156] : memref<8x4xf32, #tpu.memory_space<smem>>
    %257 = vector.broadcast %256 : f32 to vector<16x16xf32>
    %258 = arith.mulf %9, %257 : vector<16x16xf32>
    %259 = arith.addf %255, %258 : vector<16x16xf32>
    %c4_157 = arith.constant 4 : index
    %c2_158 = arith.constant 2 : index
    %260 = memref.load %arg8[%c4_157, %c2_158] : memref<8x4xf32, #tpu.memory_space<smem>>
    %261 = vector.broadcast %260 : f32 to vector<16x16xf32>
    %262 = arith.mulf %13, %261 : vector<16x16xf32>
    %263 = arith.addf %259, %262 : vector<16x16xf32>
    %c4_159 = arith.constant 4 : index
    %c3_160 = arith.constant 3 : index
    %264 = memref.load %arg8[%c4_159, %c3_160] : memref<8x4xf32, #tpu.memory_space<smem>>
    %265 = vector.broadcast %264 : f32 to vector<16x16xf32>
    %266 = arith.mulf %17, %265 : vector<16x16xf32>
    %267 = arith.addf %263, %266 : vector<16x16xf32>
    %c4_161 = arith.constant 4 : index
    %268 = memref.load %arg7[%c4_161] : memref<8xf32, #tpu.memory_space<smem>>
    %c4_162 = arith.constant 4 : index
    %269 = memref.load %arg9[%c4_162] : memref<8xf32, #tpu.memory_space<smem>>
    %270 = arith.addf %268, %269 : f32
    %271 = vector.broadcast %270 : f32 to vector<16x16xf32>
    %272 = arith.addf %267, %271 : vector<16x16xf32>
    %cst_163 = arith.constant 0.000000e+00 : f32
    %273 = vector.broadcast %cst_163 : f32 to vector<16x16xf32>
    %274 = arith.maximumf %272, %273 : vector<16x16xf32>
    %c4_164 = arith.constant 4 : index
    %275 = memref.load %arg10[%c4_164] : memref<8xf32, #tpu.memory_space<smem>>
    %276 = vector.broadcast %275 : f32 to vector<16x16xf32>
    %277 = arith.mulf %274, %276 : vector<16x16xf32>
    %278 = arith.addf %228, %277 : vector<16x16xf32>
    %c5_165 = arith.constant 5 : index
    %c0_166 = arith.constant 0 : index
    %279 = memref.load %arg6[%c5_165, %c0_166] : memref<8x6xf32, #tpu.memory_space<smem>>
    %280 = vector.broadcast %279 : f32 to vector<16x16xf32>
    %281 = arith.mulf %19, %280 : vector<16x16xf32>
    %c5_167 = arith.constant 5 : index
    %c1_168 = arith.constant 1 : index
    %282 = memref.load %arg6[%c5_167, %c1_168] : memref<8x6xf32, #tpu.memory_space<smem>>
    %283 = vector.broadcast %282 : f32 to vector<16x16xf32>
    %284 = arith.mulf %21, %283 : vector<16x16xf32>
    %285 = arith.addf %281, %284 : vector<16x16xf32>
    %c5_169 = arith.constant 5 : index
    %c2_170 = arith.constant 2 : index
    %286 = memref.load %arg6[%c5_169, %c2_170] : memref<8x6xf32, #tpu.memory_space<smem>>
    %287 = vector.broadcast %286 : f32 to vector<16x16xf32>
    %288 = arith.mulf %23, %287 : vector<16x16xf32>
    %289 = arith.addf %285, %288 : vector<16x16xf32>
    %c5_171 = arith.constant 5 : index
    %c3_172 = arith.constant 3 : index
    %290 = memref.load %arg6[%c5_171, %c3_172] : memref<8x6xf32, #tpu.memory_space<smem>>
    %291 = vector.broadcast %290 : f32 to vector<16x16xf32>
    %292 = arith.mulf %25, %291 : vector<16x16xf32>
    %293 = arith.addf %289, %292 : vector<16x16xf32>
    %c5_173 = arith.constant 5 : index
    %c4_174 = arith.constant 4 : index
    %294 = memref.load %arg6[%c5_173, %c4_174] : memref<8x6xf32, #tpu.memory_space<smem>>
    %295 = vector.broadcast %294 : f32 to vector<16x16xf32>
    %296 = arith.mulf %27, %295 : vector<16x16xf32>
    %297 = arith.addf %293, %296 : vector<16x16xf32>
    %c5_175 = arith.constant 5 : index
    %c5_176 = arith.constant 5 : index
    %298 = memref.load %arg6[%c5_175, %c5_176] : memref<8x6xf32, #tpu.memory_space<smem>>
    %299 = vector.broadcast %298 : f32 to vector<16x16xf32>
    %300 = arith.mulf %29, %299 : vector<16x16xf32>
    %301 = arith.addf %297, %300 : vector<16x16xf32>
    %c5_177 = arith.constant 5 : index
    %c0_178 = arith.constant 0 : index
    %302 = memref.load %arg8[%c5_177, %c0_178] : memref<8x4xf32, #tpu.memory_space<smem>>
    %303 = vector.broadcast %302 : f32 to vector<16x16xf32>
    %304 = arith.mulf %5, %303 : vector<16x16xf32>
    %305 = arith.addf %301, %304 : vector<16x16xf32>
    %c5_179 = arith.constant 5 : index
    %c1_180 = arith.constant 1 : index
    %306 = memref.load %arg8[%c5_179, %c1_180] : memref<8x4xf32, #tpu.memory_space<smem>>
    %307 = vector.broadcast %306 : f32 to vector<16x16xf32>
    %308 = arith.mulf %9, %307 : vector<16x16xf32>
    %309 = arith.addf %305, %308 : vector<16x16xf32>
    %c5_181 = arith.constant 5 : index
    %c2_182 = arith.constant 2 : index
    %310 = memref.load %arg8[%c5_181, %c2_182] : memref<8x4xf32, #tpu.memory_space<smem>>
    %311 = vector.broadcast %310 : f32 to vector<16x16xf32>
    %312 = arith.mulf %13, %311 : vector<16x16xf32>
    %313 = arith.addf %309, %312 : vector<16x16xf32>
    %c5_183 = arith.constant 5 : index
    %c3_184 = arith.constant 3 : index
    %314 = memref.load %arg8[%c5_183, %c3_184] : memref<8x4xf32, #tpu.memory_space<smem>>
    %315 = vector.broadcast %314 : f32 to vector<16x16xf32>
    %316 = arith.mulf %17, %315 : vector<16x16xf32>
    %317 = arith.addf %313, %316 : vector<16x16xf32>
    %c5_185 = arith.constant 5 : index
    %318 = memref.load %arg7[%c5_185] : memref<8xf32, #tpu.memory_space<smem>>
    %c5_186 = arith.constant 5 : index
    %319 = memref.load %arg9[%c5_186] : memref<8xf32, #tpu.memory_space<smem>>
    %320 = arith.addf %318, %319 : f32
    %321 = vector.broadcast %320 : f32 to vector<16x16xf32>
    %322 = arith.addf %317, %321 : vector<16x16xf32>
    %cst_187 = arith.constant 0.000000e+00 : f32
    %323 = vector.broadcast %cst_187 : f32 to vector<16x16xf32>
    %324 = arith.maximumf %322, %323 : vector<16x16xf32>
    %c5_188 = arith.constant 5 : index
    %325 = memref.load %arg10[%c5_188] : memref<8xf32, #tpu.memory_space<smem>>
    %326 = vector.broadcast %325 : f32 to vector<16x16xf32>
    %327 = arith.mulf %324, %326 : vector<16x16xf32>
    %328 = arith.addf %278, %327 : vector<16x16xf32>
    %c6 = arith.constant 6 : index
    %c0_189 = arith.constant 0 : index
    %329 = memref.load %arg6[%c6, %c0_189] : memref<8x6xf32, #tpu.memory_space<smem>>
    %330 = vector.broadcast %329 : f32 to vector<16x16xf32>
    %331 = arith.mulf %19, %330 : vector<16x16xf32>
    %c6_190 = arith.constant 6 : index
    %c1_191 = arith.constant 1 : index
    %332 = memref.load %arg6[%c6_190, %c1_191] : memref<8x6xf32, #tpu.memory_space<smem>>
    %333 = vector.broadcast %332 : f32 to vector<16x16xf32>
    %334 = arith.mulf %21, %333 : vector<16x16xf32>
    %335 = arith.addf %331, %334 : vector<16x16xf32>
    %c6_192 = arith.constant 6 : index
    %c2_193 = arith.constant 2 : index
    %336 = memref.load %arg6[%c6_192, %c2_193] : memref<8x6xf32, #tpu.memory_space<smem>>
    %337 = vector.broadcast %336 : f32 to vector<16x16xf32>
    %338 = arith.mulf %23, %337 : vector<16x16xf32>
    %339 = arith.addf %335, %338 : vector<16x16xf32>
    %c6_194 = arith.constant 6 : index
    %c3_195 = arith.constant 3 : index
    %340 = memref.load %arg6[%c6_194, %c3_195] : memref<8x6xf32, #tpu.memory_space<smem>>
    %341 = vector.broadcast %340 : f32 to vector<16x16xf32>
    %342 = arith.mulf %25, %341 : vector<16x16xf32>
    %343 = arith.addf %339, %342 : vector<16x16xf32>
    %c6_196 = arith.constant 6 : index
    %c4_197 = arith.constant 4 : index
    %344 = memref.load %arg6[%c6_196, %c4_197] : memref<8x6xf32, #tpu.memory_space<smem>>
    %345 = vector.broadcast %344 : f32 to vector<16x16xf32>
    %346 = arith.mulf %27, %345 : vector<16x16xf32>
    %347 = arith.addf %343, %346 : vector<16x16xf32>
    %c6_198 = arith.constant 6 : index
    %c5_199 = arith.constant 5 : index
    %348 = memref.load %arg6[%c6_198, %c5_199] : memref<8x6xf32, #tpu.memory_space<smem>>
    %349 = vector.broadcast %348 : f32 to vector<16x16xf32>
    %350 = arith.mulf %29, %349 : vector<16x16xf32>
    %351 = arith.addf %347, %350 : vector<16x16xf32>
    %c6_200 = arith.constant 6 : index
    %c0_201 = arith.constant 0 : index
    %352 = memref.load %arg8[%c6_200, %c0_201] : memref<8x4xf32, #tpu.memory_space<smem>>
    %353 = vector.broadcast %352 : f32 to vector<16x16xf32>
    %354 = arith.mulf %5, %353 : vector<16x16xf32>
    %355 = arith.addf %351, %354 : vector<16x16xf32>
    %c6_202 = arith.constant 6 : index
    %c1_203 = arith.constant 1 : index
    %356 = memref.load %arg8[%c6_202, %c1_203] : memref<8x4xf32, #tpu.memory_space<smem>>
    %357 = vector.broadcast %356 : f32 to vector<16x16xf32>
    %358 = arith.mulf %9, %357 : vector<16x16xf32>
    %359 = arith.addf %355, %358 : vector<16x16xf32>
    %c6_204 = arith.constant 6 : index
    %c2_205 = arith.constant 2 : index
    %360 = memref.load %arg8[%c6_204, %c2_205] : memref<8x4xf32, #tpu.memory_space<smem>>
    %361 = vector.broadcast %360 : f32 to vector<16x16xf32>
    %362 = arith.mulf %13, %361 : vector<16x16xf32>
    %363 = arith.addf %359, %362 : vector<16x16xf32>
    %c6_206 = arith.constant 6 : index
    %c3_207 = arith.constant 3 : index
    %364 = memref.load %arg8[%c6_206, %c3_207] : memref<8x4xf32, #tpu.memory_space<smem>>
    %365 = vector.broadcast %364 : f32 to vector<16x16xf32>
    %366 = arith.mulf %17, %365 : vector<16x16xf32>
    %367 = arith.addf %363, %366 : vector<16x16xf32>
    %c6_208 = arith.constant 6 : index
    %368 = memref.load %arg7[%c6_208] : memref<8xf32, #tpu.memory_space<smem>>
    %c6_209 = arith.constant 6 : index
    %369 = memref.load %arg9[%c6_209] : memref<8xf32, #tpu.memory_space<smem>>
    %370 = arith.addf %368, %369 : f32
    %371 = vector.broadcast %370 : f32 to vector<16x16xf32>
    %372 = arith.addf %367, %371 : vector<16x16xf32>
    %cst_210 = arith.constant 0.000000e+00 : f32
    %373 = vector.broadcast %cst_210 : f32 to vector<16x16xf32>
    %374 = arith.maximumf %372, %373 : vector<16x16xf32>
    %c6_211 = arith.constant 6 : index
    %375 = memref.load %arg10[%c6_211] : memref<8xf32, #tpu.memory_space<smem>>
    %376 = vector.broadcast %375 : f32 to vector<16x16xf32>
    %377 = arith.mulf %374, %376 : vector<16x16xf32>
    %378 = arith.addf %328, %377 : vector<16x16xf32>
    %c7 = arith.constant 7 : index
    %c0_212 = arith.constant 0 : index
    %379 = memref.load %arg6[%c7, %c0_212] : memref<8x6xf32, #tpu.memory_space<smem>>
    %380 = vector.broadcast %379 : f32 to vector<16x16xf32>
    %381 = arith.mulf %19, %380 : vector<16x16xf32>
    %c7_213 = arith.constant 7 : index
    %c1_214 = arith.constant 1 : index
    %382 = memref.load %arg6[%c7_213, %c1_214] : memref<8x6xf32, #tpu.memory_space<smem>>
    %383 = vector.broadcast %382 : f32 to vector<16x16xf32>
    %384 = arith.mulf %21, %383 : vector<16x16xf32>
    %385 = arith.addf %381, %384 : vector<16x16xf32>
    %c7_215 = arith.constant 7 : index
    %c2_216 = arith.constant 2 : index
    %386 = memref.load %arg6[%c7_215, %c2_216] : memref<8x6xf32, #tpu.memory_space<smem>>
    %387 = vector.broadcast %386 : f32 to vector<16x16xf32>
    %388 = arith.mulf %23, %387 : vector<16x16xf32>
    %389 = arith.addf %385, %388 : vector<16x16xf32>
    %c7_217 = arith.constant 7 : index
    %c3_218 = arith.constant 3 : index
    %390 = memref.load %arg6[%c7_217, %c3_218] : memref<8x6xf32, #tpu.memory_space<smem>>
    %391 = vector.broadcast %390 : f32 to vector<16x16xf32>
    %392 = arith.mulf %25, %391 : vector<16x16xf32>
    %393 = arith.addf %389, %392 : vector<16x16xf32>
    %c7_219 = arith.constant 7 : index
    %c4_220 = arith.constant 4 : index
    %394 = memref.load %arg6[%c7_219, %c4_220] : memref<8x6xf32, #tpu.memory_space<smem>>
    %395 = vector.broadcast %394 : f32 to vector<16x16xf32>
    %396 = arith.mulf %27, %395 : vector<16x16xf32>
    %397 = arith.addf %393, %396 : vector<16x16xf32>
    %c7_221 = arith.constant 7 : index
    %c5_222 = arith.constant 5 : index
    %398 = memref.load %arg6[%c7_221, %c5_222] : memref<8x6xf32, #tpu.memory_space<smem>>
    %399 = vector.broadcast %398 : f32 to vector<16x16xf32>
    %400 = arith.mulf %29, %399 : vector<16x16xf32>
    %401 = arith.addf %397, %400 : vector<16x16xf32>
    %c7_223 = arith.constant 7 : index
    %c0_224 = arith.constant 0 : index
    %402 = memref.load %arg8[%c7_223, %c0_224] : memref<8x4xf32, #tpu.memory_space<smem>>
    %403 = vector.broadcast %402 : f32 to vector<16x16xf32>
    %404 = arith.mulf %5, %403 : vector<16x16xf32>
    %405 = arith.addf %401, %404 : vector<16x16xf32>
    %c7_225 = arith.constant 7 : index
    %c1_226 = arith.constant 1 : index
    %406 = memref.load %arg8[%c7_225, %c1_226] : memref<8x4xf32, #tpu.memory_space<smem>>
    %407 = vector.broadcast %406 : f32 to vector<16x16xf32>
    %408 = arith.mulf %9, %407 : vector<16x16xf32>
    %409 = arith.addf %405, %408 : vector<16x16xf32>
    %c7_227 = arith.constant 7 : index
    %c2_228 = arith.constant 2 : index
    %410 = memref.load %arg8[%c7_227, %c2_228] : memref<8x4xf32, #tpu.memory_space<smem>>
    %411 = vector.broadcast %410 : f32 to vector<16x16xf32>
    %412 = arith.mulf %13, %411 : vector<16x16xf32>
    %413 = arith.addf %409, %412 : vector<16x16xf32>
    %c7_229 = arith.constant 7 : index
    %c3_230 = arith.constant 3 : index
    %414 = memref.load %arg8[%c7_229, %c3_230] : memref<8x4xf32, #tpu.memory_space<smem>>
    %415 = vector.broadcast %414 : f32 to vector<16x16xf32>
    %416 = arith.mulf %17, %415 : vector<16x16xf32>
    %417 = arith.addf %413, %416 : vector<16x16xf32>
    %c7_231 = arith.constant 7 : index
    %418 = memref.load %arg7[%c7_231] : memref<8xf32, #tpu.memory_space<smem>>
    %c7_232 = arith.constant 7 : index
    %419 = memref.load %arg9[%c7_232] : memref<8xf32, #tpu.memory_space<smem>>
    %420 = arith.addf %418, %419 : f32
    %421 = vector.broadcast %420 : f32 to vector<16x16xf32>
    %422 = arith.addf %417, %421 : vector<16x16xf32>
    %cst_233 = arith.constant 0.000000e+00 : f32
    %423 = vector.broadcast %cst_233 : f32 to vector<16x16xf32>
    %424 = arith.maximumf %422, %423 : vector<16x16xf32>
    %c7_234 = arith.constant 7 : index
    %425 = memref.load %arg10[%c7_234] : memref<8xf32, #tpu.memory_space<smem>>
    %426 = vector.broadcast %425 : f32 to vector<16x16xf32>
    %427 = arith.mulf %424, %426 : vector<16x16xf32>
    %428 = arith.addf %378, %427 : vector<16x16xf32>
    %c0_235 = arith.constant 0 : index
    %429 = memref.load %arg11[%c0_235] : memref<1xf32, #tpu.memory_space<smem>>
    %430 = vector.broadcast %429 : f32 to vector<16x16xf32>
    %431 = arith.addf %428, %430 : vector<16x16xf32>
    %432 = arith.negf %431 : vector<16x16xf32>
    %433 = math.exp %432 : vector<16x16xf32>
    %cst_236 = arith.constant 1.000000e+00 : f32
    %434 = vector.broadcast %cst_236 : f32 to vector<16x16xf32>
    %435 = arith.addf %434, %433 : vector<16x16xf32>
    %436 = arith.divf %434, %435 : vector<16x16xf32>
    %437 = arith.mulf %5, %436 : vector<16x16xf32>
    %c0_237 = arith.constant 0 : index
    %c0_238 = arith.constant 0 : index
    %c0_239 = arith.constant 0 : index
    %c0_240 = arith.constant 0 : index
    %438 = vector.load %arg12[%c0_237, %c0_238, %c0_239, %c0_240] : memref<2x4x16x16xf32, #tpu.memory_space<vmem>>, vector<1x1x16x16xf32>
    %439 = vector.shape_cast %438 : vector<1x1x16x16xf32> to vector<16x16xf32>
    %440 = vector.shape_cast %437 : vector<16x16xf32> to vector<1x1x16x16xf32>
    tpu.vector_store %arg12[%c0_237, %c0_238, %c0_239, %c0_240], %440 {strides = array<i32>} : memref<2x4x16x16xf32, #tpu.memory_space<vmem>>, vector<1x1x16x16xf32>,
    %441 = arith.mulf %9, %436 : vector<16x16xf32>
    %c0_241 = arith.constant 0 : index
    %c1_242 = arith.constant 1 : index
    %c0_243 = arith.constant 0 : index
    %c0_244 = arith.constant 0 : index
    %442 = vector.load %arg12[%c0_241, %c1_242, %c0_243, %c0_244] : memref<2x4x16x16xf32, #tpu.memory_space<vmem>>, vector<1x1x16x16xf32>
    %443 = vector.shape_cast %442 : vector<1x1x16x16xf32> to vector<16x16xf32>
    %444 = vector.shape_cast %441 : vector<16x16xf32> to vector<1x1x16x16xf32>
    tpu.vector_store %arg12[%c0_241, %c1_242, %c0_243, %c0_244], %444 {strides = array<i32>} : memref<2x4x16x16xf32, #tpu.memory_space<vmem>>, vector<1x1x16x16xf32>,
    %445 = arith.mulf %13, %436 : vector<16x16xf32>
    %c0_245 = arith.constant 0 : index
    %c2_246 = arith.constant 2 : index
    %c0_247 = arith.constant 0 : index
    %c0_248 = arith.constant 0 : index
    %446 = vector.load %arg12[%c0_245, %c2_246, %c0_247, %c0_248] : memref<2x4x16x16xf32, #tpu.memory_space<vmem>>, vector<1x1x16x16xf32>
    %447 = vector.shape_cast %446 : vector<1x1x16x16xf32> to vector<16x16xf32>
    %448 = vector.shape_cast %445 : vector<16x16xf32> to vector<1x1x16x16xf32>
    tpu.vector_store %arg12[%c0_245, %c2_246, %c0_247, %c0_248], %448 {strides = array<i32>} : memref<2x4x16x16xf32, #tpu.memory_space<vmem>>, vector<1x1x16x16xf32>,
    %449 = arith.mulf %17, %436 : vector<16x16xf32>
    %c0_249 = arith.constant 0 : index
    %c3_250 = arith.constant 3 : index
    %c0_251 = arith.constant 0 : index
    %c0_252 = arith.constant 0 : index
    %450 = vector.load %arg12[%c0_249, %c3_250, %c0_251, %c0_252] : memref<2x4x16x16xf32, #tpu.memory_space<vmem>>, vector<1x1x16x16xf32>
    %451 = vector.shape_cast %450 : vector<1x1x16x16xf32> to vector<16x16xf32>
    %452 = vector.shape_cast %449 : vector<16x16xf32> to vector<1x1x16x16xf32>
    tpu.vector_store %arg12[%c0_249, %c3_250, %c0_251, %c0_252], %452 {strides = array<i32>} : memref<2x4x16x16xf32, #tpu.memory_space<vmem>>, vector<1x1x16x16xf32>,
    %c1_253 = arith.constant 1 : index
    %c0_254 = arith.constant 0 : index
    %c0_255 = arith.constant 0 : index
    %c0_256 = arith.constant 0 : index
    %453 = vector.load %arg3[%c1_253, %c0_254, %c0_255, %c0_256] : memref<2x4x8x8xf32, #tpu.memory_space<vmem>>, vector<1x1x8x8xf32>
    %454 = vector.shape_cast %453 : vector<1x1x8x8xf32> to vector<8x8xf32>
    %cst_257 = arith.constant dense<0.000000e+00> : vector<16x8xf32>
    %455 = tpu.matmul %0, %454, %cst_257 {dimension_numbers = #tpu.dot_dimension_numbers<[1], [0], [0], [1], [0, 0, 1, 1], [], []>, precision = #tpu.contract_precision<fp32>} : vector<16x8xf32>, vector<8x8xf32>, vector<16x8xf32> -> vector<16x8xf32>
    %cst_258 = arith.constant dense<0.000000e+00> : vector<16x16xf32>
    %456 = tpu.matmul %455, %1, %cst_258 {dimension_numbers = #tpu.dot_dimension_numbers<[1], [0], [0], [1], [0, 0, 1, 1], [], []>, precision = #tpu.contract_precision<fp32>} : vector<16x8xf32>, vector<8x16xf32>, vector<16x16xf32> -> vector<16x16xf32>
    %c1_259 = arith.constant 1 : index
    %c1_260 = arith.constant 1 : index
    %c0_261 = arith.constant 0 : index
    %c0_262 = arith.constant 0 : index
    %457 = vector.load %arg3[%c1_259, %c1_260, %c0_261, %c0_262] : memref<2x4x8x8xf32, #tpu.memory_space<vmem>>, vector<1x1x8x8xf32>
    %458 = vector.shape_cast %457 : vector<1x1x8x8xf32> to vector<8x8xf32>
    %cst_263 = arith.constant dense<0.000000e+00> : vector<16x8xf32>
    %459 = tpu.matmul %0, %458, %cst_263 {dimension_numbers = #tpu.dot_dimension_numbers<[1], [0], [0], [1], [0, 0, 1, 1], [], []>, precision = #tpu.contract_precision<fp32>} : vector<16x8xf32>, vector<8x8xf32>, vector<16x8xf32> -> vector<16x8xf32>
    %cst_264 = arith.constant dense<0.000000e+00> : vector<16x16xf32>
    %460 = tpu.matmul %459, %1, %cst_264 {dimension_numbers = #tpu.dot_dimension_numbers<[1], [0], [0], [1], [0, 0, 1, 1], [], []>, precision = #tpu.contract_precision<fp32>} : vector<16x8xf32>, vector<8x16xf32>, vector<16x16xf32> -> vector<16x16xf32>
    %c1_265 = arith.constant 1 : index
    %c2_266 = arith.constant 2 : index
    %c0_267 = arith.constant 0 : index
    %c0_268 = arith.constant 0 : index
    %461 = vector.load %arg3[%c1_265, %c2_266, %c0_267, %c0_268] : memref<2x4x8x8xf32, #tpu.memory_space<vmem>>, vector<1x1x8x8xf32>
    %462 = vector.shape_cast %461 : vector<1x1x8x8xf32> to vector<8x8xf32>
    %cst_269 = arith.constant dense<0.000000e+00> : vector<16x8xf32>
    %463 = tpu.matmul %0, %462, %cst_269 {dimension_numbers = #tpu.dot_dimension_numbers<[1], [0], [0], [1], [0, 0, 1, 1], [], []>, precision = #tpu.contract_precision<fp32>} : vector<16x8xf32>, vector<8x8xf32>, vector<16x8xf32> -> vector<16x8xf32>
    %cst_270 = arith.constant dense<0.000000e+00> : vector<16x16xf32>
    %464 = tpu.matmul %463, %1, %cst_270 {dimension_numbers = #tpu.dot_dimension_numbers<[1], [0], [0], [1], [0, 0, 1, 1], [], []>, precision = #tpu.contract_precision<fp32>} : vector<16x8xf32>, vector<8x16xf32>, vector<16x16xf32> -> vector<16x16xf32>
    %c1_271 = arith.constant 1 : index
    %c3_272 = arith.constant 3 : index
    %c0_273 = arith.constant 0 : index
    %c0_274 = arith.constant 0 : index
    %465 = vector.load %arg3[%c1_271, %c3_272, %c0_273, %c0_274] : memref<2x4x8x8xf32, #tpu.memory_space<vmem>>, vector<1x1x8x8xf32>
    %466 = vector.shape_cast %465 : vector<1x1x8x8xf32> to vector<8x8xf32>
    %cst_275 = arith.constant dense<0.000000e+00> : vector<16x8xf32>
    %467 = tpu.matmul %0, %466, %cst_275 {dimension_numbers = #tpu.dot_dimension_numbers<[1], [0], [0], [1], [0, 0, 1, 1], [], []>, precision = #tpu.contract_precision<fp32>} : vector<16x8xf32>, vector<8x8xf32>, vector<16x8xf32> -> vector<16x8xf32>
    %cst_276 = arith.constant dense<0.000000e+00> : vector<16x16xf32>
    %468 = tpu.matmul %467, %1, %cst_276 {dimension_numbers = #tpu.dot_dimension_numbers<[1], [0], [0], [1], [0, 0, 1, 1], [], []>, precision = #tpu.contract_precision<fp32>} : vector<16x8xf32>, vector<8x16xf32>, vector<16x16xf32> -> vector<16x16xf32>
    %c1_277 = arith.constant 1 : index
    %c0_278 = arith.constant 0 : index
    %c0_279 = arith.constant 0 : index
    %c0_280 = arith.constant 0 : index
    %469 = vector.load %arg2[%c1_277, %c0_278, %c0_279, %c0_280] : memref<2x6x16x16xf32, #tpu.memory_space<vmem>>, vector<1x1x16x16xf32>
    %470 = vector.shape_cast %469 : vector<1x1x16x16xf32> to vector<16x16xf32>
    %c1_281 = arith.constant 1 : index
    %c1_282 = arith.constant 1 : index
    %c0_283 = arith.constant 0 : index
    %c0_284 = arith.constant 0 : index
    %471 = vector.load %arg2[%c1_281, %c1_282, %c0_283, %c0_284] : memref<2x6x16x16xf32, #tpu.memory_space<vmem>>, vector<1x1x16x16xf32>
    %472 = vector.shape_cast %471 : vector<1x1x16x16xf32> to vector<16x16xf32>
    %c1_285 = arith.constant 1 : index
    %c2_286 = arith.constant 2 : index
    %c0_287 = arith.constant 0 : index
    %c0_288 = arith.constant 0 : index
    %473 = vector.load %arg2[%c1_285, %c2_286, %c0_287, %c0_288] : memref<2x6x16x16xf32, #tpu.memory_space<vmem>>, vector<1x1x16x16xf32>
    %474 = vector.shape_cast %473 : vector<1x1x16x16xf32> to vector<16x16xf32>
    %c1_289 = arith.constant 1 : index
    %c3_290 = arith.constant 3 : index
    %c0_291 = arith.constant 0 : index
    %c0_292 = arith.constant 0 : index
    %475 = vector.load %arg2[%c1_289, %c3_290, %c0_291, %c0_292] : memref<2x6x16x16xf32, #tpu.memory_space<vmem>>, vector<1x1x16x16xf32>
    %476 = vector.shape_cast %475 : vector<1x1x16x16xf32> to vector<16x16xf32>
    %c1_293 = arith.constant 1 : index
    %c4_294 = arith.constant 4 : index
    %c0_295 = arith.constant 0 : index
    %c0_296 = arith.constant 0 : index
    %477 = vector.load %arg2[%c1_293, %c4_294, %c0_295, %c0_296] : memref<2x6x16x16xf32, #tpu.memory_space<vmem>>, vector<1x1x16x16xf32>
    %478 = vector.shape_cast %477 : vector<1x1x16x16xf32> to vector<16x16xf32>
    %c1_297 = arith.constant 1 : index
    %c5_298 = arith.constant 5 : index
    %c0_299 = arith.constant 0 : index
    %c0_300 = arith.constant 0 : index
    %479 = vector.load %arg2[%c1_297, %c5_298, %c0_299, %c0_300] : memref<2x6x16x16xf32, #tpu.memory_space<vmem>>, vector<1x1x16x16xf32>
    %480 = vector.shape_cast %479 : vector<1x1x16x16xf32> to vector<16x16xf32>
    %c0_301 = arith.constant 0 : index
    %c0_302 = arith.constant 0 : index
    %481 = memref.load %arg6[%c0_301, %c0_302] : memref<8x6xf32, #tpu.memory_space<smem>>
    %482 = vector.broadcast %481 : f32 to vector<16x16xf32>
    %483 = arith.mulf %470, %482 : vector<16x16xf32>
    %c0_303 = arith.constant 0 : index
    %c1_304 = arith.constant 1 : index
    %484 = memref.load %arg6[%c0_303, %c1_304] : memref<8x6xf32, #tpu.memory_space<smem>>
    %485 = vector.broadcast %484 : f32 to vector<16x16xf32>
    %486 = arith.mulf %472, %485 : vector<16x16xf32>
    %487 = arith.addf %483, %486 : vector<16x16xf32>
    %c0_305 = arith.constant 0 : index
    %c2_306 = arith.constant 2 : index
    %488 = memref.load %arg6[%c0_305, %c2_306] : memref<8x6xf32, #tpu.memory_space<smem>>
    %489 = vector.broadcast %488 : f32 to vector<16x16xf32>
    %490 = arith.mulf %474, %489 : vector<16x16xf32>
    %491 = arith.addf %487, %490 : vector<16x16xf32>
    %c0_307 = arith.constant 0 : index
    %c3_308 = arith.constant 3 : index
    %492 = memref.load %arg6[%c0_307, %c3_308] : memref<8x6xf32, #tpu.memory_space<smem>>
    %493 = vector.broadcast %492 : f32 to vector<16x16xf32>
    %494 = arith.mulf %476, %493 : vector<16x16xf32>
    %495 = arith.addf %491, %494 : vector<16x16xf32>
    %c0_309 = arith.constant 0 : index
    %c4_310 = arith.constant 4 : index
    %496 = memref.load %arg6[%c0_309, %c4_310] : memref<8x6xf32, #tpu.memory_space<smem>>
    %497 = vector.broadcast %496 : f32 to vector<16x16xf32>
    %498 = arith.mulf %478, %497 : vector<16x16xf32>
    %499 = arith.addf %495, %498 : vector<16x16xf32>
    %c0_311 = arith.constant 0 : index
    %c5_312 = arith.constant 5 : index
    %500 = memref.load %arg6[%c0_311, %c5_312] : memref<8x6xf32, #tpu.memory_space<smem>>
    %501 = vector.broadcast %500 : f32 to vector<16x16xf32>
    %502 = arith.mulf %480, %501 : vector<16x16xf32>
    %503 = arith.addf %499, %502 : vector<16x16xf32>
    %c0_313 = arith.constant 0 : index
    %c0_314 = arith.constant 0 : index
    %504 = memref.load %arg8[%c0_313, %c0_314] : memref<8x4xf32, #tpu.memory_space<smem>>
    %505 = vector.broadcast %504 : f32 to vector<16x16xf32>
    %506 = arith.mulf %456, %505 : vector<16x16xf32>
    %507 = arith.addf %503, %506 : vector<16x16xf32>
    %c0_315 = arith.constant 0 : index
    %c1_316 = arith.constant 1 : index
    %508 = memref.load %arg8[%c0_315, %c1_316] : memref<8x4xf32, #tpu.memory_space<smem>>
    %509 = vector.broadcast %508 : f32 to vector<16x16xf32>
    %510 = arith.mulf %460, %509 : vector<16x16xf32>
    %511 = arith.addf %507, %510 : vector<16x16xf32>
    %c0_317 = arith.constant 0 : index
    %c2_318 = arith.constant 2 : index
    %512 = memref.load %arg8[%c0_317, %c2_318] : memref<8x4xf32, #tpu.memory_space<smem>>
    %513 = vector.broadcast %512 : f32 to vector<16x16xf32>
    %514 = arith.mulf %464, %513 : vector<16x16xf32>
    %515 = arith.addf %511, %514 : vector<16x16xf32>
    %c0_319 = arith.constant 0 : index
    %c3_320 = arith.constant 3 : index
    %516 = memref.load %arg8[%c0_319, %c3_320] : memref<8x4xf32, #tpu.memory_space<smem>>
    %517 = vector.broadcast %516 : f32 to vector<16x16xf32>
    %518 = arith.mulf %468, %517 : vector<16x16xf32>
    %519 = arith.addf %515, %518 : vector<16x16xf32>
    %c0_321 = arith.constant 0 : index
    %520 = memref.load %arg7[%c0_321] : memref<8xf32, #tpu.memory_space<smem>>
    %c0_322 = arith.constant 0 : index
    %521 = memref.load %arg9[%c0_322] : memref<8xf32, #tpu.memory_space<smem>>
    %522 = arith.addf %520, %521 : f32
    %523 = vector.broadcast %522 : f32 to vector<16x16xf32>
    %524 = arith.addf %519, %523 : vector<16x16xf32>
    %cst_323 = arith.constant 0.000000e+00 : f32
    %525 = vector.broadcast %cst_323 : f32 to vector<16x16xf32>
    %526 = arith.maximumf %524, %525 : vector<16x16xf32>
    %c0_324 = arith.constant 0 : index
    %527 = memref.load %arg10[%c0_324] : memref<8xf32, #tpu.memory_space<smem>>
    %528 = vector.broadcast %527 : f32 to vector<16x16xf32>
    %529 = arith.mulf %526, %528 : vector<16x16xf32>
    %c1_325 = arith.constant 1 : index
    %c0_326 = arith.constant 0 : index
    %530 = memref.load %arg6[%c1_325, %c0_326] : memref<8x6xf32, #tpu.memory_space<smem>>
    %531 = vector.broadcast %530 : f32 to vector<16x16xf32>
    %532 = arith.mulf %470, %531 : vector<16x16xf32>
    %c1_327 = arith.constant 1 : index
    %c1_328 = arith.constant 1 : index
    %533 = memref.load %arg6[%c1_327, %c1_328] : memref<8x6xf32, #tpu.memory_space<smem>>
    %534 = vector.broadcast %533 : f32 to vector<16x16xf32>
    %535 = arith.mulf %472, %534 : vector<16x16xf32>
    %536 = arith.addf %532, %535 : vector<16x16xf32>
    %c1_329 = arith.constant 1 : index
    %c2_330 = arith.constant 2 : index
    %537 = memref.load %arg6[%c1_329, %c2_330] : memref<8x6xf32, #tpu.memory_space<smem>>
    %538 = vector.broadcast %537 : f32 to vector<16x16xf32>
    %539 = arith.mulf %474, %538 : vector<16x16xf32>
    %540 = arith.addf %536, %539 : vector<16x16xf32>
    %c1_331 = arith.constant 1 : index
    %c3_332 = arith.constant 3 : index
    %541 = memref.load %arg6[%c1_331, %c3_332] : memref<8x6xf32, #tpu.memory_space<smem>>
    %542 = vector.broadcast %541 : f32 to vector<16x16xf32>
    %543 = arith.mulf %476, %542 : vector<16x16xf32>
    %544 = arith.addf %540, %543 : vector<16x16xf32>
    %c1_333 = arith.constant 1 : index
    %c4_334 = arith.constant 4 : index
    %545 = memref.load %arg6[%c1_333, %c4_334] : memref<8x6xf32, #tpu.memory_space<smem>>
    %546 = vector.broadcast %545 : f32 to vector<16x16xf32>
    %547 = arith.mulf %478, %546 : vector<16x16xf32>
    %548 = arith.addf %544, %547 : vector<16x16xf32>
    %c1_335 = arith.constant 1 : index
    %c5_336 = arith.constant 5 : index
    %549 = memref.load %arg6[%c1_335, %c5_336] : memref<8x6xf32, #tpu.memory_space<smem>>
    %550 = vector.broadcast %549 : f32 to vector<16x16xf32>
    %551 = arith.mulf %480, %550 : vector<16x16xf32>
    %552 = arith.addf %548, %551 : vector<16x16xf32>
    %c1_337 = arith.constant 1 : index
    %c0_338 = arith.constant 0 : index
    %553 = memref.load %arg8[%c1_337, %c0_338] : memref<8x4xf32, #tpu.memory_space<smem>>
    %554 = vector.broadcast %553 : f32 to vector<16x16xf32>
    %555 = arith.mulf %456, %554 : vector<16x16xf32>
    %556 = arith.addf %552, %555 : vector<16x16xf32>
    %c1_339 = arith.constant 1 : index
    %c1_340 = arith.constant 1 : index
    %557 = memref.load %arg8[%c1_339, %c1_340] : memref<8x4xf32, #tpu.memory_space<smem>>
    %558 = vector.broadcast %557 : f32 to vector<16x16xf32>
    %559 = arith.mulf %460, %558 : vector<16x16xf32>
    %560 = arith.addf %556, %559 : vector<16x16xf32>
    %c1_341 = arith.constant 1 : index
    %c2_342 = arith.constant 2 : index
    %561 = memref.load %arg8[%c1_341, %c2_342] : memref<8x4xf32, #tpu.memory_space<smem>>
    %562 = vector.broadcast %561 : f32 to vector<16x16xf32>
    %563 = arith.mulf %464, %562 : vector<16x16xf32>
    %564 = arith.addf %560, %563 : vector<16x16xf32>
    %c1_343 = arith.constant 1 : index
    %c3_344 = arith.constant 3 : index
    %565 = memref.load %arg8[%c1_343, %c3_344] : memref<8x4xf32, #tpu.memory_space<smem>>
    %566 = vector.broadcast %565 : f32 to vector<16x16xf32>
    %567 = arith.mulf %468, %566 : vector<16x16xf32>
    %568 = arith.addf %564, %567 : vector<16x16xf32>
    %c1_345 = arith.constant 1 : index
    %569 = memref.load %arg7[%c1_345] : memref<8xf32, #tpu.memory_space<smem>>
    %c1_346 = arith.constant 1 : index
    %570 = memref.load %arg9[%c1_346] : memref<8xf32, #tpu.memory_space<smem>>
    %571 = arith.addf %569, %570 : f32
    %572 = vector.broadcast %571 : f32 to vector<16x16xf32>
    %573 = arith.addf %568, %572 : vector<16x16xf32>
    %cst_347 = arith.constant 0.000000e+00 : f32
    %574 = vector.broadcast %cst_347 : f32 to vector<16x16xf32>
    %575 = arith.maximumf %573, %574 : vector<16x16xf32>
    %c1_348 = arith.constant 1 : index
    %576 = memref.load %arg10[%c1_348] : memref<8xf32, #tpu.memory_space<smem>>
    %577 = vector.broadcast %576 : f32 to vector<16x16xf32>
    %578 = arith.mulf %575, %577 : vector<16x16xf32>
    %579 = arith.addf %529, %578 : vector<16x16xf32>
    %c2_349 = arith.constant 2 : index
    %c0_350 = arith.constant 0 : index
    %580 = memref.load %arg6[%c2_349, %c0_350] : memref<8x6xf32, #tpu.memory_space<smem>>
    %581 = vector.broadcast %580 : f32 to vector<16x16xf32>
    %582 = arith.mulf %470, %581 : vector<16x16xf32>
    %c2_351 = arith.constant 2 : index
    %c1_352 = arith.constant 1 : index
    %583 = memref.load %arg6[%c2_351, %c1_352] : memref<8x6xf32, #tpu.memory_space<smem>>
    %584 = vector.broadcast %583 : f32 to vector<16x16xf32>
    %585 = arith.mulf %472, %584 : vector<16x16xf32>
    %586 = arith.addf %582, %585 : vector<16x16xf32>
    %c2_353 = arith.constant 2 : index
    %c2_354 = arith.constant 2 : index
    %587 = memref.load %arg6[%c2_353, %c2_354] : memref<8x6xf32, #tpu.memory_space<smem>>
    %588 = vector.broadcast %587 : f32 to vector<16x16xf32>
    %589 = arith.mulf %474, %588 : vector<16x16xf32>
    %590 = arith.addf %586, %589 : vector<16x16xf32>
    %c2_355 = arith.constant 2 : index
    %c3_356 = arith.constant 3 : index
    %591 = memref.load %arg6[%c2_355, %c3_356] : memref<8x6xf32, #tpu.memory_space<smem>>
    %592 = vector.broadcast %591 : f32 to vector<16x16xf32>
    %593 = arith.mulf %476, %592 : vector<16x16xf32>
    %594 = arith.addf %590, %593 : vector<16x16xf32>
    %c2_357 = arith.constant 2 : index
    %c4_358 = arith.constant 4 : index
    %595 = memref.load %arg6[%c2_357, %c4_358] : memref<8x6xf32, #tpu.memory_space<smem>>
    %596 = vector.broadcast %595 : f32 to vector<16x16xf32>
    %597 = arith.mulf %478, %596 : vector<16x16xf32>
    %598 = arith.addf %594, %597 : vector<16x16xf32>
    %c2_359 = arith.constant 2 : index
    %c5_360 = arith.constant 5 : index
    %599 = memref.load %arg6[%c2_359, %c5_360] : memref<8x6xf32, #tpu.memory_space<smem>>
    %600 = vector.broadcast %599 : f32 to vector<16x16xf32>
    %601 = arith.mulf %480, %600 : vector<16x16xf32>
    %602 = arith.addf %598, %601 : vector<16x16xf32>
    %c2_361 = arith.constant 2 : index
    %c0_362 = arith.constant 0 : index
    %603 = memref.load %arg8[%c2_361, %c0_362] : memref<8x4xf32, #tpu.memory_space<smem>>
    %604 = vector.broadcast %603 : f32 to vector<16x16xf32>
    %605 = arith.mulf %456, %604 : vector<16x16xf32>
    %606 = arith.addf %602, %605 : vector<16x16xf32>
    %c2_363 = arith.constant 2 : index
    %c1_364 = arith.constant 1 : index
    %607 = memref.load %arg8[%c2_363, %c1_364] : memref<8x4xf32, #tpu.memory_space<smem>>
    %608 = vector.broadcast %607 : f32 to vector<16x16xf32>
    %609 = arith.mulf %460, %608 : vector<16x16xf32>
    %610 = arith.addf %606, %609 : vector<16x16xf32>
    %c2_365 = arith.constant 2 : index
    %c2_366 = arith.constant 2 : index
    %611 = memref.load %arg8[%c2_365, %c2_366] : memref<8x4xf32, #tpu.memory_space<smem>>
    %612 = vector.broadcast %611 : f32 to vector<16x16xf32>
    %613 = arith.mulf %464, %612 : vector<16x16xf32>
    %614 = arith.addf %610, %613 : vector<16x16xf32>
    %c2_367 = arith.constant 2 : index
    %c3_368 = arith.constant 3 : index
    %615 = memref.load %arg8[%c2_367, %c3_368] : memref<8x4xf32, #tpu.memory_space<smem>>
    %616 = vector.broadcast %615 : f32 to vector<16x16xf32>
    %617 = arith.mulf %468, %616 : vector<16x16xf32>
    %618 = arith.addf %614, %617 : vector<16x16xf32>
    %c2_369 = arith.constant 2 : index
    %619 = memref.load %arg7[%c2_369] : memref<8xf32, #tpu.memory_space<smem>>
    %c2_370 = arith.constant 2 : index
    %620 = memref.load %arg9[%c2_370] : memref<8xf32, #tpu.memory_space<smem>>
    %621 = arith.addf %619, %620 : f32
    %622 = vector.broadcast %621 : f32 to vector<16x16xf32>
    %623 = arith.addf %618, %622 : vector<16x16xf32>
    %cst_371 = arith.constant 0.000000e+00 : f32
    %624 = vector.broadcast %cst_371 : f32 to vector<16x16xf32>
    %625 = arith.maximumf %623, %624 : vector<16x16xf32>
    %c2_372 = arith.constant 2 : index
    %626 = memref.load %arg10[%c2_372] : memref<8xf32, #tpu.memory_space<smem>>
    %627 = vector.broadcast %626 : f32 to vector<16x16xf32>
    %628 = arith.mulf %625, %627 : vector<16x16xf32>
    %629 = arith.addf %579, %628 : vector<16x16xf32>
    %c3_373 = arith.constant 3 : index
    %c0_374 = arith.constant 0 : index
    %630 = memref.load %arg6[%c3_373, %c0_374] : memref<8x6xf32, #tpu.memory_space<smem>>
    %631 = vector.broadcast %630 : f32 to vector<16x16xf32>
    %632 = arith.mulf %470, %631 : vector<16x16xf32>
    %c3_375 = arith.constant 3 : index
    %c1_376 = arith.constant 1 : index
    %633 = memref.load %arg6[%c3_375, %c1_376] : memref<8x6xf32, #tpu.memory_space<smem>>
    %634 = vector.broadcast %633 : f32 to vector<16x16xf32>
    %635 = arith.mulf %472, %634 : vector<16x16xf32>
    %636 = arith.addf %632, %635 : vector<16x16xf32>
    %c3_377 = arith.constant 3 : index
    %c2_378 = arith.constant 2 : index
    %637 = memref.load %arg6[%c3_377, %c2_378] : memref<8x6xf32, #tpu.memory_space<smem>>
    %638 = vector.broadcast %637 : f32 to vector<16x16xf32>
    %639 = arith.mulf %474, %638 : vector<16x16xf32>
    %640 = arith.addf %636, %639 : vector<16x16xf32>
    %c3_379 = arith.constant 3 : index
    %c3_380 = arith.constant 3 : index
    %641 = memref.load %arg6[%c3_379, %c3_380] : memref<8x6xf32, #tpu.memory_space<smem>>
    %642 = vector.broadcast %641 : f32 to vector<16x16xf32>
    %643 = arith.mulf %476, %642 : vector<16x16xf32>
    %644 = arith.addf %640, %643 : vector<16x16xf32>
    %c3_381 = arith.constant 3 : index
    %c4_382 = arith.constant 4 : index
    %645 = memref.load %arg6[%c3_381, %c4_382] : memref<8x6xf32, #tpu.memory_space<smem>>
    %646 = vector.broadcast %645 : f32 to vector<16x16xf32>
    %647 = arith.mulf %478, %646 : vector<16x16xf32>
    %648 = arith.addf %644, %647 : vector<16x16xf32>
    %c3_383 = arith.constant 3 : index
    %c5_384 = arith.constant 5 : index
    %649 = memref.load %arg6[%c3_383, %c5_384] : memref<8x6xf32, #tpu.memory_space<smem>>
    %650 = vector.broadcast %649 : f32 to vector<16x16xf32>
    %651 = arith.mulf %480, %650 : vector<16x16xf32>
    %652 = arith.addf %648, %651 : vector<16x16xf32>
    %c3_385 = arith.constant 3 : index
    %c0_386 = arith.constant 0 : index
    %653 = memref.load %arg8[%c3_385, %c0_386] : memref<8x4xf32, #tpu.memory_space<smem>>
    %654 = vector.broadcast %653 : f32 to vector<16x16xf32>
    %655 = arith.mulf %456, %654 : vector<16x16xf32>
    %656 = arith.addf %652, %655 : vector<16x16xf32>
    %c3_387 = arith.constant 3 : index
    %c1_388 = arith.constant 1 : index
    %657 = memref.load %arg8[%c3_387, %c1_388] : memref<8x4xf32, #tpu.memory_space<smem>>
    %658 = vector.broadcast %657 : f32 to vector<16x16xf32>
    %659 = arith.mulf %460, %658 : vector<16x16xf32>
    %660 = arith.addf %656, %659 : vector<16x16xf32>
    %c3_389 = arith.constant 3 : index
    %c2_390 = arith.constant 2 : index
    %661 = memref.load %arg8[%c3_389, %c2_390] : memref<8x4xf32, #tpu.memory_space<smem>>
    %662 = vector.broadcast %661 : f32 to vector<16x16xf32>
    %663 = arith.mulf %464, %662 : vector<16x16xf32>
    %664 = arith.addf %660, %663 : vector<16x16xf32>
    %c3_391 = arith.constant 3 : index
    %c3_392 = arith.constant 3 : index
    %665 = memref.load %arg8[%c3_391, %c3_392] : memref<8x4xf32, #tpu.memory_space<smem>>
    %666 = vector.broadcast %665 : f32 to vector<16x16xf32>
    %667 = arith.mulf %468, %666 : vector<16x16xf32>
    %668 = arith.addf %664, %667 : vector<16x16xf32>
    %c3_393 = arith.constant 3 : index
    %669 = memref.load %arg7[%c3_393] : memref<8xf32, #tpu.memory_space<smem>>
    %c3_394 = arith.constant 3 : index
    %670 = memref.load %arg9[%c3_394] : memref<8xf32, #tpu.memory_space<smem>>
    %671 = arith.addf %669, %670 : f32
    %672 = vector.broadcast %671 : f32 to vector<16x16xf32>
    %673 = arith.addf %668, %672 : vector<16x16xf32>
    %cst_395 = arith.constant 0.000000e+00 : f32
    %674 = vector.broadcast %cst_395 : f32 to vector<16x16xf32>
    %675 = arith.maximumf %673, %674 : vector<16x16xf32>
    %c3_396 = arith.constant 3 : index
    %676 = memref.load %arg10[%c3_396] : memref<8xf32, #tpu.memory_space<smem>>
    %677 = vector.broadcast %676 : f32 to vector<16x16xf32>
    %678 = arith.mulf %675, %677 : vector<16x16xf32>
    %679 = arith.addf %629, %678 : vector<16x16xf32>
    %c4_397 = arith.constant 4 : index
    %c0_398 = arith.constant 0 : index
    %680 = memref.load %arg6[%c4_397, %c0_398] : memref<8x6xf32, #tpu.memory_space<smem>>
    %681 = vector.broadcast %680 : f32 to vector<16x16xf32>
    %682 = arith.mulf %470, %681 : vector<16x16xf32>
    %c4_399 = arith.constant 4 : index
    %c1_400 = arith.constant 1 : index
    %683 = memref.load %arg6[%c4_399, %c1_400] : memref<8x6xf32, #tpu.memory_space<smem>>
    %684 = vector.broadcast %683 : f32 to vector<16x16xf32>
    %685 = arith.mulf %472, %684 : vector<16x16xf32>
    %686 = arith.addf %682, %685 : vector<16x16xf32>
    %c4_401 = arith.constant 4 : index
    %c2_402 = arith.constant 2 : index
    %687 = memref.load %arg6[%c4_401, %c2_402] : memref<8x6xf32, #tpu.memory_space<smem>>
    %688 = vector.broadcast %687 : f32 to vector<16x16xf32>
    %689 = arith.mulf %474, %688 : vector<16x16xf32>
    %690 = arith.addf %686, %689 : vector<16x16xf32>
    %c4_403 = arith.constant 4 : index
    %c3_404 = arith.constant 3 : index
    %691 = memref.load %arg6[%c4_403, %c3_404] : memref<8x6xf32, #tpu.memory_space<smem>>
    %692 = vector.broadcast %691 : f32 to vector<16x16xf32>
    %693 = arith.mulf %476, %692 : vector<16x16xf32>
    %694 = arith.addf %690, %693 : vector<16x16xf32>
    %c4_405 = arith.constant 4 : index
    %c4_406 = arith.constant 4 : index
    %695 = memref.load %arg6[%c4_405, %c4_406] : memref<8x6xf32, #tpu.memory_space<smem>>
    %696 = vector.broadcast %695 : f32 to vector<16x16xf32>
    %697 = arith.mulf %478, %696 : vector<16x16xf32>
    %698 = arith.addf %694, %697 : vector<16x16xf32>
    %c4_407 = arith.constant 4 : index
    %c5_408 = arith.constant 5 : index
    %699 = memref.load %arg6[%c4_407, %c5_408] : memref<8x6xf32, #tpu.memory_space<smem>>
    %700 = vector.broadcast %699 : f32 to vector<16x16xf32>
    %701 = arith.mulf %480, %700 : vector<16x16xf32>
    %702 = arith.addf %698, %701 : vector<16x16xf32>
    %c4_409 = arith.constant 4 : index
    %c0_410 = arith.constant 0 : index
    %703 = memref.load %arg8[%c4_409, %c0_410] : memref<8x4xf32, #tpu.memory_space<smem>>
    %704 = vector.broadcast %703 : f32 to vector<16x16xf32>
    %705 = arith.mulf %456, %704 : vector<16x16xf32>
    %706 = arith.addf %702, %705 : vector<16x16xf32>
    %c4_411 = arith.constant 4 : index
    %c1_412 = arith.constant 1 : index
    %707 = memref.load %arg8[%c4_411, %c1_412] : memref<8x4xf32, #tpu.memory_space<smem>>
    %708 = vector.broadcast %707 : f32 to vector<16x16xf32>
    %709 = arith.mulf %460, %708 : vector<16x16xf32>
    %710 = arith.addf %706, %709 : vector<16x16xf32>
    %c4_413 = arith.constant 4 : index
    %c2_414 = arith.constant 2 : index
    %711 = memref.load %arg8[%c4_413, %c2_414] : memref<8x4xf32, #tpu.memory_space<smem>>
    %712 = vector.broadcast %711 : f32 to vector<16x16xf32>
    %713 = arith.mulf %464, %712 : vector<16x16xf32>
    %714 = arith.addf %710, %713 : vector<16x16xf32>
    %c4_415 = arith.constant 4 : index
    %c3_416 = arith.constant 3 : index
    %715 = memref.load %arg8[%c4_415, %c3_416] : memref<8x4xf32, #tpu.memory_space<smem>>
    %716 = vector.broadcast %715 : f32 to vector<16x16xf32>
    %717 = arith.mulf %468, %716 : vector<16x16xf32>
    %718 = arith.addf %714, %717 : vector<16x16xf32>
    %c4_417 = arith.constant 4 : index
    %719 = memref.load %arg7[%c4_417] : memref<8xf32, #tpu.memory_space<smem>>
    %c4_418 = arith.constant 4 : index
    %720 = memref.load %arg9[%c4_418] : memref<8xf32, #tpu.memory_space<smem>>
    %721 = arith.addf %719, %720 : f32
    %722 = vector.broadcast %721 : f32 to vector<16x16xf32>
    %723 = arith.addf %718, %722 : vector<16x16xf32>
    %cst_419 = arith.constant 0.000000e+00 : f32
    %724 = vector.broadcast %cst_419 : f32 to vector<16x16xf32>
    %725 = arith.maximumf %723, %724 : vector<16x16xf32>
    %c4_420 = arith.constant 4 : index
    %726 = memref.load %arg10[%c4_420] : memref<8xf32, #tpu.memory_space<smem>>
    %727 = vector.broadcast %726 : f32 to vector<16x16xf32>
    %728 = arith.mulf %725, %727 : vector<16x16xf32>
    %729 = arith.addf %679, %728 : vector<16x16xf32>
    %c5_421 = arith.constant 5 : index
    %c0_422 = arith.constant 0 : index
    %730 = memref.load %arg6[%c5_421, %c0_422] : memref<8x6xf32, #tpu.memory_space<smem>>
    %731 = vector.broadcast %730 : f32 to vector<16x16xf32>
    %732 = arith.mulf %470, %731 : vector<16x16xf32>
    %c5_423 = arith.constant 5 : index
    %c1_424 = arith.constant 1 : index
    %733 = memref.load %arg6[%c5_423, %c1_424] : memref<8x6xf32, #tpu.memory_space<smem>>
    %734 = vector.broadcast %733 : f32 to vector<16x16xf32>
    %735 = arith.mulf %472, %734 : vector<16x16xf32>
    %736 = arith.addf %732, %735 : vector<16x16xf32>
    %c5_425 = arith.constant 5 : index
    %c2_426 = arith.constant 2 : index
    %737 = memref.load %arg6[%c5_425, %c2_426] : memref<8x6xf32, #tpu.memory_space<smem>>
    %738 = vector.broadcast %737 : f32 to vector<16x16xf32>
    %739 = arith.mulf %474, %738 : vector<16x16xf32>
    %740 = arith.addf %736, %739 : vector<16x16xf32>
    %c5_427 = arith.constant 5 : index
    %c3_428 = arith.constant 3 : index
    %741 = memref.load %arg6[%c5_427, %c3_428] : memref<8x6xf32, #tpu.memory_space<smem>>
    %742 = vector.broadcast %741 : f32 to vector<16x16xf32>
    %743 = arith.mulf %476, %742 : vector<16x16xf32>
    %744 = arith.addf %740, %743 : vector<16x16xf32>
    %c5_429 = arith.constant 5 : index
    %c4_430 = arith.constant 4 : index
    %745 = memref.load %arg6[%c5_429, %c4_430] : memref<8x6xf32, #tpu.memory_space<smem>>
    %746 = vector.broadcast %745 : f32 to vector<16x16xf32>
    %747 = arith.mulf %478, %746 : vector<16x16xf32>
    %748 = arith.addf %744, %747 : vector<16x16xf32>
    %c5_431 = arith.constant 5 : index
    %c5_432 = arith.constant 5 : index
    %749 = memref.load %arg6[%c5_431, %c5_432] : memref<8x6xf32, #tpu.memory_space<smem>>
    %750 = vector.broadcast %749 : f32 to vector<16x16xf32>
    %751 = arith.mulf %480, %750 : vector<16x16xf32>
    %752 = arith.addf %748, %751 : vector<16x16xf32>
    %c5_433 = arith.constant 5 : index
    %c0_434 = arith.constant 0 : index
    %753 = memref.load %arg8[%c5_433, %c0_434] : memref<8x4xf32, #tpu.memory_space<smem>>
    %754 = vector.broadcast %753 : f32 to vector<16x16xf32>
    %755 = arith.mulf %456, %754 : vector<16x16xf32>
    %756 = arith.addf %752, %755 : vector<16x16xf32>
    %c5_435 = arith.constant 5 : index
    %c1_436 = arith.constant 1 : index
    %757 = memref.load %arg8[%c5_435, %c1_436] : memref<8x4xf32, #tpu.memory_space<smem>>
    %758 = vector.broadcast %757 : f32 to vector<16x16xf32>
    %759 = arith.mulf %460, %758 : vector<16x16xf32>
    %760 = arith.addf %756, %759 : vector<16x16xf32>
    %c5_437 = arith.constant 5 : index
    %c2_438 = arith.constant 2 : index
    %761 = memref.load %arg8[%c5_437, %c2_438] : memref<8x4xf32, #tpu.memory_space<smem>>
    %762 = vector.broadcast %761 : f32 to vector<16x16xf32>
    %763 = arith.mulf %464, %762 : vector<16x16xf32>
    %764 = arith.addf %760, %763 : vector<16x16xf32>
    %c5_439 = arith.constant 5 : index
    %c3_440 = arith.constant 3 : index
    %765 = memref.load %arg8[%c5_439, %c3_440] : memref<8x4xf32, #tpu.memory_space<smem>>
    %766 = vector.broadcast %765 : f32 to vector<16x16xf32>
    %767 = arith.mulf %468, %766 : vector<16x16xf32>
    %768 = arith.addf %764, %767 : vector<16x16xf32>
    %c5_441 = arith.constant 5 : index
    %769 = memref.load %arg7[%c5_441] : memref<8xf32, #tpu.memory_space<smem>>
    %c5_442 = arith.constant 5 : index
    %770 = memref.load %arg9[%c5_442] : memref<8xf32, #tpu.memory_space<smem>>
    %771 = arith.addf %769, %770 : f32
    %772 = vector.broadcast %771 : f32 to vector<16x16xf32>
    %773 = arith.addf %768, %772 : vector<16x16xf32>
    %cst_443 = arith.constant 0.000000e+00 : f32
    %774 = vector.broadcast %cst_443 : f32 to vector<16x16xf32>
    %775 = arith.maximumf %773, %774 : vector<16x16xf32>
    %c5_444 = arith.constant 5 : index
    %776 = memref.load %arg10[%c5_444] : memref<8xf32, #tpu.memory_space<smem>>
    %777 = vector.broadcast %776 : f32 to vector<16x16xf32>
    %778 = arith.mulf %775, %777 : vector<16x16xf32>
    %779 = arith.addf %729, %778 : vector<16x16xf32>
    %c6_445 = arith.constant 6 : index
    %c0_446 = arith.constant 0 : index
    %780 = memref.load %arg6[%c6_445, %c0_446] : memref<8x6xf32, #tpu.memory_space<smem>>
    %781 = vector.broadcast %780 : f32 to vector<16x16xf32>
    %782 = arith.mulf %470, %781 : vector<16x16xf32>
    %c6_447 = arith.constant 6 : index
    %c1_448 = arith.constant 1 : index
    %783 = memref.load %arg6[%c6_447, %c1_448] : memref<8x6xf32, #tpu.memory_space<smem>>
    %784 = vector.broadcast %783 : f32 to vector<16x16xf32>
    %785 = arith.mulf %472, %784 : vector<16x16xf32>
    %786 = arith.addf %782, %785 : vector<16x16xf32>
    %c6_449 = arith.constant 6 : index
    %c2_450 = arith.constant 2 : index
    %787 = memref.load %arg6[%c6_449, %c2_450] : memref<8x6xf32, #tpu.memory_space<smem>>
    %788 = vector.broadcast %787 : f32 to vector<16x16xf32>
    %789 = arith.mulf %474, %788 : vector<16x16xf32>
    %790 = arith.addf %786, %789 : vector<16x16xf32>
    %c6_451 = arith.constant 6 : index
    %c3_452 = arith.constant 3 : index
    %791 = memref.load %arg6[%c6_451, %c3_452] : memref<8x6xf32, #tpu.memory_space<smem>>
    %792 = vector.broadcast %791 : f32 to vector<16x16xf32>
    %793 = arith.mulf %476, %792 : vector<16x16xf32>
    %794 = arith.addf %790, %793 : vector<16x16xf32>
    %c6_453 = arith.constant 6 : index
    %c4_454 = arith.constant 4 : index
    %795 = memref.load %arg6[%c6_453, %c4_454] : memref<8x6xf32, #tpu.memory_space<smem>>
    %796 = vector.broadcast %795 : f32 to vector<16x16xf32>
    %797 = arith.mulf %478, %796 : vector<16x16xf32>
    %798 = arith.addf %794, %797 : vector<16x16xf32>
    %c6_455 = arith.constant 6 : index
    %c5_456 = arith.constant 5 : index
    %799 = memref.load %arg6[%c6_455, %c5_456] : memref<8x6xf32, #tpu.memory_space<smem>>
    %800 = vector.broadcast %799 : f32 to vector<16x16xf32>
    %801 = arith.mulf %480, %800 : vector<16x16xf32>
    %802 = arith.addf %798, %801 : vector<16x16xf32>
    %c6_457 = arith.constant 6 : index
    %c0_458 = arith.constant 0 : index
    %803 = memref.load %arg8[%c6_457, %c0_458] : memref<8x4xf32, #tpu.memory_space<smem>>
    %804 = vector.broadcast %803 : f32 to vector<16x16xf32>
    %805 = arith.mulf %456, %804 : vector<16x16xf32>
    %806 = arith.addf %802, %805 : vector<16x16xf32>
    %c6_459 = arith.constant 6 : index
    %c1_460 = arith.constant 1 : index
    %807 = memref.load %arg8[%c6_459, %c1_460] : memref<8x4xf32, #tpu.memory_space<smem>>
    %808 = vector.broadcast %807 : f32 to vector<16x16xf32>
    %809 = arith.mulf %460, %808 : vector<16x16xf32>
    %810 = arith.addf %806, %809 : vector<16x16xf32>
    %c6_461 = arith.constant 6 : index
    %c2_462 = arith.constant 2 : index
    %811 = memref.load %arg8[%c6_461, %c2_462] : memref<8x4xf32, #tpu.memory_space<smem>>
    %812 = vector.broadcast %811 : f32 to vector<16x16xf32>
    %813 = arith.mulf %464, %812 : vector<16x16xf32>
    %814 = arith.addf %810, %813 : vector<16x16xf32>
    %c6_463 = arith.constant 6 : index
    %c3_464 = arith.constant 3 : index
    %815 = memref.load %arg8[%c6_463, %c3_464] : memref<8x4xf32, #tpu.memory_space<smem>>
    %816 = vector.broadcast %815 : f32 to vector<16x16xf32>
    %817 = arith.mulf %468, %816 : vector<16x16xf32>
    %818 = arith.addf %814, %817 : vector<16x16xf32>
    %c6_465 = arith.constant 6 : index
    %819 = memref.load %arg7[%c6_465] : memref<8xf32, #tpu.memory_space<smem>>
    %c6_466 = arith.constant 6 : index
    %820 = memref.load %arg9[%c6_466] : memref<8xf32, #tpu.memory_space<smem>>
    %821 = arith.addf %819, %820 : f32
    %822 = vector.broadcast %821 : f32 to vector<16x16xf32>
    %823 = arith.addf %818, %822 : vector<16x16xf32>
    %cst_467 = arith.constant 0.000000e+00 : f32
    %824 = vector.broadcast %cst_467 : f32 to vector<16x16xf32>
    %825 = arith.maximumf %823, %824 : vector<16x16xf32>
    %c6_468 = arith.constant 6 : index
    %826 = memref.load %arg10[%c6_468] : memref<8xf32, #tpu.memory_space<smem>>
    %827 = vector.broadcast %826 : f32 to vector<16x16xf32>
    %828 = arith.mulf %825, %827 : vector<16x16xf32>
    %829 = arith.addf %779, %828 : vector<16x16xf32>
    %c7_469 = arith.constant 7 : index
    %c0_470 = arith.constant 0 : index
    %830 = memref.load %arg6[%c7_469, %c0_470] : memref<8x6xf32, #tpu.memory_space<smem>>
    %831 = vector.broadcast %830 : f32 to vector<16x16xf32>
    %832 = arith.mulf %470, %831 : vector<16x16xf32>
    %c7_471 = arith.constant 7 : index
    %c1_472 = arith.constant 1 : index
    %833 = memref.load %arg6[%c7_471, %c1_472] : memref<8x6xf32, #tpu.memory_space<smem>>
    %834 = vector.broadcast %833 : f32 to vector<16x16xf32>
    %835 = arith.mulf %472, %834 : vector<16x16xf32>
    %836 = arith.addf %832, %835 : vector<16x16xf32>
    %c7_473 = arith.constant 7 : index
    %c2_474 = arith.constant 2 : index
    %837 = memref.load %arg6[%c7_473, %c2_474] : memref<8x6xf32, #tpu.memory_space<smem>>
    %838 = vector.broadcast %837 : f32 to vector<16x16xf32>
    %839 = arith.mulf %474, %838 : vector<16x16xf32>
    %840 = arith.addf %836, %839 : vector<16x16xf32>
    %c7_475 = arith.constant 7 : index
    %c3_476 = arith.constant 3 : index
    %841 = memref.load %arg6[%c7_475, %c3_476] : memref<8x6xf32, #tpu.memory_space<smem>>
    %842 = vector.broadcast %841 : f32 to vector<16x16xf32>
    %843 = arith.mulf %476, %842 : vector<16x16xf32>
    %844 = arith.addf %840, %843 : vector<16x16xf32>
    %c7_477 = arith.constant 7 : index
    %c4_478 = arith.constant 4 : index
    %845 = memref.load %arg6[%c7_477, %c4_478] : memref<8x6xf32, #tpu.memory_space<smem>>
    %846 = vector.broadcast %845 : f32 to vector<16x16xf32>
    %847 = arith.mulf %478, %846 : vector<16x16xf32>
    %848 = arith.addf %844, %847 : vector<16x16xf32>
    %c7_479 = arith.constant 7 : index
    %c5_480 = arith.constant 5 : index
    %849 = memref.load %arg6[%c7_479, %c5_480] : memref<8x6xf32, #tpu.memory_space<smem>>
    %850 = vector.broadcast %849 : f32 to vector<16x16xf32>
    %851 = arith.mulf %480, %850 : vector<16x16xf32>
    %852 = arith.addf %848, %851 : vector<16x16xf32>
    %c7_481 = arith.constant 7 : index
    %c0_482 = arith.constant 0 : index
    %853 = memref.load %arg8[%c7_481, %c0_482] : memref<8x4xf32, #tpu.memory_space<smem>>
    %854 = vector.broadcast %853 : f32 to vector<16x16xf32>
    %855 = arith.mulf %456, %854 : vector<16x16xf32>
    %856 = arith.addf %852, %855 : vector<16x16xf32>
    %c7_483 = arith.constant 7 : index
    %c1_484 = arith.constant 1 : index
    %857 = memref.load %arg8[%c7_483, %c1_484] : memref<8x4xf32, #tpu.memory_space<smem>>
    %858 = vector.broadcast %857 : f32 to vector<16x16xf32>
    %859 = arith.mulf %460, %858 : vector<16x16xf32>
    %860 = arith.addf %856, %859 : vector<16x16xf32>
    %c7_485 = arith.constant 7 : index
    %c2_486 = arith.constant 2 : index
    %861 = memref.load %arg8[%c7_485, %c2_486] : memref<8x4xf32, #tpu.memory_space<smem>>
    %862 = vector.broadcast %861 : f32 to vector<16x16xf32>
    %863 = arith.mulf %464, %862 : vector<16x16xf32>
    %864 = arith.addf %860, %863 : vector<16x16xf32>
    %c7_487 = arith.constant 7 : index
    %c3_488 = arith.constant 3 : index
    %865 = memref.load %arg8[%c7_487, %c3_488] : memref<8x4xf32, #tpu.memory_space<smem>>
    %866 = vector.broadcast %865 : f32 to vector<16x16xf32>
    %867 = arith.mulf %468, %866 : vector<16x16xf32>
    %868 = arith.addf %864, %867 : vector<16x16xf32>
    %c7_489 = arith.constant 7 : index
    %869 = memref.load %arg7[%c7_489] : memref<8xf32, #tpu.memory_space<smem>>
    %c7_490 = arith.constant 7 : index
    %870 = memref.load %arg9[%c7_490] : memref<8xf32, #tpu.memory_space<smem>>
    %871 = arith.addf %869, %870 : f32
    %872 = vector.broadcast %871 : f32 to vector<16x16xf32>
    %873 = arith.addf %868, %872 : vector<16x16xf32>
    %cst_491 = arith.constant 0.000000e+00 : f32
    %874 = vector.broadcast %cst_491 : f32 to vector<16x16xf32>
    %875 = arith.maximumf %873, %874 : vector<16x16xf32>
    %c7_492 = arith.constant 7 : index
    %876 = memref.load %arg10[%c7_492] : memref<8xf32, #tpu.memory_space<smem>>
    %877 = vector.broadcast %876 : f32 to vector<16x16xf32>
    %878 = arith.mulf %875, %877 : vector<16x16xf32>
    %879 = arith.addf %829, %878 : vector<16x16xf32>
    %c0_493 = arith.constant 0 : index
    %880 = memref.load %arg11[%c0_493] : memref<1xf32, #tpu.memory_space<smem>>
    %881 = vector.broadcast %880 : f32 to vector<16x16xf32>
    %882 = arith.addf %879, %881 : vector<16x16xf32>
    %883 = arith.negf %882 : vector<16x16xf32>
    %884 = math.exp %883 : vector<16x16xf32>
    %cst_494 = arith.constant 1.000000e+00 : f32
    %885 = vector.broadcast %cst_494 : f32 to vector<16x16xf32>
    %886 = arith.addf %885, %884 : vector<16x16xf32>
    %887 = arith.divf %885, %886 : vector<16x16xf32>
    %888 = arith.mulf %456, %887 : vector<16x16xf32>
    %c1_495 = arith.constant 1 : index
    %c0_496 = arith.constant 0 : index
    %c0_497 = arith.constant 0 : index
    %c0_498 = arith.constant 0 : index
    %889 = vector.load %arg12[%c1_495, %c0_496, %c0_497, %c0_498] : memref<2x4x16x16xf32, #tpu.memory_space<vmem>>, vector<1x1x16x16xf32>
    %890 = vector.shape_cast %889 : vector<1x1x16x16xf32> to vector<16x16xf32>
    %891 = vector.shape_cast %888 : vector<16x16xf32> to vector<1x1x16x16xf32>
    tpu.vector_store %arg12[%c1_495, %c0_496, %c0_497, %c0_498], %891 {strides = array<i32>} : memref<2x4x16x16xf32, #tpu.memory_space<vmem>>, vector<1x1x16x16xf32>,
    %892 = arith.mulf %460, %887 : vector<16x16xf32>
    %c1_499 = arith.constant 1 : index
    %c1_500 = arith.constant 1 : index
    %c0_501 = arith.constant 0 : index
    %c0_502 = arith.constant 0 : index
    %893 = vector.load %arg12[%c1_499, %c1_500, %c0_501, %c0_502] : memref<2x4x16x16xf32, #tpu.memory_space<vmem>>, vector<1x1x16x16xf32>
    %894 = vector.shape_cast %893 : vector<1x1x16x16xf32> to vector<16x16xf32>
    %895 = vector.shape_cast %892 : vector<16x16xf32> to vector<1x1x16x16xf32>
    tpu.vector_store %arg12[%c1_499, %c1_500, %c0_501, %c0_502], %895 {strides = array<i32>} : memref<2x4x16x16xf32, #tpu.memory_space<vmem>>, vector<1x1x16x16xf32>,
    %896 = arith.mulf %464, %887 : vector<16x16xf32>
    %c1_503 = arith.constant 1 : index
    %c2_504 = arith.constant 2 : index
    %c0_505 = arith.constant 0 : index
    %c0_506 = arith.constant 0 : index
    %897 = vector.load %arg12[%c1_503, %c2_504, %c0_505, %c0_506] : memref<2x4x16x16xf32, #tpu.memory_space<vmem>>, vector<1x1x16x16xf32>
    %898 = vector.shape_cast %897 : vector<1x1x16x16xf32> to vector<16x16xf32>
    %899 = vector.shape_cast %896 : vector<16x16xf32> to vector<1x1x16x16xf32>
    tpu.vector_store %arg12[%c1_503, %c2_504, %c0_505, %c0_506], %899 {strides = array<i32>} : memref<2x4x16x16xf32, #tpu.memory_space<vmem>>, vector<1x1x16x16xf32>,
    %900 = arith.mulf %468, %887 : vector<16x16xf32>
    %c1_507 = arith.constant 1 : index
    %c3_508 = arith.constant 3 : index
    %c0_509 = arith.constant 0 : index
    %c0_510 = arith.constant 0 : index
    %901 = vector.load %arg12[%c1_507, %c3_508, %c0_509, %c0_510] : memref<2x4x16x16xf32, #tpu.memory_space<vmem>>, vector<1x1x16x16xf32>
    %902 = vector.shape_cast %901 : vector<1x1x16x16xf32> to vector<16x16xf32>
    %903 = vector.shape_cast %900 : vector<16x16xf32> to vector<1x1x16x16xf32>
    tpu.vector_store %arg12[%c1_507, %c3_508, %c0_509, %c0_510], %903 {strides = array<i32>} : memref<2x4x16x16xf32, #tpu.memory_space<vmem>>, vector<1x1x16x16xf32>,
    return
  }
  func.func @transform_0(%arg0: i32, %arg1: i32) -> (i32, i32, i32, i32) {
    %c0_i32 = arith.constant 0 : i32
    %c0_i32_0 = arith.constant 0 : i32
    %c0_i32_1 = arith.constant 0 : i32
    return %arg0, %c0_i32, %arg1, %c0_i32_0 : i32, i32, i32, i32
  }
  func.func @transform_1(%arg0: i32, %arg1: i32) -> (i32, i32, i32, i32) {
    %c0_i32 = arith.constant 0 : i32
    %c0_i32_0 = arith.constant 0 : i32
    %c0_i32_1 = arith.constant 0 : i32
    %c0_i32_2 = arith.constant 0 : i32
    return %arg0, %c0_i32, %c0_i32_0, %c0_i32_1 : i32, i32, i32, i32
  }
  func.func @transform_2(%arg0: i32, %arg1: i32) -> (i32, i32) {
    %c0_i32 = arith.constant 0 : i32
    %c0_i32_0 = arith.constant 0 : i32
    return %arg1, %c0_i32 : i32, i32
  }
  func.func @transform_3(%arg0: i32, %arg1: i32) -> (i32, i32) {
    %c0_i32 = arith.constant 0 : i32
    %c0_i32_0 = arith.constant 0 : i32
    %c0_i32_1 = arith.constant 0 : i32
    return %c0_i32, %c0_i32_0 : i32, i32
  }
  func.func @transform_4(%arg0: i32, %arg1: i32) -> (i32, i32) {
    %c0_i32 = arith.constant 0 : i32
    %c0_i32_0 = arith.constant 0 : i32
    %c0_i32_1 = arith.constant 0 : i32
    return %c0_i32, %c0_i32_0 : i32, i32
  }
  func.func @transform_5(%arg0: i32, %arg1: i32) -> i32 {
    %c0_i32 = arith.constant 0 : i32
    %c0_i32_0 = arith.constant 0 : i32
    return %c0_i32 : i32
  }
  func.func @transform_6(%arg0: i32, %arg1: i32) -> (i32, i32) {
    %c0_i32 = arith.constant 0 : i32
    %c0_i32_0 = arith.constant 0 : i32
    %c0_i32_1 = arith.constant 0 : i32
    return %c0_i32, %c0_i32_0 : i32, i32
  }
  func.func @transform_7(%arg0: i32, %arg1: i32) -> i32 {
    %c0_i32 = arith.constant 0 : i32
    %c0_i32_0 = arith.constant 0 : i32
    return %c0_i32 : i32
  }
  func.func @transform_8(%arg0: i32, %arg1: i32) -> i32 {
    %c0_i32 = arith.constant 0 : i32
    %c0_i32_0 = arith.constant 0 : i32
    return %c0_i32 : i32
  }
  func.func @transform_9(%arg0: i32, %arg1: i32) -> i32 {
    %c0_i32 = arith.constant 0 : i32
    %c0_i32_0 = arith.constant 0 : i32
    return %c0_i32 : i32
  }
  func.func @transform_10(%arg0: i32, %arg1: i32) -> (i32, i32, i32, i32) {
    %c0_i32 = arith.constant 0 : i32
    %c0_i32_0 = arith.constant 0 : i32
    %c0_i32_1 = arith.constant 0 : i32
    return %arg0, %c0_i32, %arg1, %c0_i32_0 : i32, i32, i32, i32
  }
}

</mosaic_0001>

<bundles_post_ra>
// kernel: _attention_gate_small.1
= control target key start
LH: loop header
LB: loop body
LE: loop exit
PB: predicated region body
PF: predicated region fallthrough
CT: control target
= control target key end

     0   :  { %s7178_s0 = inlined_call_operand.hbm [shape: f32[2,6,16,16], index: 0, kind: input, shape index: {}]   ;;  %s7179_s1 = inlined_call_operand.hbm [shape: f32[2,4,8,8], index: 1, kind: input, shape index: {}]   ;;  %s7180_s2 = inlined_call_operand.vmem [shape: f32[16,8], index: 2, kind: input, shape index: {}]   ;;  %s7181_s3 = inlined_call_operand.vmem [shape: f32[8,16], index: 3, kind: input, shape index: {}]   ;;  %s7182_s4 = inlined_call_operand.vmem [shape: f32[8,6], index: 4, kind: input, shape index: {}]   ;;  %s7183_s5 = inlined_call_operand.vmem [shape: f32[8], index: 5, kind: input, shape index: {}]   ;;  %s7184_s6 = inlined_call_operand.vmem [shape: f32[8,4], index: 6, kind: input, shape index: {}]   ;;  %s7185_s7 = inlined_call_operand.vmem [shape: f32[8], index: 7, kind: input, shape index: {}]   ;;  %s7186_s8 = inlined_call_operand.vmem [shape: f32[8], index: 8, kind: input, shape index: {}]   ;;  %s7187_s9 = inlined_call_operand.<no memory space> [shape: f32[1], index: 9, kind: input, shape index: {}]   ;;  %s7188_s10 = inlined_call_operand.hbm [shape: f32[2,4,16,16], index: 10, kind: output, shape index: {}]  }
   0x1   :  { %7362 = sst [smem:[#allocation76_spill]] %s7187_s9 }
   0x2   :  { %7363 = sst [smem:[#allocation77_spill]] %s7188_s10 }
   0x3   :  { %16 = vsyncpa [#allocation4], 0 }
   0x4   :  { %17 = vsyncpa [#allocation8], 0 }
   0x5   :  { %18 = vsyncpa [#allocation6], 0 }
   0x6   :  { %19 = vsyncpa [#allocation11], 0 }
   0x7   :  { %20 = vsyncpa [#allocation14], 0  ;;  %s66_s15 = sshll.u32 %s7183_s5, 4  ;;  %s67_s15 = int_to_ptr.vmem [resolvable:$true] %s66_s15 }
   0x8   :  { %21 = vsyncpa [#allocation5], 0  ;;  %s84_s18 = sshll.u32 %s7185_s7, 4  ;;  %s4735_s19 = smov [#allocation10]   ;;  %s85_s18 = int_to_ptr.vmem [resolvable:$true] %s84_s18 }
   0x9   :  { %69 = dma.vmem_to_smem %s67_s15, 16, %s4735_s19, [#allocation11]  }
   0xa   :  { %s4736_s20 = smov [#allocation13]   ;;  %s26_s23 = sshll.u32 %s7178_s0, 4  ;;  %s27_s23 = int_to_ptr.hbm [resolvable:$true] %s26_s23 }
   0xb   :  { %87 = dma.vmem_to_smem %s85_s18, 16, %s4736_s20, [#allocation14]  }
   0xc   :  { %s4737_s24 = smov [#allocation3]   ;;  %s39_s27 = sshll.u32 %s7179_s1, 4  ;;  %s40_s27 = int_to_ptr.hbm [resolvable:$true] %s39_s27 }
   0xd   :  { %s28_s25 = sshll.u32 %s4737_s24, 4  ;;  %s7189_s28 = smov 128   ;;  %s29_s25 = int_to_ptr.vmem [resolvable:$true] %s28_s25 }
   0xe   :  { %s7190_s29 = smov 8   ;;  %s4740_s7 = smov [#allocation7]  }
   0xf   :  { %34 = dma.hbm_to_vmem [thread:$0]  %s27_s23, 3072, %s29_s25, [#allocation4], %s7189_s28, %s7189_s28, %s7190_s29  }
  0x10   :  { %s41_s30 = sshll.u32 %s4740_s7, 4  ;;  %s57_s0 = sshll.u32 %s7182_s4, 4  ;;  %s42_s30 = int_to_ptr.vmem [resolvable:$true] %s41_s30  ;;  %s58_s0 = int_to_ptr.vmem [resolvable:$true] %s57_s0 }
  0x11   :  { %47 = dma.hbm_to_vmem [thread:$0]  %s40_s27, 1024, %s42_s30, [#allocation8], %s7189_s28, %s7189_s28, %s7190_s29  }
  0x12   :  { %s75_s14 = sshll.u32 %s7184_s6, 4  ;;  %s4741_s15 = smov [#allocation9]   ;;  %s76_s14 = int_to_ptr.vmem [resolvable:$true] %s75_s14 }
  0x13   :  { %60 = dma.vmem_to_smem %s58_s0, 128, %s4741_s15, [#allocation6]  }
  0x14   :  { %s4742_s16 = smov [#allocation12]   ;;  %s93_s19 = sshll.u32 %s7186_s8, 4  ;;  %s94_s19 = int_to_ptr.vmem [resolvable:$true] %s93_s19 }
  0x15   :  { %78 = dma.vmem_to_smem %s76_s14, 128, %s4742_s16, [#allocation11]  }
  0x16   :  { %s4743_s4 = smov [#allocation15]  }
  0x17   :  { %96 = dma.vmem_to_smem %s94_s19, 16, %s4743_s4, [#allocation14]  }
  0x18   :  { %4723 = dma.done.wait [#allocation4], 3072  }
  0x19   :  { %4724 = vsyncadd [#allocation4], 4294964224 }
  0x1a   :  { %4725 = dma.done.wait [#allocation8], 1024  }
  0x1b   :  { %4726 = vsyncadd [#allocation8], 4294966272 }
  0x1c   :  { %4727 = dma.done.wait [#allocation6], 128  }
  0x1d   :  { %4728 = vsyncadd [#allocation6], 4294967168 }
  0x1e   :  { %4729 = dma.done.wait [#allocation11], 144  }
  0x1f   :  { %4730 = vsyncadd [#allocation11], 4294967152 }
  0x20   :  { %4731 = dma.done.wait [#allocation14], 32  }
  0x21   :  { %4732 = vsyncadd [#allocation14], 4294967264 }
  0x22   :  { %127 = sfence }
  0x23   :  { %v131_v0 = vld [vmem:[#allocation7] sm:$0xff]  ;;  %vm132_vm0 = vcmask 64512   ;;  %v129_v2 = vld [vmem:[%s7180_s2 + $0x8] sm:$0xff]  ;;  %s5039_s23 = sld [smem:[#allocation9 + $0x1]]  ;;  %vm2220_vm5 = vcmask 130048  }
  0x24   :  { %v128_v1 = vld [vmem:[%s7180_s2] sm:$0xff]  ;;  %v154_v3 = vand.u32 4294901760, %v131_v0  ;;  %v137_v5 = vsel %vm132_vm0, %v129_v2, 0  ;;  %v500_v32 = vld [vmem:[#allocation7 + $0x8] sm:$0xff]  ;;  %s5042_s24 = sld [smem:[#allocation9 + $0x2]] }
  0x25   :  { %v134_v4 = vsel %vm132_vm0, %v128_v1, 0  ;;  %v4837_v7 = vand.u32 4294901760, %v137_v5  ;;  %v130_v20 = vld [vmem:[%s7181_s3] sm:$0xff]  ;;  %v516_v33 = vand.u32 4294901760, %v500_v32  ;;  %s5037_s3 = sld [smem:[#allocation9]] }
  0x26   :  { %v4835_v6 = vand.u32 4294901760, %v134_v4  ;;  %v189_v8 = vsub.f32 %v131_v0, %v154_v3  ;;  %248 = vmatpush.msra.mxu3 %v154_v3  ;;  %155 = vmatpush.msra.mxu0 %v154_v3  ;;  %v4874_v21 = vand.u32 4294901760, %v130_v20  ;;  %s5044_s25 = sld [smem:[#allocation9 + $0x80]] }
  0x27   :  { %7365 = vst [vmem:[#allocation24_spill] sm:$0xff] %v4837_v7  ;;  %v4843_v10 = vsub.f32 %v137_v5, %v4837_v7  ;;  %v551_v36 = vsub.f32 %v500_v32, %v516_v33  ;;  %s5046_s5 = sld [smem:[#allocation9 + $0x3]] }
  0x28   :  { %7364 = vst [vmem:[#allocation23_spill] sm:$0xff] %v4835_v6  ;;  %v4840_v9 = vsub.f32 %v134_v4, %v4835_v6  ;;  %220 = vmatpush.msra.mxu2 %v189_v8  ;;  %v190_v11 = vand.u32 4294901760, %v189_v8  ;;  %v4878_v22 = vsub.f32 %v130_v20, %v4874_v21  ;;  %s5048_s26 = sld [smem:[#allocation9 + $0x81]] }
  0x29   :  { %7367 = vst [vmem:[#allocation26_spill] sm:$0xff] %v4843_v10  ;;  %v4853_v15 = vand.u32 4294901760, %v4843_v10  ;;  %v552_v37 = vand.u32 4294901760, %v551_v36  ;;  %s5052_s27 = sld [smem:[#allocation9 + $0x4]] }
  0x2a   :  { %7366 = vst [vmem:[#allocation25_spill] sm:$0xff] %v4840_v9  ;;  %223 = vmatmul.f32.vlgmr.msra.gmra.mxu2 %v4840_v9  ;;  %v4847_v12 = vand.u32 4294901760, %v4840_v9  ;;  %v191_v13 = vsub.f32 %v189_v8, %v190_v11  ;;  %280 = vmatpush.msrb.mxu0 %v190_v11  ;;  %v4882_v23 = vand.u32 4294901760, %v4878_v22  ;;  %s5055_s7 = sld [smem:[#allocation9 + $0x82]] }
  0x2b   :  { %7369 = vst [vmem:[#allocation28_spill] sm:$0xff] %v4853_v15  ;;  %v167_v18 = vsub.f32 %v4843_v10, %v4853_v15  ;;  %338 = vmatpush.msrb.mxu2 %v4874_v21  ;;  %v553_v41 = vsub.f32 %v551_v36, %v552_v37  ;;  %s5058_s30 = sld [smem:[#allocation9 + $0x5]] }
  0x2c   :  { %7368 = vst [vmem:[#allocation27_spill] sm:$0xff] %v4847_v12  ;;  %252 = vmatmul.f32.vlgmr.msra.gmra.mxu3 %v4847_v12  ;;  %v159_v14 = vsub.f32 %v4840_v9, %v4847_v12  ;;  %v192_v16 = vand.u32 4294901760, %v191_v13  ;;  %v374_v24 = vsub.f32 %v4878_v22, %v4882_v23  ;;  %s5060_s11 = sld [smem:[#allocation9 + $0x83]] }
  0x2d   :  { %v4863_v19 = vand.u32 4294901760, %v167_v18  ;;  %7372 = vst [vmem:[#allocation31_spill] sm:$0xff] %v4874_v21  ;;  %463 = vmatpush.msra.mxu2 %v4882_v23  ;;  %v554_v45 = vand.u32 4294901760, %v553_v41  ;;  %s5063_s12 = sld [smem:[#allocation12]] }
  0x2e   :  { %v4855_v17 = vand.u32 4294901760, %v159_v14  ;;  %193 = vmatpush.msra.mxu1 %v192_v16  ;;  %7373 = vst [vmem:[#allocation32_spill] sm:$0xff] %v4878_v22  ;;  %v4888_v25 = vand.u32 4294901760, %v374_v24  ;;  %7385 = sst [smem:[#allocation44_spill]] %s5048_s26 }
  0x2f   :  { %195 = vmatmul.f32.vlgmr.msra.gmra.mxu1 %v4835_v6  ;;  %7371 = vst [vmem:[#allocation30_spill] sm:$0xff] %v4863_v19  ;;  %s5065_s0 = sld [smem:[#allocation9 + $0x84]] }
  0x30   :  { %7370 = vst [vmem:[#allocation29_spill] sm:$0xff] %v4855_v17  ;;  %161 = vmatmul.f32.vlgmr.msra.gmra.mxu0 %v4855_v17  ;;  %306 = vmatpush.msrb.mxu1 %v154_v3  ;;  %7386 = sst [smem:[#allocation45_spill]] %s5055_s7 }
  0x31   :  { %7374 = vst [vmem:[#allocation33_spill] sm:$0xff] %v4882_v23  ;;  %403 = vmatpush.msra.mxu0 %v4878_v22  ;;  %376 = vmatpush.msrb.mxu3 %v4888_v25  ;;  %s5067_s1 = sld [smem:[#allocation9 + $0x85]] }
  0x32   :  { %228 = vmatmul.f32.gmra.mxu2 %v4843_v10  ;;  %431 = vmatpush.msra.mxu1 %v4874_v21  ;;  %7375 = vst [vmem:[#allocation34_spill] sm:$0xff] %v4888_v25  ;;  %7387 = sst [smem:[#allocation46_spill]] %s5060_s11 }
  0x33   :  { %489 = vmatpush.msra.mxu3 %v4874_v21  ;;  %7388 = sst [smem:[#allocation47_spill]] %s5063_s12 }
  0x34   :  { %258 = vmatmul.f32.gmra.mxu3 %v4853_v15  ;;  %s5069_s13 = sld [smem:[#allocation12 + $0x80]] }
  0x35   :  { %7389 = sst [smem:[#allocation48_spill]] %s5065_s0 }
  0x36   :  { %s5072_s14 = sld [smem:[#allocation9 + $0x100]] }
  0x37   :  { %199 = vmatmul.f32.gmra.mxu1 %v4837_v7  ;;  %7390 = sst [smem:[#allocation49_spill]] %s5067_s1 }
  0x38   :  { %169 = vmatmul.f32.gmra.mxu0 %v4863_v19  ;;  %s5074_s15 = sld [smem:[#allocation9 + $0x101]] }
  0x39   :  { %s5076_s16 = sld [smem:[#allocation9 + $0x102]] }
  0x3a   :  { %s5084_s17 = sld [smem:[#allocation9 + $0x103]] }
  0x3b   :  { %s5086_s18 = sld [smem:[#allocation9 + $0x104]] }
  0x3c   :  { %7391 = sst [smem:[#allocation50_spill]] %s5072_s14 }
  0x3d   :  { %s5090_s19 = sld [smem:[#allocation9 + $0x105]] }
  0x3e   :  { %7392 = sst [smem:[#allocation51_spill]] %s5074_s15 }
  0x3f   :  { %308 = vmatmul.f32.vlgmr.msrb.gmra.mxu1 %v4835_v6  ;;  %7393 = sst [smem:[#allocation52_spill]] %s5076_s16 }
  0x40   :  { %282 = vmatmul.f32.vlgmr.msrb.gmra.mxu0 %v4835_v6  ;;  %555 = vmatpush.msrb.mxu1 %v554_v45  ;;  %7394 = sst [smem:[#allocation53_spill]] %s5084_s17 }
  0x41   :  { %517 = vmatpush.msrb.mxu0 %v516_v33  ;;  %7395 = sst [smem:[#allocation54_spill]] %s5086_s18 }
  0x42   :  { %s5098_s4 = sld [smem:[#allocation12 + $0x100]] }
  0x43   :  { %7396 = sst [smem:[#allocation55_spill]] %s5090_s19 }
  0x44   :  { %s5103_s6 = sld [smem:[#allocation9 + $0x180]] }
  0x45   :  { %s5111_s20 = sld [smem:[#allocation9 + $0x181]] }
  0x46   :  { %s5114_s8 = sld [smem:[#allocation9 + $0x182]] }
  0x47   :  { %312 = vmatmul.f32.gmra.mxu1 %v4837_v7  ;;  %s5121_s21 = sld [smem:[#allocation9 + $0x183]] }
  0x48   :  { %286 = vmatmul.f32.gmra.mxu0 %v4837_v7  ;;  %s5126_s2 = sld [smem:[#allocation9 + $0x184]] }
  0x49   :  { %s5131_s22 = sld [smem:[#allocation9 + $0x185]] }
  0x4a   :  { %s5140_s28 = sld [smem:[#allocation9 + $0x200]] }
  0x4b   :  { %7397 = sst [smem:[#allocation56_spill]] %s5111_s20 }
  0x4c   :  { %s5146_s29 = sld [smem:[#allocation9 + $0x201]] }
  0x4d   :  { %7398 = sst [smem:[#allocation57_spill]] %s5121_s21 }
  0x4e   :  { %7399 = sst [smem:[#allocation58_spill]] %s5126_s2 }
  0x4f   :  { %s5151_s10 = sld [smem:[#allocation9 + $0x202]] }
  0x50   :  { %s5156_s9 = sld [smem:[#allocation9 + $0x203]] }
  0x51   :  { %s5206_s12 = sld [smem:[#allocation9 + $0x381]] }
  0x52   :  { %7400 = sst [smem:[#allocation59_spill]] %s5146_s29 }
  0x55   :  { %7401 = sst [smem:[#allocation60_spill]] %s5151_s10 }
  0x56   :  { %7402 = sst [smem:[#allocation61_spill]] %s5156_s9 }
  0xac   :  { %v196_v27 = vpop.f32.mrf.mxu1 }
  0xad   :  { %v162_v26 = vpop.f32.mrf.mxu0  ;;  %v224_v28 = vpop.f32.mrf.mxu2 }
  0xae   :  { %v197_v29 = vadd.f32 %v196_v27, %v162_v26 }
  0xaf   :  { %v253_v34 = vpop.f32.mrf.mxu3 }
  0xb0   :  { %v225_v35 = vadd.f32 %v224_v28, %v197_v29 }
  0xb2   :  { %v254_v38 = vadd.f32 %v253_v34, %v225_v35  ;;  %v862_v34 = vld [vmem:[#allocation7 + $0x10] sm:$0xff] }
  0xb4   :  { %v200_v31 = vpop.f32.mrf.mxu1 }
  0xb5   :  { %v170_v30 = vpop.f32.mrf.mxu0  ;;  %v229_v40 = vpop.f32.mrf.mxu2 }
  0xb6   :  { %v201_v39 = vadd.f32 %v200_v31, %v170_v30 }
  0xb7   :  { %v259_v48 = vpop.f32.mrf.mxu3 }
  0xb8   :  { %v230_v46 = vadd.f32 %v229_v40, %v201_v39  ;;  %v878_v40 = vand.u32 4294901760, %v862_v34 }
  0xba   :  { %v260_v51 = vadd.f32 %v259_v48, %v230_v46 }
  0xbc   :  { %v309_v43 = vpop.f32.mrf.mxu1 }
  0xbd   :  { %v283_v42 = vpop.f32.mrf.mxu0 }
  0xbe   :  { %v284_v44 = vadd.f32 %v283_v42, %v254_v38 }
  0xc0   :  { %v310_v47 = vadd.f32 %v309_v43, %v284_v44  ;;  %v913_v44 = vsub.f32 %v862_v34, %v878_v40 }
  0xc2   :  { %v317_v49 = vsel %vm132_vm0, %v310_v47, 0  ;;  %v914_v48 = vand.u32 4294901760, %v913_v44 }
  0xc3   :  { %v339_v50 = vand.u32 4294901760, %v317_v49 }
  0xc4   :  { %v313_v54 = vpop.f32.mrf.mxu1 }
  0xc5   :  { %v340_v52 = vsub.f32 %v317_v49, %v339_v50  ;;  %v287_v53 = vpop.f32.mrf.mxu0  ;;  %378 = vmatmul.f32.vlgmr.msrb.gmra.mxu3 %v339_v50 }
  0xc6   :  { %v288_v55 = vadd.f32 %v287_v53, %v260_v51  ;;  %610 = vmatpush.msrb.mxu3 %v516_v33  ;;  %v915_v51 = vsub.f32 %v913_v44, %v914_v48 }
  0xc7   :  { %406 = vmatmul.f32.vlgmr.msra.gmra.mxu0 %v340_v52  ;;  %v341_v56 = vand.u32 4294901760, %v340_v52 }
  0xc8   :  { %v314_v57 = vadd.f32 %v313_v54, %v288_v55  ;;  %642 = vmatpush.msra.mxu0 %v552_v37  ;;  %v916_v54 = vand.u32 4294901760, %v915_v51 }
  0xc9   :  { %435 = vmatmul.f32.vlgmr.msra.gmra.mxu1 %v341_v56  ;;  %v342_v58 = vsub.f32 %v340_v52, %v341_v56 }
  0xca   :  { %v320_v59 = vsel %vm132_vm0, %v314_v57, 0  ;;  %668 = vmatpush.msra.mxu1 %v516_v33 }
  0xcb   :  { %v347_v60 = vand.u32 4294901760, %v320_v59  ;;  %v343_v61 = vand.u32 4294901760, %v342_v58 }
  0xcd   :  { %344 = vmatmul.f32.vlgmr.msrb.gmra.mxu2 %v343_v61  ;;  %382 = vmatmul.f32.gmra.mxu3 %v347_v60  ;;  %v348_v62 = vsub.f32 %v320_v59, %v347_v60 }
  0xce   :  { %582 = vmatpush.msrb.mxu2 %v551_v36 }
  0xcf   :  { %411 = vmatmul.f32.gmra.mxu0 %v348_v62  ;;  %v349_v63 = vand.u32 4294901760, %v348_v62 }
  0xd1   :  { %441 = vmatmul.f32.gmra.mxu1 %v349_v63  ;;  %v350_v0 = vsub.f32 %v348_v62, %v349_v63 }
  0xd3   :  { %v351_v1 = vand.u32 4294901760, %v350_v0 }
  0xd5   :  { %352 = vmatmul.f32.gmra.mxu2 %v351_v1  ;;  %491 = vmatmul.f32.vlgmr.msra.gmra.mxu3 %v339_v50 }
  0xd6   :  { %738 = vmatpush.msra.mxu3 %v4888_v25 }
  0xd7   :  { %523 = vmatmul.f32.vlgmr.msrb.gmra.mxu0 %v4855_v17 }
  0xd8   :  { %765 = vmatpush.msrb.mxu0 %v4878_v22 }
  0xd9   :  { %557 = vmatmul.f32.vlgmr.msrb.gmra.mxu1 %v4835_v6 }
  0xda   :  { %793 = vmatpush.msrb.mxu1 %v4874_v21 }
  0xdd   :  { %465 = vmatmul.f32.vlgmr.msra.gmra.mxu2 %v339_v50  ;;  %495 = vmatmul.f32.gmra.mxu3 %v347_v60 }
  0xde   :  { %700 = vmatpush.msra.mxu2 %v4874_v21 }
  0xdf   :  { %531 = vmatmul.f32.gmra.mxu0 %v4863_v19 }
  0xe1   :  { %561 = vmatmul.f32.gmra.mxu1 %v4837_v7 }
  0xe5   :  { %469 = vmatmul.f32.gmra.mxu2 %v347_v60  ;;  %614 = vmatmul.f32.vlgmr.msrb.gmra.mxu3 %v4847_v12 }
  0xe6   :  { %851 = vmatpush.msrb.mxu3 %v4874_v21 }
  0xe7   :  { %644 = vmatmul.f32.vlgmr.msra.gmra.mxu0 %v4835_v6 }
  0xe8   :  { %879 = vmatpush.msra.mxu0 %v878_v40 }
  0xe9   :  { %670 = vmatmul.f32.vlgmr.msra.gmra.mxu1 %v4835_v6 }
  0xea   :  { %917 = vmatpush.msra.mxu1 %v916_v54 }
  0xed   :  { %585 = vmatmul.f32.vlgmr.msrb.gmra.mxu2 %v4840_v9  ;;  %620 = vmatmul.f32.gmra.mxu3 %v4853_v15 }
  0xee   :  { %825 = vmatpush.msrb.mxu2 %v4882_v23 }
  0xef   :  { %648 = vmatmul.f32.gmra.mxu0 %v4837_v7 }
  0xf1   :  { %674 = vmatmul.f32.gmra.mxu1 %v4837_v7 }
  0xf5   :  { %590 = vmatmul.f32.gmra.mxu2 %v4843_v10 }
 0x144   :  { %v4914_v3 = vpop.f32.mrf.mxu0 }
 0x146   :  { %v4918_v5 = vpop.f32.mrf.mxu1 }
 0x148   :  { %v4912_v2 = vpop.f32.mrf.mxu3 }
 0x14c   :  { %v4922_v11 = vpop.f32.mrf.mxu0 }
 0x14e   :  { %v4926_v14 = vpop.f32.mrf.mxu1 }
 0x150   :  { %v4916_v4 = vpop.f32.mrf.mxu2  ;;  %v4920_v8 = vpop.f32.mrf.mxu3 }
 0x154   :  { %v524_v16 = vpop.f32.mrf.mxu0 }
 0x156   :  { %v558_v24 = vpop.f32.mrf.mxu1 }
 0x157   :  { %v559_v35 = vadd.f32 %v558_v24, %v524_v16 }
 0x158   :  { %v4924_v13 = vpop.f32.mrf.mxu2  ;;  %v4928_v18 = vpop.f32.mrf.mxu3 }
 0x15c   :  { %v532_v28 = vpop.f32.mrf.mxu0 }
 0x15e   :  { %v562_v29 = vpop.f32.mrf.mxu1 }
 0x15f   :  { %v563_v37 = vadd.f32 %v562_v29, %v532_v28 }
 0x160   :  { %v4930_v20 = vpop.f32.mrf.mxu2  ;;  %v4934_v27 = vpop.f32.mrf.mxu3 }
 0x164   :  { %v645_v32 = vpop.f32.mrf.mxu0 }
 0x166   :  { %v671_v33 = vpop.f32.mrf.mxu1 }
 0x168   :  { %v4932_v26 = vpop.f32.mrf.mxu2  ;;  %v615_v31 = vpop.f32.mrf.mxu3 }
 0x16c   :  { %v649_v43 = vpop.f32.mrf.mxu0 }
 0x16e   :  { %v675_v47 = vpop.f32.mrf.mxu1 }
 0x170   :  { %v586_v30 = vpop.f32.mrf.mxu2  ;;  %v621_v39 = vpop.f32.mrf.mxu3 }
 0x171   :  { %v587_v38 = vadd.f32 %v586_v30, %v559_v35 }
 0x173   :  { %v616_v42 = vadd.f32 %v615_v31, %v587_v38 }
 0x175   :  { %v646_v46 = vadd.f32 %v645_v32, %v616_v42 }
 0x177   :  { %v672_v50 = vadd.f32 %v671_v33, %v646_v46 }
 0x178   :  { %v591_v36 = vpop.f32.mrf.mxu2 }
 0x179   :  { %v592_v41 = vadd.f32 %v591_v36, %v563_v37  ;;  %v679_v53 = vsel %vm132_vm0, %v672_v50, 0 }
 0x17a   :  { %v701_v55 = vand.u32 4294901760, %v679_v53 }
 0x17b   :  { %v622_v45 = vadd.f32 %v621_v39, %v592_v41 }
 0x17c   :  { %v702_v58 = vsub.f32 %v679_v53, %v701_v55  ;;  %740 = vmatmul.f32.vlgmr.msra.gmra.mxu3 %v701_v55 }
 0x17d   :  { %v650_v49 = vadd.f32 %v649_v43, %v622_v45  ;;  %972 = vmatpush.msra.mxu3 %v878_v40  ;;  %v1224_v43 = vld [vmem:[#allocation7 + $0x18] sm:$0xff] }
 0x17e   :  { %768 = vmatmul.f32.vlgmr.msrb.gmra.mxu0 %v702_v58  ;;  %v703_v60 = vand.u32 4294901760, %v702_v58 }
 0x17f   :  { %v676_v52 = vadd.f32 %v675_v47, %v650_v49  ;;  %1004 = vmatpush.msrb.mxu0 %v914_v48  ;;  %v1240_v48 = vand.u32 4294901760, %v1224_v43 }
 0x180   :  { %797 = vmatmul.f32.vlgmr.msrb.gmra.mxu1 %v703_v60  ;;  %v704_v61 = vsub.f32 %v702_v58, %v703_v60 }
 0x181   :  { %v682_v56 = vsel %vm132_vm0, %v676_v52, 0  ;;  %1030 = vmatpush.msrb.mxu1 %v878_v40  ;;  %v1275_v51 = vsub.f32 %v1224_v43, %v1240_v48 }
 0x182   :  { %v709_v57 = vand.u32 4294901760, %v682_v56  ;;  %v705_v63 = vand.u32 4294901760, %v704_v61 }
 0x183   :  { %v1276_v53 = vand.u32 4294901760, %v1275_v51 }
 0x184   :  { %v710_v59 = vsub.f32 %v682_v56, %v709_v57  ;;  %706 = vmatmul.f32.vlgmr.msra.gmra.mxu2 %v705_v63  ;;  %744 = vmatmul.f32.gmra.mxu3 %v709_v57 }
 0x185   :  { %944 = vmatpush.msra.mxu2 %v913_v44  ;;  %v1277_v56 = vsub.f32 %v1275_v51, %v1276_v53 }
 0x186   :  { %v711_v62 = vand.u32 4294901760, %v710_v59  ;;  %773 = vmatmul.f32.gmra.mxu0 %v710_v59 }
 0x187   :  { %v1278_v61 = vand.u32 4294901760, %v1277_v56 }
 0x188   :  { %v712_v0 = vsub.f32 %v710_v59, %v711_v62  ;;  %803 = vmatmul.f32.gmra.mxu1 %v711_v62 }
 0x18a   :  { %v713_v1 = vand.u32 4294901760, %v712_v0 }
 0x18c   :  { %714 = vmatmul.f32.gmra.mxu2 %v713_v1  ;;  %853 = vmatmul.f32.vlgmr.msrb.gmra.mxu3 %v701_v55 }
 0x18d   :  { %1100 = vmatpush.msrb.mxu3 %v4888_v25 }
 0x18e   :  { %885 = vmatmul.f32.vlgmr.msra.gmra.mxu0 %v4855_v17 }
 0x18f   :  { %1127 = vmatpush.msra.mxu0 %v4878_v22 }
 0x190   :  { %919 = vmatmul.f32.vlgmr.msra.gmra.mxu1 %v4835_v6 }
 0x191   :  { %1155 = vmatpush.msra.mxu1 %v4874_v21 }
 0x194   :  { %827 = vmatmul.f32.vlgmr.msrb.gmra.mxu2 %v701_v55  ;;  %857 = vmatmul.f32.gmra.mxu3 %v709_v57 }
 0x195   :  { %1062 = vmatpush.msrb.mxu2 %v4874_v21 }
 0x196   :  { %893 = vmatmul.f32.gmra.mxu0 %v4863_v19 }
 0x198   :  { %923 = vmatmul.f32.gmra.mxu1 %v4837_v7 }
 0x19c   :  { %831 = vmatmul.f32.gmra.mxu2 %v709_v57  ;;  %976 = vmatmul.f32.vlgmr.msra.gmra.mxu3 %v4847_v12 }
 0x19d   :  { %1213 = vmatpush.msra.mxu3 %v4874_v21 }
 0x19e   :  { %1006 = vmatmul.f32.vlgmr.msrb.gmra.mxu0 %v4835_v6 }
 0x19f   :  { %1241 = vmatpush.msrb.mxu0 %v1240_v48 }
 0x1a0   :  { %1032 = vmatmul.f32.vlgmr.msrb.gmra.mxu1 %v4835_v6 }
 0x1a1   :  { %1279 = vmatpush.msrb.mxu1 %v1278_v61 }
 0x1a4   :  { %947 = vmatmul.f32.vlgmr.msra.gmra.mxu2 %v4840_v9  ;;  %982 = vmatmul.f32.gmra.mxu3 %v4853_v15 }
 0x1a5   :  { %1187 = vmatpush.msra.mxu2 %v4882_v23 }
 0x1a6   :  { %1010 = vmatmul.f32.gmra.mxu0 %v4837_v7 }
 0x1a8   :  { %1036 = vmatmul.f32.gmra.mxu1 %v4837_v7 }
 0x1ac   :  { %952 = vmatmul.f32.gmra.mxu2 %v4843_v10 }
 0x1fb   :  { %v4958_v24 = vpop.f32.mrf.mxu0 }
 0x1fd   :  { %v4960_v28 = vpop.f32.mrf.mxu1 }
 0x1ff   :  { %v4956_v16 = vpop.f32.mrf.mxu3 }
 0x203   :  { %v4966_v31 = vpop.f32.mrf.mxu0 }
 0x205   :  { %v4968_v32 = vpop.f32.mrf.mxu1 }
 0x207   :  { %v4962_v29 = vpop.f32.mrf.mxu2  ;;  %v4964_v30 = vpop.f32.mrf.mxu3 }
 0x20b   :  { %v886_v35 = vpop.f32.mrf.mxu0 }
 0x20d   :  { %v920_v37 = vpop.f32.mrf.mxu1 }
 0x20e   :  { %v921_v44 = vadd.f32 %v920_v37, %v886_v35 }
 0x20f   :  { %v4970_v33 = vpop.f32.mrf.mxu2  ;;  %v4972_v34 = vpop.f32.mrf.mxu3 }
 0x213   :  { %v894_v39 = vpop.f32.mrf.mxu0 }
 0x215   :  { %v924_v41 = vpop.f32.mrf.mxu1 }
 0x216   :  { %v925_v54 = vadd.f32 %v924_v41, %v894_v39 }
 0x217   :  { %v4974_v36 = vpop.f32.mrf.mxu2  ;;  %v4976_v38 = vpop.f32.mrf.mxu3 }
 0x218   :  { %7376 = vst [vmem:[#allocation35_spill] sm:$0xff] %v4976_v38 }
 0x21b   :  { %v1007_v46 = vpop.f32.mrf.mxu0 }
 0x21d   :  { %v1033_v49 = vpop.f32.mrf.mxu1 }
 0x21f   :  { %v4978_v40 = vpop.f32.mrf.mxu2  ;;  %v977_v42 = vpop.f32.mrf.mxu3 }
 0x223   :  { %v1011_v63 = vpop.f32.mrf.mxu0 }
 0x225   :  { %v1037_v35 = vpop.f32.mrf.mxu1 }
 0x227   :  { %v948_v45 = vpop.f32.mrf.mxu2  ;;  %v983_v58 = vpop.f32.mrf.mxu3 }
 0x228   :  { %v949_v47 = vadd.f32 %v948_v45, %v921_v44 }
 0x22a   :  { %v978_v50 = vadd.f32 %v977_v42, %v949_v47 }
 0x22c   :  { %v1008_v52 = vadd.f32 %v1007_v46, %v978_v50 }
 0x22e   :  { %v1034_v55 = vadd.f32 %v1033_v49, %v1008_v52 }
 0x22f   :  { %v953_v57 = vpop.f32.mrf.mxu2 }
 0x230   :  { %v1041_v59 = vsel %vm132_vm0, %v1034_v55, 0  ;;  %v954_v60 = vadd.f32 %v953_v57, %v925_v54 }
 0x231   :  { %v1063_v62 = vand.u32 4294901760, %v1041_v59 }
 0x232   :  { %v984_v0 = vadd.f32 %v983_v58, %v954_v60 }
 0x233   :  { %v1064_v1 = vsub.f32 %v1041_v59, %v1063_v62  ;;  %1102 = vmatmul.f32.vlgmr.msrb.gmra.mxu3 %v1063_v62 }
 0x234   :  { %v1012_v37 = vadd.f32 %v1011_v63, %v984_v0  ;;  %1334 = vmatpush.msrb.mxu3 %v1240_v48 }
 0x235   :  { %1130 = vmatmul.f32.vlgmr.msra.gmra.mxu0 %v1064_v1  ;;  %v1065_v42 = vand.u32 4294901760, %v1064_v1 }
 0x236   :  { %v1038_v39 = vadd.f32 %v1037_v35, %v1012_v37  ;;  %1366 = vmatpush.msra.mxu0 %v1276_v53  ;;  %v2239_v37 = vld [vmem:[#allocation7 + $0x20] sm:$0xff] }
 0x237   :  { %1159 = vmatmul.f32.vlgmr.msra.gmra.mxu1 %v1065_v42  ;;  %v1066_v41 = vsub.f32 %v1064_v1, %v1065_v42 }
 0x238   :  { %v1044_v43 = vsel %vm132_vm0, %v1038_v39, 0  ;;  %1392 = vmatpush.msra.mxu1 %v1240_v48 }
 0x239   :  { %v1071_v44 = vand.u32 4294901760, %v1044_v43  ;;  %v1067_v45 = vand.u32 4294901760, %v1066_v41 }
 0x23b   :  { %1068 = vmatmul.f32.vlgmr.msrb.gmra.mxu2 %v1067_v45  ;;  %1106 = vmatmul.f32.gmra.mxu3 %v1071_v44  ;;  %v1072_v46 = vsub.f32 %v1044_v43, %v1071_v44 }
 0x23c   :  { %1306 = vmatpush.msrb.mxu2 %v1275_v51 }
 0x23d   :  { %1135 = vmatmul.f32.gmra.mxu0 %v1072_v46  ;;  %v1073_v47 = vand.u32 4294901760, %v1072_v46 }
 0x23f   :  { %1165 = vmatmul.f32.gmra.mxu1 %v1073_v47  ;;  %v1074_v49 = vsub.f32 %v1072_v46, %v1073_v47 }
 0x241   :  { %v1075_v50 = vand.u32 4294901760, %v1074_v49 }
 0x243   :  { %1076 = vmatmul.f32.gmra.mxu2 %v1075_v50  ;;  %1215 = vmatmul.f32.vlgmr.msra.gmra.mxu3 %v1063_v62 }
 0x244   :  { %1462 = vmatpush.msra.mxu3 %v4888_v25 }
 0x245   :  { %1247 = vmatmul.f32.vlgmr.msrb.gmra.mxu0 %v4855_v17 }
 0x246   :  { %1489 = vmatpush.msrb.mxu0 %v4878_v22 }
 0x247   :  { %1281 = vmatmul.f32.vlgmr.msrb.gmra.mxu1 %v4835_v6 }
 0x248   :  { %1517 = vmatpush.msrb.mxu1 %v4874_v21 }
 0x24b   :  { %1189 = vmatmul.f32.vlgmr.msra.gmra.mxu2 %v1063_v62  ;;  %1219 = vmatmul.f32.gmra.mxu3 %v1071_v44 }
 0x24c   :  { %1424 = vmatpush.msra.mxu2 %v4874_v21 }
 0x24d   :  { %1255 = vmatmul.f32.gmra.mxu0 %v4863_v19 }
 0x24f   :  { %1285 = vmatmul.f32.gmra.mxu1 %v4837_v7 }
 0x253   :  { %1193 = vmatmul.f32.gmra.mxu2 %v1071_v44  ;;  %1338 = vmatmul.f32.vlgmr.msrb.gmra.mxu3 %v4847_v12  ;;  %v2255_v44 = vand.u32 4294901760, %v2239_v37 }
 0x254   :  { %1575 = vmatpush.msrb.mxu3 %v4874_v21 }
 0x255   :  { %1368 = vmatmul.f32.vlgmr.msra.gmra.mxu0 %v4835_v6  ;;  %v2290_v47 = vsub.f32 %v2239_v37, %v2255_v44 }
 0x256   :  { %2256 = vmatpush.msra.mxu0 %v2255_v44 }
 0x257   :  { %1394 = vmatmul.f32.vlgmr.msra.gmra.mxu1 %v4835_v6  ;;  %v2291_v50 = vand.u32 4294901760, %v2290_v47 }
 0x25b   :  { %1309 = vmatmul.f32.vlgmr.msrb.gmra.mxu2 %v4840_v9  ;;  %1344 = vmatmul.f32.gmra.mxu3 %v4853_v15 }
 0x25c   :  { %1549 = vmatpush.msrb.mxu2 %v4882_v23 }
 0x25d   :  { %1372 = vmatmul.f32.gmra.mxu0 %v4837_v7 }
 0x25f   :  { %1398 = vmatmul.f32.gmra.mxu1 %v4837_v7 }
 0x263   :  { %1314 = vmatmul.f32.gmra.mxu2 %v4843_v10 }
 0x2b2   :  { %v5002_v51 = vpop.f32.mrf.mxu0 }
 0x2b4   :  { %v5004_v52 = vpop.f32.mrf.mxu1 }
 0x2b5   :  { %7377 = vst [vmem:[#allocation36_spill] sm:$0xff] %v5004_v52 }
 0x2b6   :  { %v5000_v48 = vpop.f32.mrf.mxu3 }
 0x2ba   :  { %v5010_v55 = vpop.f32.mrf.mxu0 }
 0x2bb   :  { %7379 = vst [vmem:[#allocation38_spill] sm:$0xff] %v5010_v55 }
 0x2bc   :  { %v5012_v56 = vpop.f32.mrf.mxu1 }
 0x2bd   :  { %7380 = vst [vmem:[#allocation39_spill] sm:$0xff] %v5012_v56 }
 0x2be   :  { %v5006_v53 = vpop.f32.mrf.mxu2  ;;  %v5008_v54 = vpop.f32.mrf.mxu3 }
 0x2bf   :  { %7378 = vst [vmem:[#allocation37_spill] sm:$0xff] %v5008_v54 }
 0x2c2   :  { %v1248_v59 = vpop.f32.mrf.mxu0 }
 0x2c4   :  { %v1282_v61 = vpop.f32.mrf.mxu1 }
 0x2c5   :  { %v1283_v42 = vadd.f32 %v1282_v61, %v1248_v59 }
 0x2c6   :  { %v5014_v57 = vpop.f32.mrf.mxu2  ;;  %v5016_v58 = vpop.f32.mrf.mxu3 }
 0x2c7   :  { %7381 = vst [vmem:[#allocation40_spill] sm:$0xff] %v5016_v58 }
 0x2ca   :  { %v1256_v63 = vpop.f32.mrf.mxu0 }
 0x2cc   :  { %v1286_v1 = vpop.f32.mrf.mxu1 }
 0x2cd   :  { %v1287_v58 = vadd.f32 %v1286_v1, %v1256_v63 }
 0x2ce   :  { %v5018_v60 = vpop.f32.mrf.mxu2  ;;  %v5020_v62 = vpop.f32.mrf.mxu3 }
 0x2cf   :  { %7382 = vst [vmem:[#allocation41_spill] sm:$0xff] %v5018_v60 }
 0x2d0   :  { %7383 = vst [vmem:[#allocation42_spill] sm:$0xff] %v5020_v62  ;;  %v2292_v62 = vsub.f32 %v2290_v47, %v2291_v50 }
 0x2d2   :  { %v1369_v41 = vpop.f32.mrf.mxu0  ;;  %v2293_v38 = vand.u32 4294901760, %v2292_v62  ;;  %v5080_v62 = vld [vmem:[#allocation3 + $0x10] sm:$0xff] }
 0x2d4   :  { %v1395_v45 = vpop.f32.mrf.mxu1  ;;  %2294 = vmatpush.msra.mxu1 %v2293_v38 }
 0x2d6   :  { %v5022_v0 = vpop.f32.mrf.mxu2  ;;  %v1339_v35 = vpop.f32.mrf.mxu3 }
 0x2d7   :  { %7384 = vst [vmem:[#allocation43_spill] sm:$0xff] %v5022_v0 }
 0x2da   :  { %v1373_v61 = vpop.f32.mrf.mxu0 }
 0x2de   :  { %v1310_v39 = vpop.f32.mrf.mxu2  ;;  %v1345_v55 = vpop.f32.mrf.mxu3 }
 0x2df   :  { %v1311_v43 = vadd.f32 %v1310_v39, %v1283_v42 }
 0x2e1   :  { %v1340_v46 = vadd.f32 %v1339_v35, %v1311_v43  ;;  %v1399_v35 = vpop.f32.mrf.mxu1  ;;  %v7214_v43 = vstv %s5039_s23 }
 0x2e3   :  { %v1370_v49 = vadd.f32 %v1369_v41, %v1340_v46 }
 0x2e5   :  { %v1396_v56 = vadd.f32 %v1395_v45, %v1370_v49  ;;  %v7195_v45 = vstv %s5048_s26  ;;  %v5100_v49 = vld [vmem:[#allocation3 + $0x20] sm:$0xff]  ;;  %s5186_s26 = sld [smem:[#allocation9 + $0x204]] }
 0x2e6   :  { %v1315_v60 = vpop.f32.mrf.mxu2 }
 0x2e7   :  { %v1403_v0 = vsel %vm132_vm0, %v1396_v56, 0  ;;  %v1316_v52 = vadd.f32 %v1315_v60, %v1287_v58  ;;  %v5078_v60 = vld [vmem:[#allocation3] sm:$0xff] }
 0x2e8   :  { %v1425_v59 = vand.u32 4294901760, %v1403_v0 }
 0x2e9   :  { %v1346_v54 = vadd.f32 %v1345_v55, %v1316_v52 }
 0x2ea   :  { %v1426_v42 = vsub.f32 %v1403_v0, %v1425_v59  ;;  %1464 = vmatmul.f32.vlgmr.msra.gmra.mxu3 %v1425_v59  ;;  %v7220_v0 = vstv %s5037_s3 }
 0x2eb   :  { %v1374_v39 = vadd.f32 %v1373_v61, %v1346_v54  ;;  %2349 = vmatpush.msra.mxu3 %v2255_v44  ;;  %v1604_v46 = vmul.f32 %v7220_v0, %v5078_v60  ;;  %v1678_v61 = vmul.f32 %v7195_v45, %v5080_v62  ;;  %7406 = sst [smem:[#allocation65_spill]] %s5186_s26  ;;  %v7412_v0 = vstv %s5090_s19 }
 0x2ec   :  { %1492 = vmatmul.f32.vlgmr.msrb.gmra.mxu0 %v1426_v42  ;;  %v1427_v37 = vand.u32 4294901760, %v1426_v42  ;;  %s5277_s19 = sld [smem:[#allocation9 + $0x304]] }
 0x2ed   :  { %v1400_v63 = vadd.f32 %v1399_v35, %v1374_v39  ;;  %2381 = vmatpush.msrb.mxu0 %v2291_v50  ;;  %v7211_v50 = vstv %s5042_s24 }
 0x2ee   :  { %1521 = vmatmul.f32.vlgmr.msrb.gmra.mxu1 %v1427_v37  ;;  %v1428_v1 = vsub.f32 %v1426_v42, %v1427_v37  ;;  %v7193_v42 = vstv %s5055_s7  ;;  %v1614_v39 = vmul.f32 %v7211_v50, %v5100_v49  ;;  %v7191_v37 = vstv %s5072_s14  ;;  %s5168_s14 = sld [smem:[#allocation9 + $0x281]] }
 0x2ef   :  { %v1406_v41 = vsel %vm132_vm0, %v1400_v63, 0  ;;  %2407 = vmatpush.msrb.mxu1 %v2255_v44  ;;  %v7196_v44 = vstv %s5044_s25  ;;  %v7192_v63 = vstv %s5074_s15  ;;  %s5162_s15 = sld [smem:[#allocation9 + $0x280]] }
 0x2f0   :  { %v1433_v56 = vand.u32 4294901760, %v1406_v41  ;;  %v1429_v58 = vand.u32 4294901760, %v1428_v1  ;;  %v5123_v1 = vld [vmem:[#allocation3 + $0x30] sm:$0xff]  ;;  %s5183_s7 = sld [smem:[#allocation9 + $0x301]] }
 0x2f2   :  { %1430 = vmatmul.f32.vlgmr.msra.gmra.mxu2 %v1429_v58  ;;  %1468 = vmatmul.f32.gmra.mxu3 %v1433_v56  ;;  %v1434_v52 = vsub.f32 %v1406_v41, %v1433_v56  ;;  %v7210_v41 = vstv %s5046_s5  ;;  %v1684_v58 = vmul.f32 %v7193_v42, %v5100_v49  ;;  %7419 = sst [smem:[#allocation71_spill]] %s5277_s19 }
 0x2f3   :  { %2321 = vmatpush.msra.mxu2 %v2290_v47  ;;  %v1608_v47 = vmul.f32 %v7214_v43, %v5080_v62 }
 0x2f4   :  { %1497 = vmatmul.f32.gmra.mxu0 %v1434_v52  ;;  %v1435_v38 = vand.u32 4294901760, %v1434_v52  ;;  %7404 = sst [smem:[#allocation63_spill]] %s5168_s14 }
 0x2f5   :  { %v1610_v35 = vadd.f32 %v1608_v47, %v1604_v46  ;;  %v1620_v46 = vmul.f32 %v7210_v41, %v5123_v1  ;;  %v7200_v47 = vstv %s5076_s16  ;;  %7403 = sst [smem:[#allocation62_spill]] %s5162_s15  ;;  %v7226_v43 = vstv %s5162_s15 }
 0x2f6   :  { %1527 = vmatmul.f32.gmra.mxu1 %v1435_v38  ;;  %v1436_v54 = vsub.f32 %v1434_v52, %v1435_v38  ;;  %v7202_v52 = vstv %s5060_s11  ;;  %v1746_v38 = vmul.f32 %v7191_v37, %v5078_v60  ;;  %v1756_v42 = vmul.f32 %v7200_v47, %v5100_v49  ;;  %s5170_s11 = sld [smem:[#allocation9 + $0x282]] }
 0x2f7   :  { %s5178_s16 = sld [smem:[#allocation9 + $0x300]] }
 0x2f8   :  { %v1437_v55 = vand.u32 4294901760, %v1436_v54  ;;  %v1750_v54 = vmul.f32 %v7192_v63, %v5080_v62  ;;  %v1690_v63 = vmul.f32 %v7202_v52, %v5123_v1  ;;  %s5262_s15 = sld [smem:[#allocation12 + $0x180]] }
 0x2fa   :  { %1438 = vmatmul.f32.gmra.mxu2 %v1437_v55  ;;  %1577 = vmatmul.f32.vlgmr.msrb.gmra.mxu3 %v1425_v59  ;;  %v1616_v55 = vadd.f32 %v1614_v39, %v1610_v35  ;;  %v7207_v35 = vstv %s5065_s0  ;;  %v1752_v39 = vadd.f32 %v1750_v54, %v1746_v38  ;;  %v7209_v38 = vstv %s5058_s30  ;;  %s5199_s0 = sld [smem:[#allocation9 + $0x380]] }
 0x2fb   :  { %2477 = vmatpush.msrb.mxu3 %v4888_v25 }
 0x2fc   :  { %2262 = vmatmul.f32.vlgmr.msra.gmra.mxu0 %v4855_v17  ;;  %v1622_v45 = vadd.f32 %v1620_v46, %v1616_v55  ;;  %7405 = sst [smem:[#allocation64_spill]] %s5170_s11  ;;  %v1758_v46 = vadd.f32 %v1756_v42, %v1752_v39  ;;  %v7217_v42 = vstv %s5103_s6  ;;  %v7219_v39 = vstv %s5111_s20 }
 0x2fd   :  { %2504 = vmatpush.msra.mxu0 %v4878_v22  ;;  %s5228_s20 = sld [smem:[#allocation9 + $0x205]] }
 0x2fe   :  { %2296 = vmatmul.f32.vlgmr.msra.gmra.mxu1 %v4835_v6 }
 0x2ff   :  { %2532 = vmatpush.msra.mxu1 %v4874_v21 }
 0x302   :  { %1551 = vmatmul.f32.vlgmr.msrb.gmra.mxu2 %v1425_v59  ;;  %1581 = vmatmul.f32.gmra.mxu3 %v1433_v56  ;;  %v1674_v59 = vmul.f32 %v7196_v44, %v5078_v60 }
 0x303   :  { %2439 = vmatpush.msrb.mxu2 %v4874_v21  ;;  %7409 = sst [smem:[#allocation68_spill]] %s5228_s20 }
 0x304   :  { %2270 = vmatmul.f32.gmra.mxu0 %v4863_v19 }
 0x306   :  { %2300 = vmatmul.f32.gmra.mxu1 %v4837_v7 }
 0x30a   :  { %1555 = vmatmul.f32.gmra.mxu2 %v1433_v56  ;;  %2353 = vmatmul.f32.vlgmr.msra.gmra.mxu3 %v4847_v12  ;;  %v1680_v56 = vadd.f32 %v1678_v61, %v1674_v59  ;;  %v5148_v59 = vld [vmem:[#allocation3 + $0x40] sm:$0xff]  ;;  %v7203_v61 = vstv %s5052_s27 }
 0x30b   :  { %2590 = vmatpush.msra.mxu3 %v4874_v21  ;;  %v1626_v44 = vmul.f32 %v7203_v61, %v5148_v59  ;;  %v1696_v55 = vmul.f32 %v7207_v35, %v5148_v59  ;;  %v7215_v61 = vstv %s5067_s1  ;;  %v7224_v35 = vstv %s5146_s29  ;;  %s5216_s1 = sld [smem:[#allocation9 + $0x283]] }
 0x30c   :  { %2383 = vmatmul.f32.vlgmr.msrb.gmra.mxu0 %v4835_v6  ;;  %v1686_v37 = vadd.f32 %v1684_v58, %v1680_v56  ;;  %v7206_v56 = vstv %s5084_s17  ;;  %v5172_v58 = vld [vmem:[#allocation3 + $0x50] sm:$0xff]  ;;  %s5194_s17 = sld [smem:[#allocation9 + $0x302]] }
 0x30d   :  { %v1762_v47 = vmul.f32 %v7206_v56, %v5123_v1  ;;  %v1628_v52 = vadd.f32 %v1626_v44, %v1622_v45  ;;  %v7222_v44 = vstv %s5086_s18  ;;  %v7223_v45 = vstv %s5140_s28  ;;  %s5235_s18 = sld [smem:[#allocation9 + $0x303]] }
 0x30e   :  { %2409 = vmatmul.f32.vlgmr.msrb.gmra.mxu1 %v4835_v6  ;;  %v1692_v54 = vadd.f32 %v1690_v63, %v1686_v37  ;;  %v1632_v37 = vmul.f32 %v7209_v38, %v5172_v58  ;;  %v1702_v38 = vmul.f32 %v7215_v61, %v5172_v58  ;;  %v1890_v63 = vmul.f32 %v7223_v45, %v5078_v60  ;;  %s5245_s29 = sld [smem:[#allocation9 + $0x382]] }
 0x30f   :  { %v1764_v41 = vadd.f32 %v1762_v47, %v1758_v46  ;;  %v1768_v47 = vmul.f32 %v7222_v44, %v5148_v59  ;;  %v1962_v44 = vmul.f32 %v7226_v43, %v5078_v60  ;;  %v7411_v45 = vstv %s5168_s14  ;;  %s5257_s14 = sld [smem:[#allocation9 + $0x284]] }
 0x310   :  { %v1698_v56 = vadd.f32 %v1696_v55, %v1692_v54  ;;  %v1818_v54 = vmul.f32 %v7217_v42, %v5078_v60  ;;  %v1822_v55 = vmul.f32 %v7219_v39, %v5080_v62  ;;  %v1894_v42 = vmul.f32 %v7224_v35, %v5080_v62 }
 0x311   :  { %7408 = sst [smem:[#allocation67_spill]] %s5216_s1  ;;  %v5230_v39 = vadd.f32 %v1632_v37, %v1628_v52  ;;  %v1966_v46 = vmul.f32 %v7411_v45, %v5080_v62  ;;  %v5252_v61 = vmul.f32 %v7412_v0, %v5172_v58  ;;  %v7413_v43 = vstv %s5114_s8 }
 0x312   :  { %2324 = vmatmul.f32.vlgmr.msra.gmra.mxu2 %v4840_v9  ;;  %2359 = vmatmul.f32.gmra.mxu3 %v4853_v15  ;;  %7407 = sst [smem:[#allocation66_spill]] %s5194_s17  ;;  %v5247_v37 = vadd.f32 %v1702_v38, %v1698_v56  ;;  %v1824_v50 = vadd.f32 %v1822_v55, %v1818_v54  ;;  %v5259_v45 = vadd.f32 %v1768_v47, %v1764_v41  ;;  %v7415_v0 = vstv %s5151_s10 }
 0x313   :  { %2564 = vmatpush.msra.mxu2 %v4882_v23  ;;  %7410 = sst [smem:[#allocation69_spill]] %s5235_s18  ;;  %v1896_v56 = vadd.f32 %v1894_v42, %v1890_v63  ;;  %v1900_v38 = vmul.f32 %v7415_v0, %v5100_v49  ;;  %v7416_v54 = vstv %s5170_s11  ;;  %v7418_v41 = vstv %s5183_s7 }
 0x314   :  { %2387 = vmatmul.f32.gmra.mxu0 %v4837_v7  ;;  %v1972_v55 = vmul.f32 %v7416_v54, %v5100_v49  ;;  %v2038_v47 = vmul.f32 %v7418_v41, %v5080_v62  ;;  %v1968_v52 = vadd.f32 %v1966_v46, %v1962_v44  ;;  %v7242_v63 = vstv %s5194_s17  ;;  %s5282_s10 = sld [smem:[#allocation9 + $0x383]] }
 0x315   :  { %7414 = sst [smem:[#allocation70_spill]] %s5257_s14  ;;  %v7420_v35 = vstv %s5121_s21  ;;  %v380_v44 = vadd.f32 %v4912_v2, %v4916_v4  ;;  %v1902_v46 = vadd.f32 %v1900_v38, %v1896_v56  ;;  %v7422_v0 = vstv %s5156_s9 }
 0x316   :  { %2413 = vmatmul.f32.gmra.mxu1 %v4837_v7  ;;  %s5289_s11 = sld [smem:[#allocation9 + $0x285]]  ;;  %v1906_v42 = vmul.f32 %v7422_v0, %v5123_v1  ;;  %v7424_v15 = vstv %s5199_s0  ;;  %v7425_v9 = vstv %s5206_s12  ;;  %v1974_v4 = vadd.f32 %v1972_v55, %v1968_v52 }
 0x317   :  { %s5300_s21 = sld [smem:[#allocation9 + $0x305]]  ;;  %v2106_v41 = vmul.f32 %v7424_v15, %v5078_v60  ;;  %v2110_v2 = vmul.f32 %v7425_v9, %v5080_v62  ;;  %v7426_v56 = vstv %s5216_s1  ;;  %v7249_v0 = vstv %s5235_s18 }
 0x318   :  { %v1978_v38 = vmul.f32 %v7426_v56, %v5123_v1  ;;  %s5313_s9 = sld [smem:[#allocation9 + $0x384]]  ;;  %v7248_v9 = vstv %s5257_s14  ;;  %v1908_v52 = vadd.f32 %v1906_v42, %v1902_v46  ;;  %v7429_v55 = vstv %s5186_s26 }
 0x319   :  { %s5320_s17 = sld [smem:[#allocation12 + $0x200]]  ;;  %v1912_v56 = vmul.f32 %v7429_v55, %v5148_v59  ;;  %v2050_v15 = vmul.f32 %v7249_v0, %v5123_v1  ;;  %v1984_v42 = vmul.f32 %v7248_v9, %v5148_v59  ;;  %v384_v46 = vadd.f32 %v4920_v8, %v4924_v13 }
 0x31a   :  { %2329 = vmatmul.f32.gmra.mxu2 %v4843_v10  ;;  %v1828_v10 = vmul.f32 %v7413_v43, %v5100_v49  ;;  %v7417_v43 = vstv %s5178_s16  ;;  %s5327_s1 = sld [smem:[#allocation9 + $0x385]]  ;;  %v7431_v55 = vstv %s5228_s20 }
 0x31b   :  { %v2034_v23 = vmul.f32 %v7417_v43, %v5078_v60  ;;  %v1834_v43 = vmul.f32 %v7420_v35, %v5123_v1  ;;  %v2044_v35 = vmul.f32 %v7242_v63, %v5100_v49  ;;  %v408_v60 = vadd.f32 %v4914_v3, %v380_v44  ;;  %s5341_s26 = sld [smem:[#allocation12 + $0x300]] }
 0x31c   :  { %v1830_v54 = vadd.f32 %v1828_v10, %v1824_v50  ;;  %7421 = sst [smem:[#allocation72_spill]] %s5289_s11  ;;  %v7250_v10 = vstv %s5245_s29  ;;  %v2112_v63 = vadd.f32 %v2110_v2, %v2106_v41  ;;  %v7262_v44 = vstv %s5282_s10 }
 0x31d   :  { %v2040_v50 = vadd.f32 %v2038_v47, %v2034_v23  ;;  %7423 = sst [smem:[#allocation73_spill]] %s5300_s21  ;;  %v7428_v23 = vstv %s5126_s2  ;;  %v2116_v3 = vmul.f32 %v7250_v10, %v5100_v49  ;;  %v7251_v49 = vstv %s5289_s11  ;;  %v5363_v10 = vld [vmem:[#allocation3 + $0x8] sm:$0xff] }
 0x31e   :  { %7427 = sst [smem:[#allocation74_spill]] %s5313_s9  ;;  %v1840_v47 = vmul.f32 %v7428_v23, %v5148_v59  ;;  %v1836_v62 = vadd.f32 %v1834_v43, %v1830_v54  ;;  %v1980_v54 = vadd.f32 %v1978_v38, %v1974_v4  ;;  %v7252_v43 = vstv %s5277_s19 }
 0x31f   :  { %s5329_s2 = sld [smem:[#allocation12 + $0x280]]  ;;  %v2046_v23 = vadd.f32 %v2044_v35, %v2040_v50  ;;  %v7430_v50 = vstv %s5131_s22  ;;  %v437_v2 = vadd.f32 %v4918_v5, %v408_v60  ;;  %v1914_v38 = vadd.f32 %v1912_v56, %v1908_v52  ;;  %v5365_v5 = vld [vmem:[#allocation3 + $0x18] sm:$0xff] }
 0x320   :  { %v1846_v41 = vmul.f32 %v7430_v50, %v5172_v58  ;;  %s5351_s18 = sld [smem:[#allocation12 + $0x380]]  ;;  %v1842_v4 = vadd.f32 %v1840_v47, %v1836_v62  ;;  %v1918_v9 = vmul.f32 %v7431_v55, %v5172_v58  ;;  %v2056_v13 = vmul.f32 %v7252_v43, %v5148_v59 }
 0x321   :  { %v2052_v8 = vadd.f32 %v2050_v15, %v2046_v23  ;;  %v2118_v50 = vadd.f32 %v2116_v3, %v2112_v63  ;;  %v2122_v0 = vmul.f32 %v7262_v44, %v5123_v1  ;;  %v1986_v47 = vadd.f32 %v1984_v42, %v1980_v54  ;;  %s7437_s11 = sld [smem:[#allocation48_spill]] }
 0x322   :  { %v1990_v60 = vmul.f32 %v7251_v49, %v5172_v58  ;;  %v7260_v15 = vstv %s5300_s21  ;;  %v7261_v62 = vstv %s5313_s9  ;;  %v413_v52 = vadd.f32 %v4922_v11, %v384_v46  ;;  %v5392_v46 = vld [vmem:[#allocation3 + $0x38] sm:$0xff]  ;;  %s7436_s21 = sld [smem:[#allocation46_spill]] }
 0x323   :  { %v467_v56 = vadd.f32 %v4930_v20, %v437_v2  ;;  %v1776_v1 = vadd.f32 %v5252_v61, %v5259_v45  ;;  %v1848_v23 = vadd.f32 %v1846_v41, %v1842_v4  ;;  %v7259_v3 = vstv %s5327_s1  ;;  %v5390_v45 = vld [vmem:[#allocation3 + $0x28] sm:$0xff]  ;;  %s7438_s9 = sld [smem:[#allocation47_spill]] }
 0x324   :  { %v7432_v54 = vstv %s5037_s3  ;;  %v7433_v55 = vstv %s5039_s23  ;;  %v2058_v43 = vadd.f32 %v2056_v13, %v2052_v8  ;;  %v2062_v11 = vmul.f32 %v7260_v15, %v5172_v58  ;;  %v5394_v41 = vld [vmem:[#allocation3 + $0x48] sm:$0xff]  ;;  %s7434_s3 = sld [smem:[#allocation44_spill]] }
 0x325   :  { %v1605_v42 = vmul.f32 %v7432_v54, %v5363_v10  ;;  %v1609_v49 = vmul.f32 %v7433_v55, %v5365_v5  ;;  %v2124_v20 = vadd.f32 %v2122_v0, %v2118_v50  ;;  %v2128_v61 = vmul.f32 %v7261_v62, %v5148_v59  ;;  %s7435_s23 = sld [smem:[#allocation45_spill]] }
 0x326   :  { %v1920_v2 = vadd.f32 %v1918_v9, %v1914_v38  ;;  %v1992_v4 = vadd.f32 %v1990_v60, %v1986_v47  ;;  %v5399_v0 = vadd.f32 %v4928_v18, %v467_v56  ;;  %v2134_v59 = vmul.f32 %v7259_v3, %v5172_v58  ;;  %s7439_s19 = sld [smem:[#allocation49_spill]]  ;;  %v5406_v9 = vld [vmem:[#allocation3 + $0x58] sm:$0xff] }
 0x327   :  { %v443_v54 = vadd.f32 %v4926_v14, %v413_v52  ;;  %s7440_s14 = sld [smem:[#allocation50_spill]]  ;;  %v1611_v38 = vadd.f32 %v1609_v49, %v1605_v42  ;;  %v7442_v47 = vstv %s5042_s24  ;;  %v7443_v18 = vstv %s5046_s5 }
 0x328   :  { %s7441_s20 = sld [smem:[#allocation51_spill]]  ;;  %v1615_v60 = vmul.f32 %v7442_v47, %v5390_v45  ;;  %v1621_v56 = vmul.f32 %v7443_v18, %v5392_v46  ;;  %v7444_v58 = vstv %s5052_s27  ;;  %v2064_v3 = vadd.f32 %v2062_v11, %v2058_v43 }
 0x329   :  { %v1627_v55 = vmul.f32 %v7444_v58, %v5394_v41  ;;  %v2130_v14 = vadd.f32 %v2128_v61, %v2124_v20  ;;  %v7445_v52 = vstv %s5044_s25  ;;  %v7447_v47 = vstv %s5058_s30  ;;  %s7451_s24 = sld [smem:[#allocation52_spill]] }
 0x32a   :  { %v1675_v15 = vmul.f32 %v7445_v52, %v5363_v10  ;;  %v7446_v49 = vstv %s7434_s3  ;;  %v5426_v62 = vmul.f32 %v7447_v47, %v5406_v9  ;;  %v7449_v58 = vstv %s7436_s21  ;;  %s7453_s25 = sld [smem:[#allocation53_spill]] }
 0x32b   :  { %v1679_v42 = vmul.f32 %v7446_v49, %v5365_v5  ;;  %v7448_v18 = vstv %s7435_s23  ;;  %v1691_v43 = vmul.f32 %v7449_v58, %v5392_v46  ;;  %v7450_v11 = vstv %s7437_s11  ;;  %s7458_s5 = sld [smem:[#allocation56_spill]] }
 0x32c   :  { %v1685_v44 = vmul.f32 %v7448_v18, %v5390_v45  ;;  %v5437_v20 = vmul.f32 %v7450_v11, %v5394_v41  ;;  %v7452_v61 = vstv %s7438_s9  ;;  %v7454_v49 = vstv %s7439_s19  ;;  %s7465_s27 = sld [smem:[#allocation59_spill]] }
 0x32d   :  { %v1638_v52 = vmul.f32 %v7452_v61, %v5399_v0  ;;  %v5445_v47 = vmul.f32 %v7454_v49, %v5406_v9  ;;  %v7455_v50 = vstv %s7440_s14  ;;  %v7457_v8 = vstv %s5069_s13  ;;  %s7470_s30 = sld [smem:[#allocation54_spill]] }
 0x32e   :  { %v1747_v18 = vmul.f32 %v7455_v50, %v5363_v10  ;;  %v7456_v13 = vstv %s7441_s20  ;;  %v1708_v11 = vmul.f32 %v7457_v8, %v5399_v0  ;;  %v7459_v63 = vstv %s5098_s4  ;;  %s5496_s11 = sld [smem:[#allocation12 + $0x1]] }
 0x32f   :  { %v1751_v58 = vmul.f32 %v7456_v13, %v5365_v5  ;;  %v1780_v35 = vmul.f32 %v7459_v63, %v5399_v0  ;;  %v7460_v61 = vstv %s5262_s15  ;;  %v1617_v7 = vadd.f32 %v1615_v60, %v1611_v38  ;;  %s7471_s14 = sld [smem:[#allocation55_spill]] }
 0x330   :  { %v1852_v12 = vmul.f32 %v7460_v61, %v5399_v0  ;;  %v7461_v49 = vstv %s5320_s17  ;;  %v7462_v50 = vstv %s5329_s2  ;;  %v2136_v6 = vadd.f32 %v2134_v59, %v2130_v14  ;;  %s7473_s19 = sld [smem:[#allocation62_spill]] }
 0x331   :  { %v1924_v19 = vmul.f32 %v7461_v49, %v5399_v0  ;;  %v1996_v21 = vmul.f32 %v7462_v50, %v5399_v0  ;;  %v1681_v22 = vadd.f32 %v1679_v42, %v1675_v15  ;;  %v7463_v13 = vstv %s5341_s26  ;;  %s5508_s20 = sld [smem:[#allocation12 + $0x81]] }
 0x332   :  { %v2068_v17 = vmul.f32 %v7463_v13, %v5399_v0  ;;  %v7464_v8 = vstv %s5351_s18  ;;  %v7466_v25 = vstv %s7451_s24  ;;  %v7467_v38 = vstv %s7453_s25  ;;  %s7476_s21 = sld [smem:[#allocation60_spill]] }
 0x333   :  { %v2140_v63 = vmul.f32 %v7464_v8, %v5399_v0  ;;  %v1757_v61 = vmul.f32 %v7466_v25, %v5390_v45  ;;  %v1763_v60 = vmul.f32 %v7467_v38, %v5392_v46  ;;  %v5481_v49 = vadd.f32 %v1638_v52, %v5230_v39  ;;  %s5515_s3 = sld [smem:[#allocation12 + $0x101]] }
 0x334   :  { %v1753_v50 = vadd.f32 %v1751_v58, %v1747_v18  ;;  %v7468_v15 = vstv %s5103_s6  ;;  %v7469_v14 = vstv %s7458_s5  ;;  %v5490_v13 = vadd.f32 %v1708_v11, %v5247_v37  ;;  %s7475_s6 = sld [smem:[#allocation63_spill]] }
 0x335   :  { %v1819_v59 = vmul.f32 %v7468_v15, %v5363_v10  ;;  %v1823_v42 = vmul.f32 %v7469_v14, %v5365_v5  ;;  %v5492_v8 = vadd.f32 %v1780_v35, %v1776_v1  ;;  %v5494_v25 = vadd.f32 %v1852_v12, %v1848_v23  ;;  %s7481_s23 = sld [smem:[#allocation57_spill]] }
 0x336   :  { %v1623_v38 = vadd.f32 %v1621_v56, %v1617_v7  ;;  %v5498_v39 = vadd.f32 %v1924_v19, %v1920_v2  ;;  %v5500_v52 = vadd.f32 %v1996_v21, %v1992_v4  ;;  %v7472_v18 = vstv %s5140_s28  ;;  %s5523_s28 = sld [smem:[#allocation12 + $0x181]] }
 0x337   :  { %v1891_v58 = vmul.f32 %v7472_v18, %v5363_v10  ;;  %v7474_v37 = vstv %s7465_s27  ;;  %v5510_v12 = vadd.f32 %v2068_v17, %v2064_v3  ;;  %v5512_v7 = vadd.f32 %v2140_v63, %v2136_v6  ;;  %s7483_s24 = sld [smem:[#allocation58_spill]] }
 0x338   :  { %v1895_v35 = vmul.f32 %v7474_v37, %v5365_v5  ;;  %v471_v19 = vadd.f32 %v4932_v26, %v443_v54  ;;  %v1687_v21 = vadd.f32 %v1685_v44, %v1681_v22  ;;  %v1759_v1 = vadd.f32 %v1757_v61, %v1753_v50  ;;  %s5534_s25 = sld [smem:[#allocation12 + $0x201]] }
 0x339   :  { %v7477_v23 = vstv %s7470_s30  ;;  %v1825_v4 = vadd.f32 %v1823_v42, %v1819_v59  ;;  %v7478_v56 = vstv %s5114_s8  ;;  %v1629_v6 = vadd.f32 %v1627_v55, %v1623_v38  ;;  %s7486_s8 = sld [smem:[#allocation64_spill]] }
 0x33a   :  { %v1769_v2 = vmul.f32 %v7477_v23, %v5394_v41  ;;  %v1829_v17 = vmul.f32 %v7478_v56, %v5390_v45  ;;  %v7479_v3 = vstv %s7471_s14  ;;  %v7480_v22 = vstv %s7473_s19  ;;  %s5545_s5 = sld [smem:[#allocation12 + $0x281]] }
 0x33b   :  { %v1775_v26 = vmul.f32 %v7479_v3, %v5406_v9  ;;  %v1963_v44 = vmul.f32 %v7480_v22, %v5363_v10  ;;  %v7482_v54 = vstv %s7475_s6  ;;  %v1897_v63 = vadd.f32 %v1895_v35, %v1891_v58  ;;  %s7488_s27 = sld [smem:[#allocation61_spill]] }
 0x33c   :  { %v1967_v11 = vmul.f32 %v7482_v54, %v5365_v5  ;;  %v7484_v61 = vstv %s7476_s21  ;;  %v7485_v15 = vstv %s5178_s16  ;;  %v7487_v59 = vstv %s5183_s7  ;;  %s7491_s30 = sld [smem:[#allocation66_spill]] }
 0x33d   :  { %v1901_v50 = vmul.f32 %v7484_v61, %v5390_v45  ;;  %v2035_v55 = vmul.f32 %v7485_v15, %v5363_v10  ;;  %v2039_v14 = vmul.f32 %v7487_v59, %v5365_v5  ;;  %v5548_v42 = vadd.f32 %v4934_v27, %v471_v19  ;;  %s5556_s16 = sld [smem:[#allocation12 + $0x301]] }
 0x33e   :  { %v1693_v38 = vadd.f32 %v1691_v43, %v1687_v21  ;;  %v7489_v18 = vstv %s5199_s0  ;;  %v7490_v37 = vstv %s5206_s12  ;;  %v1765_v23 = vadd.f32 %v1763_v60, %v1759_v1  ;;  %s5564_s7 = sld [smem:[#allocation12 + $0x381]] }
 0x33f   :  { %v2107_v58 = vmul.f32 %v7489_v18, %v5363_v10  ;;  %v2111_v35 = vmul.f32 %v7490_v37, %v5365_v5  ;;  %v1831_v56 = vadd.f32 %v1829_v17, %v1825_v4  ;;  %v7492_v3 = vstv %s7481_s23  ;;  %s5572_s12 = sld [smem:[#allocation12 + $0x2]] }
 0x340   :  { %v1835_v22 = vmul.f32 %v7492_v3, %v5392_v46  ;;  %v7493_v27 = vstv %s7483_s24  ;;  %v1635_v10 = vadd.f32 %v5426_v62, %v1629_v6  ;;  %v1969_v43 = vadd.f32 %v1967_v11, %v1963_v44  ;;  %s7495_s0 = sld [smem:[#allocation65_spill]] }
 0x341   :  { %v1841_v19 = vmul.f32 %v7493_v27, %v5394_v41  ;;  %v7494_v5 = vstv %s7486_s8  ;;  %v742_v60 = vadd.f32 %v4956_v16, %v4962_v29  ;;  %v1903_v1 = vadd.f32 %v1901_v50, %v1897_v63  ;;  %s7497_s14 = sld [smem:[#allocation67_spill]] }
 0x342   :  { %v1973_v21 = vmul.f32 %v7494_v5, %v5390_v45  ;;  %v7496_v4 = vstv %s7488_s27  ;;  %v2041_v54 = vadd.f32 %v2039_v14, %v2035_v55  ;;  %v7498_v61 = vstv %s7491_s30  ;;  %s5580_s19 = sld [smem:[#allocation12 + $0x82]] }
 0x343   :  { %v1907_v17 = vmul.f32 %v7496_v4, %v5392_v46  ;;  %v2045_v62 = vmul.f32 %v7498_v61, %v5390_v45  ;;  %v7499_v6 = vstv %s7438_s9  ;;  %v1699_v11 = vadd.f32 %v5437_v20, %v1693_v38  ;;  %s7500_s6 = sld [smem:[#allocation69_spill]] }
 0x344   :  { %v1639_v44 = vmul.f32 %v7499_v6, %v5548_v42  ;;  %v2113_v16 = vadd.f32 %v2111_v35, %v2107_v58  ;;  %v7501_v29 = vstv %s5245_s29  ;;  %s5589_s21 = sld [smem:[#allocation12 + $0x102]]  ;;  %v7502_v50 = vstv %s5069_s13 }
 0x345   :  { %v2117_v63 = vmul.f32 %v7501_v29, %v5390_v45  ;;  %v1709_v15 = vmul.f32 %v7502_v50, %v5548_v42  ;;  %v1771_v55 = vadd.f32 %v1769_v2, %v1765_v23  ;;  %v7503_v59 = vstv %s5098_s4  ;;  %s5597_s9 = sld [smem:[#allocation12 + $0x182]] }
 0x346   :  { %v1781_v14 = vmul.f32 %v7503_v59, %v5548_v42  ;;  %v1837_v18 = vadd.f32 %v1835_v22, %v1831_v56  ;;  %v7504_v20 = vstv %s7495_s0  ;;  %v1975_v58 = vadd.f32 %v1973_v21, %v1969_v43  ;;  %s5606_s29 = sld [smem:[#allocation12 + $0x202]] }
 0x347   :  { %v1913_v38 = vmul.f32 %v7504_v20, %v5394_v41  ;;  %v7505_v45 = vstv %s7497_s14  ;;  %v770_v35 = vadd.f32 %v4958_v24, %v742_v60  ;;  %s7506_s13 = sld [smem:[#allocation68_spill]]  ;;  %v1909_v2 = vadd.f32 %v1907_v17, %v1903_v1 }
 0x348   :  { %v1979_v37 = vmul.f32 %v7505_v45, %v5392_v46  ;;  %v2047_v23 = vadd.f32 %v2045_v62, %v2041_v54  ;;  %s7508_s4 = sld [smem:[#allocation70_spill]]  ;;  %v746_v22 = vadd.f32 %v4964_v30, %v4970_v33  ;;  %v1705_v27 = vadd.f32 %v5445_v47, %v1699_v11 }
 0x349   :  { %v7507_v3 = vstv %s7500_s6  ;;  %s5613_s23 = sld [smem:[#allocation12 + $0x282]]  ;;  %v7509_v43 = vstv %s5131_s22  ;;  %v2119_v24 = vadd.f32 %v2117_v63, %v2113_v16  ;;  %v7511_v21 = vstv %s5282_s10 }
 0x34a   :  { %v2051_v56 = vmul.f32 %v7507_v3, %v5392_v46  ;;  %v1847_v5 = vmul.f32 %v7509_v43, %v5406_v9  ;;  %s7510_s24 = sld [smem:[#allocation71_spill]]  ;;  %v2123_v60 = vmul.f32 %v7511_v21, %v5392_v46  ;;  %v5624_v1 = vadd.f32 %v1639_v44, %v1635_v10 }
 0x34b   :  { %s5622_s8 = sld [smem:[#allocation12 + $0x302]]  ;;  %v1777_v4 = vadd.f32 %v1775_v26, %v1771_v55  ;;  %v1843_v17 = vadd.f32 %v1841_v19, %v1837_v18  ;;  %v7513_v30 = vstv %s5262_s15  ;;  %v1981_v61 = vadd.f32 %v1979_v37, %v1975_v58 }
 0x34c   :  { %s7512_s27 = sld [smem:[#allocation74_spill]]  ;;  %v5629_v33 = vmul.f32 %v7513_v30, %v5548_v42  ;;  %v799_v10 = vadd.f32 %v4960_v28, %v770_v35  ;;  %v1915_v26 = vadd.f32 %v1913_v38, %v1909_v2  ;;  %v2053_v19 = vadd.f32 %v2051_v56, %v2047_v23 }
 0x34d   :  { %s5631_s30 = sld [smem:[#allocation12 + $0x382]]  ;;  %v7514_v47 = vstv %s7506_s13  ;;  %v775_v11 = vadd.f32 %v4966_v31, %v746_v22  ;;  %v5648_v16 = vadd.f32 %v1709_v15, %v1705_v27  ;;  %v2125_v29 = vadd.f32 %v2123_v60, %v2119_v24 }
 0x34e   :  { %v1919_v54 = vmul.f32 %v7514_v47, %v5406_v9  ;;  %v7515_v62 = vstv %s7508_s4  ;;  %s5640_s10 = sld [smem:[#allocation12 + $0x3]]  ;;  %v829_v50 = vadd.f32 %v4974_v36, %v799_v10  ;;  %v5656_v55 = vadd.f32 %v1781_v14, %v1777_v4 }
 0x34f   :  { %v1985_v46 = vmul.f32 %v7515_v62, %v5394_v41  ;;  %s7516_s22 = sld [smem:[#allocation72_spill]]  ;;  %v1849_v59 = vadd.f32 %v1847_v5, %v1843_v17  ;;  %v7520_v18 = vstv %s5320_s17  ;;  %v1104_v15 = vadd.f32 %v5000_v48, %v5006_v53  ;;  %v7527_v17 = vld [vmem:[#allocation37_spill] sm:$0xff] }
 0x350   :  { %v7517_v6 = vstv %s7510_s24  ;;  %s7518_s15 = sld [smem:[#allocation73_spill]]  ;;  %v1925_v31 = vmul.f32 %v7520_v18, %v5548_v42  ;;  %v7522_v14 = vstv %s5329_s2  ;;  %v1921_v37 = vadd.f32 %v1919_v54, %v1915_v26 }
 0x351   :  { %v2057_v44 = vmul.f32 %v7517_v6, %v5394_v41  ;;  %s5646_s0 = sld [smem:[#allocation10]]  ;;  %v1987_v20 = vadd.f32 %v1985_v46, %v1981_v61  ;;  %v1997_v38 = vmul.f32 %v7522_v14, %v5548_v42  ;;  %v7524_v48 = vstv %s5341_s26  ;;  %v7529_v6 = vld [vmem:[#allocation36_spill] sm:$0xff] }
 0x352   :  { %v7519_v63 = vstv %s7512_s27  ;;  %s5654_s14 = sld [smem:[#allocation13]]  ;;  %v2069_v53 = vmul.f32 %v7524_v48, %v5548_v42  ;;  %v805_v2 = vadd.f32 %v4968_v32, %v775_v11  ;;  %v7525_v3 = vstv %s5327_s1 }
 0x353   :  { %v2129_v28 = vmul.f32 %v7519_v63, %v5394_v41  ;;  %s5663_s6 = sld [smem:[#allocation12 + $0x83]]  ;;  %v2059_v35 = vadd.f32 %v2057_v44, %v2053_v19  ;;  %v2135_v56 = vmul.f32 %v7525_v3, %v5406_v9  ;;  %v7526_v22 = vstv %s5351_s18 }
 0x354   :  { %s5674_s17 = sld [smem:[#allocation12 + $0x103]]  ;;  %v2141_v27 = vmul.f32 %v7526_v22, %v5548_v42  ;;  %v5689_v43 = vadd.f32 %v4972_v34, %v829_v50  ;;  %v1643_v5 = vstv %s5496_s11  ;;  %v1713_v24 = vstv %s5508_s20  ;;  %v7533_v22 = vld [vmem:[#allocation40_spill] sm:$0xff] }
 0x355   :  { %v7521_v41 = vstv %s7516_s22  ;;  %s5680_s13 = sld [smem:[#allocation10 + $0x1]]  ;;  %v2131_v23 = vadd.f32 %v2129_v28, %v2125_v29  ;;  %v833_v32 = vadd.f32 %v4978_v40, %v805_v2  ;;  %v1132_v21 = vadd.f32 %v5002_v51, %v1104_v15  ;;  %v7530_v28 = vld [vmem:[#allocation38_spill] sm:$0xff] }
 0x356   :  { %v1991_v36 = vmul.f32 %v7521_v41, %v5406_v9  ;;  %v7523_v58 = vstv %s7518_s15  ;;  %s5691_s26 = sld [smem:[#allocation13 + $0x1]]  ;;  %v1785_v60 = vstv %s5515_s3  ;;  %v1857_v4 = vstv %s5523_s28 }
 0x357   :  { %v2063_v45 = vmul.f32 %v7523_v58, %v5406_v9  ;;  %s5697_s1 = sld [smem:[#allocation10 + $0x2]]  ;;  %v1108_v34 = vadd.f32 %v7527_v17, %v5014_v57  ;;  %v1929_v47 = vstv %s5534_s25  ;;  %v2001_v54 = vstv %s5545_s5  ;;  %v7528_v57 = vld [vmem:[#allocation35_spill] sm:$0xff] }
 0x358   :  { %v1993_v9 = vadd.f32 %v1991_v36, %v1987_v20  ;;  %s5703_s18 = sld [smem:[#allocation13 + $0x2]]  ;;  %v2073_v61 = vstv %s5556_s16  ;;  %v2137_v40 = vadd.f32 %v2135_v56, %v2131_v23  ;;  %v1644_v51 = vmul.f32 %v1643_v5, %v5689_v43  ;;  %v7531_v36 = vld [vmem:[#allocation41_spill] sm:$0xff] }
 0x359   :  { %v2065_v30 = vadd.f32 %v2063_v45, %v2059_v35  ;;  %s5708_s2 = sld [smem:[#allocation15]]  ;;  %v1714_v62 = vmul.f32 %v1713_v24, %v5689_v43  ;;  %v2145_v46 = vstv %s5564_s7  ;;  %v1786_v10 = vmul.f32 %v1785_v60, %v5689_v43 }
 0x35a   :  { %s1662_s11 = sadd.f32 %s5654_s14, %s5646_s0  ;;  %v1858_v26 = vmul.f32 %v1857_v4, %v5689_v43  ;;  %v5718_v19 = vadd.f32 %v7528_v57, %v833_v32  ;;  %v1161_v44 = vadd.f32 %v7529_v6, %v1132_v21  ;;  %v1930_v11 = vmul.f32 %v1929_v47, %v5689_v43 }
 0x35b   :  { %s5721_s20 = sld [smem:[#allocation10 + $0x3]]  ;;  %v2002_v29 = vmul.f32 %v2001_v54, %v5689_v43  ;;  %v2074_v63 = vmul.f32 %v2073_v61, %v5689_v43  ;;  %v1137_v50 = vadd.f32 %v7530_v28, %v1108_v34  ;;  %v1855_v15 = vadd.f32 %v5629_v33, %v1849_v59 }
 0x35c   :  { %s5727_s3 = sld [smem:[#allocation13 + $0x3]]  ;;  %v5730_v20 = vadd.f32 %v1925_v31, %v1921_v37  ;;  %v2146_v41 = vmul.f32 %v2145_v46, %v5689_v43  ;;  %v1191_v14 = vadd.f32 %v7531_v36, %v1161_v44  ;;  %v1999_v58 = vadd.f32 %v1997_v38, %v1993_v9 }
 0x35d   :  { %s5734_s28 = sld [smem:[#allocation15 + $0x1]]  ;;  %v2071_v45 = vadd.f32 %v2069_v53, %v2065_v30  ;;  %v5736_v35 = vadd.f32 %v2141_v27, %v2137_v40  ;;  %v1646_v48 = vadd.f32 %v1644_v51, %v5481_v49  ;;  %v5744_v33 = vadd.f32 %v1714_v62, %v5490_v13  ;;  %v7534_v27 = vld [vmem:[#allocation43_spill] sm:$0xff] }
 0x35e   :  { %s1732_s25 = sadd.f32 %s5691_s26, %s5680_s13  ;;  %v5747_v59 = vadd.f32 %v1786_v10, %v5492_v8  ;;  %v5750_v31 = vadd.f32 %v1858_v26, %v5494_v25  ;;  %v1645_v38 = vmul.f32 %v1643_v5, %v5718_v19  ;;  %v5756_v49 = vadd.f32 %v1930_v11, %v5498_v39  ;;  %v7532_v8 = vld [vmem:[#allocation39_spill] sm:$0xff] }
 0x35f   :  { %s5753_s5 = sld [smem:[#allocation12 + $0x183]]  ;;  %v5759_v53 = vadd.f32 %v2002_v29, %v5500_v52  ;;  %v5762_v13 = vadd.f32 %v2074_v63, %v5510_v12  ;;  %v1167_v23 = vadd.f32 %v7532_v8, %v1137_v50  ;;  %v2148_v25 = vadd.f32 %v2146_v41, %v5512_v7 }
 0x360   :  { %s1804_s16 = sadd.f32 %s5703_s18, %s5697_s1  ;;  %v1715_v3 = vmul.f32 %v1713_v24, %v5718_v19  ;;  %v1787_v56 = vmul.f32 %v1785_v60, %v5718_v19  ;;  %v5771_v39 = vadd.f32 %v7533_v22, %v1191_v14  ;;  %v1859_v52 = vmul.f32 %v1857_v4, %v5718_v19 }
 0x361   :  { %s5773_s7 = sld [smem:[#allocation12 + $0x203]]  ;;  %v1931_v12 = vmul.f32 %v1929_v47, %v5718_v19  ;;  %v1649_v7 = vstv %s5572_s12  ;;  %v1195_v5 = vadd.f32 %v7534_v27, %v1167_v23  ;;  %v1647_v32 = vadd.f32 %v1645_v38, %v5624_v1 }
 0x362   :  { %s5781_s4 = sld [smem:[#allocation10 + $0x4]]  ;;  %v2003_v21 = vmul.f32 %v2001_v54, %v5718_v19  ;;  %v2075_v9 = vmul.f32 %v2073_v61, %v5718_v19  ;;  %v5787_v60 = vmul.f32 %v2145_v46, %v5718_v19  ;;  %v1719_v4 = vstv %s5580_s19  ;;  %v7535_v61 = vld [vmem:[#allocation42_spill] sm:$0xff] }
 0x363   :  { %s5789_s24 = sld [smem:[#allocation13 + $0x4]]  ;;  %v1791_v17 = vstv %s5589_s21  ;;  %v1863_v34 = vstv %s5597_s9  ;;  %v1935_v30 = vstv %s5606_s29  ;;  %v1650_v47 = vmul.f32 %v1649_v7, %v5771_v39 }
 0x364   :  { %v2007_v40 = vstv %s5613_s23  ;;  %v2079_v51 = vstv %s5622_s8  ;;  %v2151_v62 = vstv %s5631_s30  ;;  %s5801_s27 = sld [smem:[#allocation12 + $0x283]]  ;;  %v1717_v1 = vadd.f32 %v1715_v3, %v5648_v16 }
 0x365   :  { %v1789_v54 = vadd.f32 %v1787_v56, %v5656_v55  ;;  %v5806_v46 = vadd.f32 %v7535_v61, %v1195_v5  ;;  %s5810_s19 = sld [smem:[#allocation10 + $0x5]]  ;;  %v1861_v57 = vadd.f32 %v1859_v52, %v1855_v15  ;;  %v1720_v6 = vmul.f32 %v1719_v4, %v5771_v39 }
 0x366   :  { %v1792_v44 = vmul.f32 %v1791_v17, %v5771_v39  ;;  %v1864_v11 = vmul.f32 %v1863_v34, %v5771_v39  ;;  %s5815_s21 = sld [smem:[#allocation13 + $0x5]]  ;;  %v1936_v16 = vmul.f32 %v1935_v30, %v5771_v39  ;;  %v2008_v55 = vmul.f32 %v2007_v40, %v5771_v39 }
 0x367   :  { %v2080_v63 = vmul.f32 %v2079_v51, %v5771_v39  ;;  %v2152_v28 = vmul.f32 %v2151_v62, %v5771_v39  ;;  %s5823_s9 = sld [smem:[#allocation12 + $0x303]]  ;;  %v5828_v15 = vadd.f32 %v2003_v21, %v1999_v58  ;;  %v5830_v41 = vadd.f32 %v2075_v9, %v2071_v45 }
 0x368   :  { %v5832_v36 = vadd.f32 %v1650_v47, %v1646_v48  ;;  %s5834_s29 = sld [smem:[#allocation10 + $0x6]]  ;;  %v1651_v14 = vmul.f32 %v1649_v7, %v5806_v46  ;;  %v1721_v38 = vmul.f32 %v1719_v4, %v5806_v46  ;;  %v1794_v58 = vadd.f32 %v1792_v44, %v5747_v59 }
 0x369   :  { %v5739_v2 = vpop.f32.mrf.mxu0  ;;  %s5840_s23 = sld [smem:[#allocation12 + $0x383]]  ;;  %v1866_v45 = vadd.f32 %v1864_v11, %v5750_v31  ;;  %v1865_v48 = vmul.f32 %v1863_v34, %v5806_v46  ;;  %v1938_v23 = vadd.f32 %v1936_v16, %v5756_v49  ;;  %v2010_v3 = vadd.f32 %v2008_v55, %v5759_v53 }
 0x36a   :  { %s5846_s8 = sld [smem:[#allocation13 + $0x6]]  ;;  %v5851_v56 = vadd.f32 %v2080_v63, %v5762_v13  ;;  %v5860_v59 = vmul.f32 %v1935_v30, %v5806_v46  ;;  %v5863_v31 = vmul.f32 %v2007_v40, %v5806_v46  ;;  %v5866_v49 = vmul.f32 %v2079_v51, %v5806_v46 }
 0x36b   :  { %v5779_v24 = vpop.f32.mrf.mxu1  ;;  %v5869_v53 = vmul.f32 %v2151_v62, %v5806_v46  ;;  %s5871_s22 = sld [smem:[#allocation10 + $0x7]]  ;;  %v5873_v13 = vadd.f32 %v1651_v14, %v1647_v32  ;;  %v1655_v27 = vstv %s5640_s10  ;;  %v5888_v5 = vstv %s1662_s11 }
 0x36c   :  { %s5880_s15 = sld [smem:[#allocation13 + $0x7]]  ;;  %v1669_v32 = vstv %s5708_s2  ;;  %v1725_v9 = vstv %s5663_s6  ;;  %v5897_v4 = vstv %s1732_s25  ;;  %v1797_v30 = vstv %s5674_s17 }
 0x36d   :  { %v1465_v18 = vpop.f32.mrf.mxu3  ;;  %s2020_s30 = sadd.f32 %s5815_s21, %s5810_s19  ;;  %v5908_v47 = vstv %s1804_s16  ;;  %v1869_v40 = vstv %s5753_s5  ;;  %v7279_v51 = vstv %s5773_s7 }
 0x36e   :  { %s5900_s12 = sld [smem:[#allocation15 + $0x2]] }
 0x36f   :  { %s5911_s0 = sld [smem:[#allocation15 + $0x3]]  ;;  %v7282_v61 = vstv %s5840_s23  ;;  %v5932_v44 = vstv %s2020_s30 }
 0x370   :  { %s5916_s14 = sld [smem:[#allocation15 + $0x4]] }
 0x371   :  { %v5821_v50 = vpop.f32.mrf.mxu0  ;;  %s7536_s13 = sadd.f32 %s5727_s3, %s5721_s20 }
 0x372   :  { %s7537_s26 = sadd.f32 %s5789_s24, %s5781_s4 }
 0x373   :  { %s2092_s1 = sadd.f32 %s5846_s8, %s5834_s29 }
 0x374   :  { %s5948_s18 = sld [smem:[#allocation15 + $0x5]] }
 0x375   :  { %v1431_v37 = vpop.f32.mrf.mxu2  ;;  %v5808_v26 = vpop.f32.mrf.mxu3  ;;  %s5959_s11 = sld [smem:[#allocation15 + $0x6]] }
 0x376   :  { %v1466_v10 = vadd.f32 %v1465_v18, %v1431_v37  ;;  %v5826_v18 = vadd.f32 %v1931_v12, %v5730_v20  ;;  %v1793_v37 = vmul.f32 %v1791_v17, %v5806_v46  ;;  %v1722_v20 = vadd.f32 %v1720_v6, %v5744_v33  ;;  %v5855_v33 = vpop.f32.mrf.mxu1  ;;  %s2164_s20 = sadd.f32 %s5880_s15, %s5871_s22 }
 0x377   :  { %v5882_v12 = vadd.f32 %v1865_v48, %v1861_v57  ;;  %v1739_v17 = vstv %s5734_s28  ;;  %v5925_v57 = vstv %s7536_s13  ;;  %v5930_v6 = vstv %s7537_s26  ;;  %s5970_s3 = sld [smem:[#allocation15 + $0x7]] }
 0x378   :  { %v1494_v8 = vadd.f32 %v5739_v2, %v1466_v10  ;;  %v5853_v2 = vadd.f32 %v2152_v28, %v2148_v25  ;;  %v5875_v25 = vadd.f32 %v1721_v38, %v1717_v1  ;;  %v5877_v22 = vadd.f32 %v1793_v37, %v1789_v54  ;;  %s7541_s17 = sld [smem:[#allocation76_spill]] }
 0x379   :  { %v5902_v34 = vpop.f32.mrf.mxu0  ;;  %v7281_v1 = vstv %s5801_s27  ;;  %v7280_v54 = vstv %s5823_s9  ;;  %s6153_s2 = sld [smem:[#allocation9]] }
 0x37a   :  { %v1523_v52 = vadd.f32 %v5779_v24, %v1494_v8  ;;  %s6155_s28 = sld [smem:[#allocation9 + $0x1]] }
 0x37b   :  { %s6157_s25 = sld [smem:[#allocation9 + $0x2]] }
 0x37c   :  { %s6159_s5 = sld [smem:[#allocation9 + $0x80]] }
 0x37d   :  { %v1439_v29 = vpop.f32.mrf.mxu2  ;;  %v1578_v21 = vpop.f32.mrf.mxu3  ;;  %s6161_s16 = sld [smem:[#allocation9 + $0x3]] }
 0x37e   :  { %v1470_v10 = vadd.f32 %v5808_v26, %v1439_v29  ;;  %v2297_v55 = vpop.f32.mrf.mxu1  ;;  %s6165_s4 = sld [smem:[#allocation9 + $0x4]] }
 0x37f   :  { %s6167_s24 = sld [smem:[#allocation9 + $0x82]] }
 0x380   :  { %s6173_s19 = sld [smem:[#allocation12]] }
 0x381   :  { %s6175_s21 = sld [smem:[#allocation9 + $0x84]] }
 0x382   :  { %7557 = sst [smem:[#allocation44_spill]] %s6159_s5 }
 0x383   :  { %7558 = sst [smem:[#allocation45_spill]] %s6161_s16 }
 0x384   :  { %7560 = sst [smem:[#allocation48_spill]] %s6165_s4 }
 0x385   :  { %v1552_v7 = vpop.f32.mrf.mxu2  ;;  %7561 = sst [smem:[#allocation47_spill]] %s6167_s24 }
 0x386   :  { %v1553_v24 = vadd.f32 %v1552_v7, %v1523_v52  ;;  %v1499_v7 = vadd.f32 %v5821_v50, %v1470_v10  ;;  %s6179_s29 = sld [smem:[#allocation12 + $0x80]] }
 0x387   :  { %7564 = sst [smem:[#allocation51_spill]] %s6175_s21 }
 0x388   :  { %v5914_v62 = vadd.f32 %v1578_v21, %v1553_v24  ;;  %s6183_s8 = sld [smem:[#allocation9 + $0x101]] }
 0x389   :  { %s6185_s30 = sld [smem:[#allocation9 + $0x102]] }
 0x38a   :  { %v1656_v11 = vmul.f32 %v1655_v27, %v5914_v62  ;;  %v1726_v16 = vmul.f32 %v1725_v9, %v5914_v62  ;;  %v1798_v26 = vmul.f32 %v1797_v30, %v5914_v62  ;;  %v1870_v29 = vmul.f32 %v1869_v40, %v5914_v62  ;;  %s6187_s22 = sld [smem:[#allocation9 + $0x103]] }
 0x38b   :  { %v1942_v63 = vmul.f32 %v7279_v51, %v5914_v62  ;;  %v2014_v28 = vmul.f32 %v7281_v1, %v5914_v62  ;;  %v2086_v14 = vmul.f32 %v7280_v54, %v5914_v62  ;;  %v2158_v38 = vmul.f32 %v7282_v61, %v5914_v62  ;;  %s6195_s15 = sld [smem:[#allocation9 + $0x104]] }
 0x38c   :  { %v1658_v37 = vadd.f32 %v1656_v11, %v5832_v36  ;;  %v1728_v8 = vadd.f32 %v1726_v16, %v1722_v20  ;;  %v1800_v48 = vadd.f32 %v1798_v26, %v1794_v58  ;;  %v1872_v52 = vadd.f32 %v1870_v29, %v1866_v45  ;;  %v1582_v26 = vpop.f32.mrf.mxu3  ;;  %v5982_v29 = vpop.f32.mrf.mxu0  ;;  %s6207_s13 = sld [smem:[#allocation9 + $0x180]] }
 0x38d   :  { %v1944_v21 = vadd.f32 %v1942_v63, %v1938_v23  ;;  %v2016_v24 = vadd.f32 %v2014_v28, %v2010_v3  ;;  %v5968_v51 = vstv %s2092_s1  ;;  %v1556_v54 = vpop.f32.mrf.mxu2  ;;  %v2088_v45 = vadd.f32 %v2086_v14, %v5851_v56  ;;  %s6212_s26 = sld [smem:[#allocation9 + $0x181]] }
 0x38e   :  { %v1664_v1 = vadd.f32 %v5888_v5, %v1658_v37  ;;  %v1734_v61 = vadd.f32 %v5897_v4, %v1728_v8  ;;  %v1806_v36 = vadd.f32 %v5908_v47, %v1800_v48  ;;  %v1878_v20 = vadd.f32 %v5925_v57, %v1872_v52  ;;  %s6216_s1 = sld [smem:[#allocation9 + $0x182]] }
 0x38f   :  { %v1950_v50 = vadd.f32 %v5930_v6, %v1944_v21  ;;  %v2022_v58 = vadd.f32 %v5932_v44, %v2016_v24  ;;  %v2160_v23 = vadd.f32 %v2158_v38, %v5853_v2  ;;  %v5980_v16 = vstv %s2164_s20  ;;  %7566 = sst [smem:[#allocation53_spill]] %s6185_s30 }
 0x390   :  { %v1666_v3 = vmax.f32 %v1664_v1, 0.0  ;;  %v1736_v10 = vmax.f32 %v1734_v61, 0.0  ;;  %v1808_v11 = vmax.f32 %v1806_v36, 0.0  ;;  %v1939_v63 = vadd.f32 %v5860_v59, %v5826_v18  ;;  %v2301_v36 = vpop.f32.mrf.mxu1  ;;  %7567 = sst [smem:[#allocation56_spill]] %s6187_s22 }
 0x391   :  { %v1811_v28 = vstv %s5900_s12  ;;  %v1883_v37 = vstv %s5911_s0  ;;  %v1955_v8 = vstv %s5916_s14  ;;  %v1880_v1 = vmax.f32 %v1878_v20, 0.0  ;;  %s6169_s12 = sld [smem:[#allocation9 + $0x5]] }
 0x392   :  { %v1670_v56 = vmul.f32 %v1669_v32, %v1666_v3  ;;  %v1740_v2 = vmul.f32 %v1739_v17, %v1736_v10  ;;  %v1529_v61 = vadd.f32 %v5855_v33, %v1499_v7  ;;  %v1952_v14 = vmax.f32 %v1950_v50, 0.0  ;;  %7568 = sst [smem:[#allocation59_spill]] %s6195_s15 }
 0x393   :  { %v2024_v38 = vmax.f32 %v2022_v58, 0.0  ;;  %v2094_v48 = vadd.f32 %v5968_v51, %v2088_v45  ;;  %v2166_v18 = vadd.f32 %v5980_v16, %v2160_v23  ;;  %v1812_v52 = vmul.f32 %v1811_v28, %v1808_v11  ;;  %s6197_s0 = sld [smem:[#allocation9 + $0x105]] }
 0x394   :  { %v1742_v59 = vadd.f32 %v1740_v2, %v1670_v56  ;;  %v2027_v21 = vstv %s5948_s18  ;;  %v1557_v24 = vadd.f32 %v1556_v54, %v1529_v61  ;;  %v2011_v20 = vadd.f32 %v5863_v31, %v5828_v15  ;;  %s6199_s14 = sld [smem:[#allocation12 + $0x100]] }
 0x395   :  { %v2083_v33 = vadd.f32 %v5866_v49, %v5830_v41  ;;  %v2099_v7 = vstv %s5959_s11  ;;  %v2171_v50 = vstv %s5970_s3  ;;  %v1884_v45 = vmul.f32 %v1883_v37, %v1880_v1  ;;  %v2325_v3 = vpop.f32.mrf.mxu2  ;;  %s6218_s18 = sld [smem:[#allocation9 + $0x183]] }
 0x396   :  { %v1814_v58 = vadd.f32 %v1812_v52, %v1742_v59  ;;  %v2298_v54 = vadd.f32 %v2297_v55, %v5902_v34  ;;  %v6008_v23 = vadd.f32 %v1582_v26, %v1557_v24  ;;  %v1956_v15 = vmul.f32 %v1955_v8, %v1952_v14  ;;  %v2354_v55 = vpop.f32.mrf.mxu3  ;;  %v2384_v59 = vpop.f32.mrf.mxu0  ;;  %s6223_s11 = sld [smem:[#allocation9 + $0x184]] }
 0x397   :  { %v2028_v31 = vmul.f32 %v2027_v21, %v2024_v38  ;;  %v2096_v10 = vmax.f32 %v2094_v48, 0.0  ;;  %v2168_v41 = vmax.f32 %v2166_v18, 0.0  ;;  %v7538_v2 = vstv %s5773_s7  ;;  %s6163_s7 = sld [smem:[#allocation9 + $0x81]] }
 0x398   :  { %v1886_v49 = vadd.f32 %v1884_v45, %v1814_v58  ;;  %v1657_v11 = vmul.f32 %v1655_v27, %v6008_v23  ;;  %v1727_v56 = vmul.f32 %v1725_v9, %v6008_v23  ;;  %v1799_v34 = vmul.f32 %v1797_v30, %v6008_v23  ;;  %7562 = sst [smem:[#allocation49_spill]] %s6169_s12 }
 0x399   :  { %v1871_v26 = vmul.f32 %v1869_v40, %v6008_v23  ;;  %v1943_v1 = vmul.f32 %v7538_v2, %v6008_v23  ;;  %v7539_v61 = vstv %s5801_s27  ;;  %v7540_v38 = vstv %s5823_s9  ;;  %s6171_s27 = sld [smem:[#allocation9 + $0x83]] }
 0x39a   :  { %v2015_v14 = vmul.f32 %v7539_v61, %v6008_v23  ;;  %v2087_v27 = vmul.f32 %v7540_v38, %v6008_v23  ;;  %v1958_v48 = vadd.f32 %v1956_v15, %v1886_v49  ;;  %v1659_v9 = vadd.f32 %v1657_v11, %v5873_v13  ;;  %v2410_v13 = vpop.f32.mrf.mxu1  ;;  %s6177_s9 = sld [smem:[#allocation9 + $0x85]] }
 0x39b   :  { %v1729_v18 = vadd.f32 %v1727_v56, %v5875_v25  ;;  %v1801_v30 = vadd.f32 %v1799_v34, %v5877_v22  ;;  %v2100_v40 = vmul.f32 %v2099_v7, %v2096_v10  ;;  %v1873_v52 = vadd.f32 %v1871_v26, %v5882_v12  ;;  %7569 = sst [smem:[#allocation54_spill]] %s6197_s0 }
 0x39c   :  { %v1945_v24 = vadd.f32 %v1943_v1, %v1939_v63  ;;  %v2017_v58 = vadd.f32 %v2015_v14, %v2011_v20  ;;  %v2030_v45 = vadd.f32 %v2028_v31, %v1958_v48  ;;  %v1665_v2 = vadd.f32 %v5888_v5, %v1659_v9  ;;  %7570 = sst [smem:[#allocation55_spill]] %s6223_s11 }
 0x39d   :  { %v1735_v61 = vadd.f32 %v5897_v4, %v1729_v18  ;;  %v1807_v15 = vadd.f32 %v5908_v47, %v1801_v30  ;;  %v2172_v25 = vmul.f32 %v2171_v50, %v2168_v41  ;;  %v1879_v22 = vadd.f32 %v5925_v57, %v1873_v52  ;;  %v2330_v56 = vpop.f32.mrf.mxu2  ;;  %7559 = sst [smem:[#allocation46_spill]] %s6163_s7 }
 0x39e   :  { %v1951_v10 = vadd.f32 %v5930_v6, %v1945_v24  ;;  %v2089_v49 = vadd.f32 %v2087_v27, %v2083_v33  ;;  %v2102_v12 = vadd.f32 %v2100_v40, %v2030_v45  ;;  %v1667_v63 = vmax.f32 %v1665_v2, 0.0  ;;  %v2601_v45 = vld [vmem:[#allocation7 + $0x28] sm:$0xff]  ;;  %s6234_s20 = sld [smem:[#allocation9 + $0x185]] }
 0x39f   :  { %v1737_v20 = vmax.f32 %v1735_v61, 0.0  ;;  %v1809_v31 = vmax.f32 %v1807_v15, 0.0  ;;  %v2149_v5 = vadd.f32 %v5787_v60, %v5736_v35  ;;  %v6053_v4 = vstv %s7541_s17  ;;  %7563 = sst [smem:[#allocation50_spill]] %s6171_s27 }
 0x3a0   :  { %7542 = vst [vmem:[#allocation37_spill] sm:$0xff] %v6053_v4  ;;  %v2023_v47 = vadd.f32 %v5932_v44, %v2017_v58  ;;  %v2326_v57 = vadd.f32 %v2325_v3, %v2298_v54  ;;  %v2174_v41 = vadd.f32 %v2172_v25, %v2102_v12  ;;  %v1671_v6 = vmul.f32 %v1669_v32, %v1667_v63  ;;  %7565 = sst [smem:[#allocation52_spill]] %s6177_s9 }
 0x3a1   :  { %v1741_v33 = vmul.f32 %v1739_v17, %v1737_v20  ;;  %v1881_v11 = vmax.f32 %v1879_v22, 0.0  ;;  %v2155_v34 = vadd.f32 %v5869_v53, %v2149_v5  ;;  %v1953_v35 = vmax.f32 %v1951_v10, 0.0  ;;  %v2360_v17 = vpop.f32.mrf.mxu3  ;;  %s6237_s3 = sld [smem:[#allocation12 + $0x180]] }
 0x3a2   :  { %v2095_v60 = vadd.f32 %v5968_v51, %v2089_v49  ;;  %v2302_v26 = vadd.f32 %v2301_v36, %v5982_v29  ;;  %v2178_v1 = vadd.f32 %v6053_v4, %v2174_v41  ;;  %v1813_v44 = vmul.f32 %v1811_v28, %v1809_v31  ;;  %v2388_v29 = vpop.f32.mrf.mxu0  ;;  %s6239_s10 = sld [smem:[#allocation9 + $0x200]] }
 0x3a3   :  { %v1743_v14 = vadd.f32 %v1741_v33, %v1671_v6  ;;  %v7543_v54 = vstv %s5840_s23  ;;  %v2025_v3 = vmax.f32 %v2023_v47, 0.0  ;;  %v2355_v38 = vadd.f32 %v2354_v55, %v2326_v57  ;;  %v2414_v55 = vpop.f32.mrf.mxu1  ;;  %s6181_s23 = sld [smem:[#allocation9 + $0x100]] }
 0x3a4   :  { %v2159_v32 = vmul.f32 %v7543_v54, %v6008_v23  ;;  %v2331_v27 = vadd.f32 %v2330_v56, %v2302_v26  ;;  %v4462_v48 = vmul.f32 -1.442695, %v2178_v1  ;;  %v1885_v51 = vmul.f32 %v1883_v37, %v1881_v11  ;;  %s6244_s6 = sld [smem:[#allocation9 + $0x201]] }
 0x3a5   :  { %v1815_v53 = vadd.f32 %v1813_v44, %v1743_v14  ;;  %v2097_v36 = vmax.f32 %v2095_v60, 0.0  ;;  %v2385_v18 = vadd.f32 %v2384_v59, %v2355_v38  ;;  %v1957_v40 = vmul.f32 %v1955_v8, %v1953_v35  ;;  %s6252_s17 = sld [smem:[#allocation9 + $0x280]] }
 0x3a6   :  { %v2161_v9 = vadd.f32 %v2159_v32, %v2155_v34  ;;  %v2361_v30 = vadd.f32 %v2360_v17, %v2331_v27  ;;  %4575 = vpow2.f32 %v4462_v48  ;;  %v2029_v37 = vmul.f32 %v2027_v21, %v2025_v3  ;;  %v7544_v48 = vld [vmem:[#allocation34_spill] sm:$0xff] }
 0x3a7   :  { %v1887_v28 = vadd.f32 %v1885_v51, %v1815_v53  ;;  %v2411_v24 = vadd.f32 %v2410_v13, %v2385_v18  ;;  %v2617_v15 = vand.u32 4294901760, %v2601_v45  ;;  %v2101_v10 = vmul.f32 %v2099_v7, %v2097_v36  ;;  %v7545_v51 = vld [vmem:[#allocation29_spill] sm:$0xff]  ;;  %7571 = sst [smem:[#allocation62_spill]] %s6237_s3 }
 0x3a8   :  { %v2167_v52 = vadd.f32 %v5980_v16, %v2161_v9  ;;  %v2389_v58 = vadd.f32 %v2388_v29, %v2361_v30  ;;  %v7546_v29 = vld [vmem:[#allocation32_spill] sm:$0xff]  ;;  %7572 = sst [smem:[#allocation63_spill]] %s6239_s10 }
 0x3a9   :  { %v1959_v2 = vadd.f32 %v1957_v40, %v1887_v28  ;;  %v2418_v59 = vsel %vm132_vm0, %v2411_v24, 0  ;;  %2618 = vmatpush.msrb.mxu0 %v2617_v15  ;;  %v2652_v16 = vsub.f32 %v2601_v45, %v2617_v15  ;;  %v7547_v28 = vld [vmem:[#allocation23_spill] sm:$0xff]  ;;  %v7550_v45 = vld [vmem:[#allocation24_spill] sm:$0xff] }
 0x3aa   :  { %v2169_v61 = vmax.f32 %v2167_v52, 0.0  ;;  %v2415_v25 = vadd.f32 %v2414_v55, %v2389_v58  ;;  %v6079_v49 = vand.u32 4294901760, %v2418_v59  ;;  %v7548_v52 = vld [vmem:[#allocation31_spill] sm:$0xff] }
 0x3ab   :  { %v2031_v22 = vadd.f32 %v2029_v37, %v1959_v2  ;;  %v2653_v31 = vand.u32 4294901760, %v2652_v16  ;;  %7573 = sst [smem:[#allocation60_spill]] %s6252_s17 }
 0x3ac   :  { %v2173_v8 = vmul.f32 %v2171_v50, %v2169_v61  ;;  %v2421_v13 = vsel %vm132_vm0, %v2415_v25, 0  ;;  %v4576_v12 = vpop.eup %4575  ;;  %v2441_v21 = vsub.f32 %v2418_v59, %v6079_v49  ;;  %2479 = vmatmul.f32.vlgmr.msrb.gmra.mxu3 %v6079_v49 }
 0x3ad   :  { %v2103_v63 = vadd.f32 %v2101_v10, %v2031_v22  ;;  %v6086_v20 = vand.u32 4294901760, %v2421_v13  ;;  %v2186_v5 = vadd.f32 1.0, %v4576_v12  ;;  %2711 = vmatpush.msrb.mxu3 %v2617_v15  ;;  %v2654_v41 = vsub.f32 %v2652_v16, %v2653_v31 }
 0x3ae   :  { %v2442_v47 = vand.u32 4294901760, %v2441_v21  ;;  %2507 = vmatmul.f32.vlgmr.msra.gmra.mxu0 %v2441_v21 }
 0x3af   :  { %v2175_v7 = vadd.f32 %v2173_v8, %v2103_v63  ;;  %v2449_v57 = vsub.f32 %v2421_v13, %v6086_v20  ;;  %4577 = vrcp.f32 %v2186_v5  ;;  %2743 = vmatpush.msra.mxu0 %v2653_v31  ;;  %v2655_v11 = vand.u32 4294901760, %v2654_v41 }
 0x3b0   :  { %v2443_v6 = vsub.f32 %v2441_v21, %v2442_v47  ;;  %2536 = vmatmul.f32.vlgmr.msra.gmra.mxu1 %v2442_v47  ;;  %v2199_v44 = vand.u32 2147483648, %v2186_v5  ;;  %v2197_v17 = vand.u32 2147483647, %v2186_v5  ;;  %vm2193_vm2 = vweird.f32 %v2186_v5 }
 0x3b1   :  { %v2179_v50 = vadd.f32 %v6053_v4, %v2175_v7  ;;  %v2450_v33 = vand.u32 4294901760, %v2449_v57  ;;  %2656 = vmatpush.msrb.mxu1 %v2655_v11 }
 0x3b2   :  { %v2444_v34 = vand.u32 4294901760, %v2443_v6  ;;  %v2200_v27 = vor.u32 1.1754944e-38, %v2199_v44  ;;  %vm2198_vm4 = vcmp.eq.f32.partialorder %v2197_v17, 8.507059e+37 }
 0x3b3   :  { %v4463_v56 = vmul.f32 -1.442695, %v2179_v50  ;;  %2769 = vmatpush.msra.mxu1 %v2617_v15  ;;  %v2451_v35 = vsub.f32 %v2449_v57, %v2450_v33  ;;  %v7551_v15 = vld [vmem:[#allocation27_spill] sm:$0xff] }
 0x3b4   :  { %2445 = vmatmul.f32.vlgmr.msrb.gmra.mxu2 %v2444_v34  ;;  %2483 = vmatmul.f32.gmra.mxu3 %v6086_v20 }
 0x3b5   :  { %4579 = vpow2.f32 %v4463_v56  ;;  %v4578_v60 = vpop.eup %4577  ;;  %2683 = vmatpush.msrb.mxu2 %v2652_v16  ;;  %v2452_v14 = vand.u32 4294901760, %v2451_v35  ;;  %v7552_v16 = vld [vmem:[#allocation25_spill] sm:$0xff] }
 0x3b6   :  { %v2189_v26 = vmul.f32 %v4578_v60, %v2186_v5  ;;  %2512 = vmatmul.f32.gmra.mxu0 %v2449_v57  ;;  %vm2194_vm1 = vweird.f32 %v4578_v60 }
 0x3b7   :  { %vm2195_vm3 = vmor %vm2193_vm2, %vm2194_vm1 }
 0x3b8   :  { %v2190_v1 = vsub.f32 1.0, %v2189_v26  ;;  %2542 = vmatmul.f32.gmra.mxu1 %v2450_v33 }
 0x3ba   :  { %v2191_v32 = vmul.f32 %v4578_v60, %v2190_v1 }
 0x3bb   :  { %v4580_v54 = vpop.eup %4579 }
 0x3bc   :  { %v2187_v3 = vadd.f32 1.0, %v4580_v54  ;;  %v2192_v38 = vadd.f32 %v4578_v60, %v2191_v32  ;;  %2453 = vmatmul.f32.gmra.mxu2 %v2452_v14  ;;  %2592 = vmatmul.f32.vlgmr.msra.gmra.mxu3 %v6079_v49 }
 0x3bd   :  { %2839 = vmatpush.msra.mxu3 %v7544_v48 }
 0x3be   :  { %4581 = vrcp.f32 %v2187_v3  ;;  %v2196_v53 = vsel %vm2195_vm3, %v4578_v60, %v2192_v38  ;;  %2624 = vmatmul.f32.vlgmr.msrb.gmra.mxu0 %v7545_v51  ;;  %v2212_v58 = vand.u32 2147483647, %v2187_v3  ;;  %vm2208_vm7 = vweird.f32 %v2187_v3 }
 0x3bf   :  { %v2201_v9 = vsel %vm2198_vm4, %v2200_v27, %v2196_v53  ;;  %2866 = vmatpush.msrb.mxu0 %v7546_v29  ;;  %v2963_v53 = vld [vmem:[#allocation7 + $0x30] sm:$0xff] }
 0x3c0   :  { %v2218_v36 = vmul.f32 %v2201_v9, %v5399_v0  ;;  %v2223_v18 = vmul.f32 %v2201_v9, %v5689_v43  ;;  %v2228_v30 = vmul.f32 %v2201_v9, %v5771_v39  ;;  %2658 = vmatmul.f32.vlgmr.msrb.gmra.mxu1 %v7547_v28  ;;  %v2233_v40 = vmul.f32 %v2201_v9, %v5914_v62  ;;  %v7549_v43 = vld [vmem:[#allocation30_spill] sm:$0xff] }
 0x3c1   :  { %2894 = vmatpush.msrb.mxu1 %v7548_v52  ;;  %v2214_v39 = vand.u32 2147483648, %v2187_v3  ;;  %vm2213_vm9 = vcmp.eq.f32.partialorder %v2212_v58, 8.507059e+37 }
 0x3c2   :  { %2221 = vst.msk [vmem:[#allocation16] sm:$0xff] %vm2220_vm5, %v2218_v36 }
 0x3c3   :  { %2226 = vst.msk [vmem:[#allocation16 + $0x10] sm:$0xff] %vm2220_vm5, %v2223_v18  ;;  %v2215_v37 = vor.u32 1.1754944e-38, %v2214_v39 }
 0x3c4   :  { %v4582_v55 = vpop.eup %4581  ;;  %2231 = vst.msk [vmem:[#allocation16 + $0x20] sm:$0xff] %vm2220_vm5, %v2228_v30  ;;  %2566 = vmatmul.f32.vlgmr.msra.gmra.mxu2 %v6079_v49  ;;  %2596 = vmatmul.f32.gmra.mxu3 %v6086_v20 }
 0x3c5   :  { %v2204_v24 = vmul.f32 %v4582_v55, %v2187_v3  ;;  %2236 = vst.msk [vmem:[#allocation16 + $0x30] sm:$0xff] %vm2220_vm5, %v2233_v40  ;;  %2801 = vmatpush.msra.mxu2 %v7548_v52  ;;  %vm2209_vm6 = vweird.f32 %v4582_v55  ;;  %v2979_v40 = vand.u32 4294901760, %v2963_v53 }
 0x3c6   :  { %2632 = vmatmul.f32.gmra.mxu0 %v7549_v43  ;;  %vm2210_vm8 = vmor %vm2208_vm7, %vm2209_vm6 }
 0x3c7   :  { %v2205_v0 = vsub.f32 1.0, %v2204_v24  ;;  %v3014_v39 = vsub.f32 %v2963_v53, %v2979_v40 }
 0x3c8   :  { %2662 = vmatmul.f32.gmra.mxu1 %v7550_v45 }
 0x3c9   :  { %v2206_v62 = vmul.f32 %v4582_v55, %v2205_v0 }
 0x3cb   :  { %v2207_v2 = vadd.f32 %v4582_v55, %v2206_v62 }
 0x3cc   :  { %2570 = vmatmul.f32.gmra.mxu2 %v6086_v20  ;;  %2715 = vmatmul.f32.vlgmr.msrb.gmra.mxu3 %v7551_v15 }
 0x3cd   :  { %v2211_v61 = vsel %vm2210_vm8, %v4582_v55, %v2207_v2  ;;  %2952 = vmatpush.msrb.mxu3 %v7548_v52 }
 0x3ce   :  { %v2216_v59 = vsel %vm2213_vm9, %v2215_v37, %v2211_v61  ;;  %2745 = vmatmul.f32.vlgmr.msra.gmra.mxu0 %v7547_v28  ;;  %v3015_v37 = vand.u32 4294901760, %v3014_v39 }
 0x3cf   :  { %v2219_v25 = vmul.f32 %v2216_v59, %v5548_v42  ;;  %v2224_v22 = vmul.f32 %v2216_v59, %v5718_v19  ;;  %v2229_v10 = vmul.f32 %v2216_v59, %v5806_v46  ;;  %v2234_v49 = vmul.f32 %v2216_v59, %v6008_v23  ;;  %v7553_v42 = vld [vmem:[#allocation28_spill] sm:$0xff]  ;;  %v7554_v19 = vld [vmem:[#allocation33_spill] sm:$0xff]  ;;  %v7555_v46 = vld [vmem:[#allocation26_spill] sm:$0xff]  ;;  %2980 = vmatpush.msra.mxu0 %v2979_v40 }
 0x3d0   :  { %2771 = vmatmul.f32.vlgmr.msra.gmra.mxu1 %v7547_v28 }
 0x3d1   :  { %2222 = vst.msk [vmem:[#allocation16 + $0x8] sm:$0xff] %vm2220_vm5, %v2219_v25  ;;  %v3016_v25 = vsub.f32 %v3014_v39, %v3015_v37 }
 0x3d2   :  { %2227 = vst.msk [vmem:[#allocation16 + $0x18] sm:$0xff] %vm2220_vm5, %v2224_v22 }
 0x3d3   :  { %2232 = vst.msk [vmem:[#allocation16 + $0x28] sm:$0xff] %vm2220_vm5, %v2229_v10 }
 0x3d4   :  { %2237 = vst.msk [vmem:[#allocation16 + $0x38] sm:$0xff] %vm2220_vm5, %v2234_v49  ;;  %2686 = vmatmul.f32.vlgmr.msrb.gmra.mxu2 %v7552_v16  ;;  %2721 = vmatmul.f32.gmra.mxu3 %v7553_v42 }
 0x3d5   :  { %2926 = vmatpush.msrb.mxu2 %v7554_v19 }
 0x3d6   :  { %2749 = vmatmul.f32.gmra.mxu0 %v7550_v45 }
 0x3d8   :  { %2775 = vmatmul.f32.gmra.mxu1 %v7550_v45 }
 0x3dc   :  { %2691 = vmatmul.f32.gmra.mxu2 %v7555_v46 }
 0x42b   :  { %v2508_v8 = vpop.f32.mrf.mxu0 }
 0x42d   :  { %v2537_v21 = vpop.f32.mrf.mxu1 }
 0x42f   :  { %v2480_v23 = vpop.f32.mrf.mxu3 }
 0x433   :  { %v2513_v47 = vpop.f32.mrf.mxu0 }
 0x435   :  { %v2543_v33 = vpop.f32.mrf.mxu1 }
 0x437   :  { %v2446_v13 = vpop.f32.mrf.mxu2  ;;  %v2484_v31 = vpop.f32.mrf.mxu3 }
 0x438   :  { %v2481_v12 = vadd.f32 %v2480_v23, %v2446_v13  ;;  %v3017_v23 = vand.u32 4294901760, %v3016_v25  ;;  %v7302_v25 = vstv %s6177_s9  ;;  %s6314_s9 = sld [smem:[#allocation9 + $0x283]] }
 0x43a   :  { %v2509_v63 = vadd.f32 %v2508_v8, %v2481_v12  ;;  %3018 = vmatpush.msra.mxu1 %v3017_v23 }
 0x43b   :  { %v2625_v34 = vpop.f32.mrf.mxu0 }
 0x43c   :  { %v2538_v20 = vadd.f32 %v2537_v21, %v2509_v63 }
 0x43d   :  { %v2659_v1 = vpop.f32.mrf.mxu1 }
 0x43e   :  { %v2660_v27 = vadd.f32 %v2659_v1, %v2625_v34  ;;  %v6209_v34 = vld [vmem:[#allocation3 + $0x80] sm:$0xff]  ;;  %7581 = sst [smem:[#allocation69_spill]] %s6314_s9 }
 0x43f   :  { %v2454_v5 = vpop.f32.mrf.mxu2  ;;  %v2593_v41 = vpop.f32.mrf.mxu3 }
 0x440   :  { %v2485_v7 = vadd.f32 %v2484_v31, %v2454_v5 }
 0x442   :  { %v2514_v57 = vadd.f32 %v2513_v47, %v2485_v7 }
 0x443   :  { %v2633_v44 = vpop.f32.mrf.mxu0 }
 0x444   :  { %v2544_v56 = vadd.f32 %v2543_v33, %v2514_v57  ;;  %v6189_v57 = vld [vmem:[#allocation3 + $0x60] sm:$0xff] }
 0x445   :  { %v2663_v54 = vpop.f32.mrf.mxu1 }
 0x446   :  { %v2664_v36 = vadd.f32 %v2663_v54, %v2633_v44  ;;  %v6225_v54 = vld [vmem:[#allocation3 + $0x90] sm:$0xff] }
 0x447   :  { %v2567_v50 = vpop.f32.mrf.mxu2  ;;  %v2597_v26 = vpop.f32.mrf.mxu3 }
 0x448   :  { %v2568_v6 = vadd.f32 %v2567_v50, %v2538_v20  ;;  %v3705_v50 = vstv %s6153_s2  ;;  %s7599_s2 = sld [smem:[#allocation53_spill]] }
 0x449   :  { %v3706_v33 = vmul.f32 %v3705_v50, %v6189_v57 }
 0x44a   :  { %v6129_v11 = vadd.f32 %v2593_v41, %v2568_v6  ;;  %v6191_v41 = vld [vmem:[#allocation3 + $0x70] sm:$0xff]  ;;  %v3709_v6 = vstv %s6155_s28 }
 0x44b   :  { %v2746_v3 = vpop.f32.mrf.mxu0 }
 0x44c   :  { %7556 = vst [vmem:[#allocation35_spill] sm:$0xff] %v6129_v11 }
 0x44d   :  { %v2772_v38 = vpop.f32.mrf.mxu1 }
 0x44f   :  { %v2571_v35 = vpop.f32.mrf.mxu2  ;;  %v2716_v17 = vpop.f32.mrf.mxu3 }
 0x450   :  { %v2572_v60 = vadd.f32 %v2571_v35, %v2544_v56  ;;  %v3710_v56 = vmul.f32 %v3709_v6, %v6191_v41  ;;  %v3715_v35 = vstv %s6157_s25  ;;  %s6700_s25 = sld [smem:[#allocation12 + $0x381]] }
 0x451   :  { %v3716_v44 = vmul.f32 %v3715_v35, %v6209_v34 }
 0x452   :  { %v6131_v14 = vadd.f32 %v2597_v26, %v2572_v60  ;;  %v3775_v60 = vstv %s6159_s5  ;;  %v3779_v26 = vstv %s6163_s7  ;;  %v3712_v1 = vadd.f32 %v3710_v56, %v3706_v33  ;;  %s6255_s7 = sld [smem:[#allocation9 + $0x281]] }
 0x453   :  { %v2750_v0 = vpop.f32.mrf.mxu0  ;;  %s6259_s5 = sld [smem:[#allocation9 + $0x202]] }
 0x455   :  { %v2776_v2 = vpop.f32.mrf.mxu1 }
 0x457   :  { %v2687_v32 = vpop.f32.mrf.mxu2  ;;  %v2722_v30 = vpop.f32.mrf.mxu3 }
 0x458   :  { %v2688_v18 = vadd.f32 %v2687_v32, %v2660_v27  ;;  %v3721_v32 = vstv %s6161_s16  ;;  %v3718_v27 = vadd.f32 %v3716_v44, %v3712_v1  ;;  %7574 = sst [smem:[#allocation57_spill]] %s6255_s7  ;;  %v7300_v1 = vstv %s6252_s17 }
 0x459   :  { %v3722_v53 = vmul.f32 %v3721_v32, %v6225_v54  ;;  %7575 = sst [smem:[#allocation58_spill]] %s6259_s5  ;;  %v7301_v44 = vstv %s6255_s7 }
 0x45a   :  { %v2717_v55 = vadd.f32 %v2716_v17, %v2688_v18  ;;  %v3776_v17 = vmul.f32 %v3775_v60, %v6189_v57  ;;  %s6273_s16 = sld [smem:[#allocation9 + $0x301]] }
 0x45b   :  { %s6352_s17 = sld [smem:[#allocation9 + $0x284]] }
 0x45c   :  { %v2747_v62 = vadd.f32 %v2746_v3, %v2717_v55  ;;  %v3780_v3 = vmul.f32 %v3779_v26, %v6191_v41  ;;  %v3847_v55 = vstv %s6181_s23  ;;  %s6361_s7 = sld [smem:[#allocation9 + $0x205]] }
 0x45d   :  { %s7602_s23 = sld [smem:[#allocation57_spill]] }
 0x45e   :  { %v2773_v61 = vadd.f32 %v2772_v38, %v2747_v62  ;;  %v7322_v38 = vstv %s6167_s24  ;;  %v3782_v18 = vadd.f32 %v3780_v3, %v3776_v17  ;;  %s6268_s24 = sld [smem:[#allocation9 + $0x300]]  ;;  %v7306_v3 = vstv %s6195_s15 }
 0x45f   :  { %v2692_v9 = vpop.f32.mrf.mxu2  ;;  %s6373_s15 = sld [smem:[#allocation9 + $0x382]] }
 0x460   :  { %v2693_v24 = vadd.f32 %v2692_v9, %v2664_v36  ;;  %v2780_v22 = vsel %vm132_vm0, %v2773_v61, 0  ;;  %v6246_v9 = vld [vmem:[#allocation3 + $0xa0] sm:$0xff]  ;;  %v3727_v36 = vstv %s6165_s4  ;;  %7576 = sst [smem:[#allocation64_spill]] %s6273_s16 }
 0x461   :  { %v2802_v49 = vand.u32 4294901760, %v2780_v22  ;;  %v3728_v62 = vmul.f32 %v3727_v36, %v6246_v9  ;;  %s6283_s4 = sld [smem:[#allocation9 + $0x282]] }
 0x462   :  { %v2723_v58 = vadd.f32 %v2722_v30, %v2693_v24  ;;  %v3786_v30 = vmul.f32 %v7322_v38, %v6209_v34  ;;  %v3851_v24 = vstv %s6183_s8  ;;  %7582 = sst [smem:[#allocation68_spill]] %s6352_s17  ;;  %v7336_v38 = vstv %s6352_s17 }
 0x463   :  { %v2803_v13 = vsub.f32 %v2780_v22, %v2802_v49  ;;  %2841 = vmatmul.f32.vlgmr.msra.gmra.mxu3 %v2802_v49  ;;  %v3848_v22 = vmul.f32 %v3847_v55, %v6189_v57  ;;  %s6461_s17 = sld [smem:[#allocation12 + $0x380]] }
 0x464   :  { %v2751_v59 = vadd.f32 %v2750_v0, %v2723_v58  ;;  %3073 = vmatpush.msra.mxu3 %v2979_v40  ;;  %v6261_v0 = vld [vmem:[#allocation3 + $0xb0] sm:$0xff]  ;;  %v3733_v58 = vstv %s6169_s12  ;;  %s6298_s12 = sld [smem:[#allocation9 + $0x204]] }
 0x465   :  { %v2804_v63 = vand.u32 4294901760, %v2803_v13  ;;  %2869 = vmatmul.f32.vlgmr.msrb.gmra.mxu0 %v2803_v13  ;;  %s7605_s8 = sld [smem:[#allocation64_spill]] }
 0x466   :  { %v2777_v10 = vadd.f32 %v2776_v2, %v2751_v59  ;;  %3105 = vmatpush.msrb.mxu0 %v3015_v37  ;;  %v7303_v2 = vstv %s6175_s21  ;;  %v3788_v37 = vadd.f32 %v3786_v30, %v3782_v18  ;;  %v3739_v59 = vstv %s6173_s19  ;;  %s6307_s21 = sld [smem:[#allocation9 + $0x302]] }
 0x467   :  { %v2805_v20 = vsub.f32 %v2803_v13, %v2804_v63  ;;  %2898 = vmatmul.f32.vlgmr.msrb.gmra.mxu1 %v2804_v63  ;;  %7577 = sst [smem:[#allocation61_spill]] %s6283_s4  ;;  %v3798_v23 = vmul.f32 %v7303_v2, %v6246_v9  ;;  %v7296_v13 = vstv %s6185_s30  ;;  %v7295_v63 = vstv %s6187_s22 }
 0x468   :  { %v2783_v8 = vsel %vm132_vm0, %v2777_v10, 0  ;;  %3131 = vmatpush.msrb.mxu1 %v2979_v40  ;;  %v7311_v40 = vstv %s6171_s27  ;;  %v3852_v10 = vmul.f32 %v3851_v24, %v6191_v41  ;;  %s6293_s27 = sld [smem:[#allocation9 + $0x203]]  ;;  %v3858_v56 = vmul.f32 %v7296_v13, %v6209_v34 }
 0x469   :  { %v2810_v12 = vand.u32 4294901760, %v2783_v8  ;;  %v2806_v5 = vand.u32 4294901760, %v2805_v20  ;;  %v3792_v61 = vmul.f32 %v7311_v40, %v6225_v54  ;;  %v3923_v20 = vstv %s6212_s26  ;;  %s6326_s30 = sld [smem:[#allocation9 + $0x380]] }
 0x46a   :  { %7579 = sst [smem:[#allocation65_spill]] %s6298_s12  ;;  %v3854_v33 = vadd.f32 %v3852_v10, %v3848_v22  ;;  %v3864_v17 = vmul.f32 %v7295_v63, %v6225_v54  ;;  %v7309_v18 = vstv %s6216_s1  ;;  %v7310_v22 = vstv %s6268_s24 }
 0x46b   :  { %v2811_v21 = vsub.f32 %v2783_v8, %v2810_v12  ;;  %2807 = vmatmul.f32.vlgmr.msra.gmra.mxu2 %v2806_v5  ;;  %2845 = vmatmul.f32.gmra.mxu3 %v2810_v12  ;;  %v3809_v8 = vstv %s6179_s29  ;;  %v6303_v5 = vmul.f32 %v7302_v25, %v6261_v0  ;;  %s6336_s22 = sld [smem:[#allocation9 + $0x381]]  ;;  %v7312_v10 = vstv %s6273_s16 }
 0x46c   :  { %3045 = vmatpush.msra.mxu2 %v3014_v39  ;;  %v3724_v39 = vadd.f32 %v3722_v53, %v3718_v27  ;;  %7580 = sst [smem:[#allocation67_spill]] %s6307_s21  ;;  %v3924_v53 = vmul.f32 %v3923_v20, %v6191_v41  ;;  %v3930_v25 = vmul.f32 %v7309_v18, %v6209_v34  ;;  %v7319_v2 = vstv %s6218_s18 }
 0x46d   :  { %v2812_v31 = vand.u32 4294901760, %v2811_v21  ;;  %2874 = vmatmul.f32.gmra.mxu0 %v2811_v21  ;;  %v3860_v18 = vadd.f32 %v3858_v56, %v3854_v33  ;;  %v7326_v40 = vstv %s6223_s11  ;;  %s6386_s16 = sld [smem:[#allocation9 + $0x285]]  ;;  %v7329_v33 = vstv %s6298_s12 }
 0x46e   :  { %7578 = sst [smem:[#allocation66_spill]] %s6293_s27 }
 0x46f   :  { %v2813_v7 = vsub.f32 %v2811_v21, %v2812_v31  ;;  %2904 = vmatmul.f32.gmra.mxu1 %v2812_v31  ;;  %v3919_v21 = vstv %s6207_s13  ;;  %v3794_v31 = vadd.f32 %v3792_v61, %v3788_v37  ;;  %v4064_v37 = vmul.f32 %v7300_v1, %v6189_v57  ;;  %s6437_s11 = sld [smem:[#allocation12 + $0x300]] }
 0x470   :  { %v3920_v27 = vmul.f32 %v3919_v21, %v6189_v57  ;;  %v4068_v61 = vmul.f32 %v7301_v44, %v6191_v41  ;;  %v3870_v1 = vmul.f32 %v7306_v3, %v6246_v9  ;;  %s6442_s12 = sld [smem:[#allocation9 + $0x385]] }
 0x471   :  { %v2814_v47 = vand.u32 4294901760, %v2813_v7  ;;  %v7298_v7 = vstv %s6239_s10  ;;  %s6346_s10 = sld [smem:[#allocation9 + $0x303]]  ;;  %v3800_v13 = vadd.f32 %v3798_v23, %v3794_v31  ;;  %v7318_v23 = vstv %s6293_s27 }
 0x472   :  { %v3992_v30 = vmul.f32 %v7298_v7, %v6189_v57  ;;  %v7317_v7 = vstv %s6283_s4  ;;  %v3926_v44 = vadd.f32 %v3924_v53, %v3920_v27  ;;  %v4140_v31 = vmul.f32 %v7312_v10, %v6191_v41  ;;  %s6395_s4 = sld [smem:[#allocation12 + $0x200]] }
 0x473   :  { %2815 = vmatmul.f32.gmra.mxu2 %v2814_v47  ;;  %2954 = vmatmul.f32.vlgmr.msrb.gmra.mxu3 %v2802_v49  ;;  %v7297_v47 = vstv %s6244_s6  ;;  %v4070_v53 = vadd.f32 %v4068_v61, %v4064_v37  ;;  %v4074_v3 = vmul.f32 %v7317_v7, %v6209_v34  ;;  %v7325_v10 = vstv %s6314_s9  ;;  %7583 = sst [smem:[#allocation70_spill]] %s6386_s16 }
 0x474   :  { %3201 = vmatpush.msrb.mxu3 %v7544_v48  ;;  %v4008_v37 = vmul.f32 %v7318_v23, %v6225_v54  ;;  %v4080_v23 = vmul.f32 %v7325_v10, %v6225_v54  ;;  %s6408_s27 = sld [smem:[#allocation9 + $0x305]] }
 0x475   :  { %2986 = vmatmul.f32.vlgmr.msra.gmra.mxu0 %v7545_v51  ;;  %v4076_v7 = vadd.f32 %v4074_v3, %v4070_v53  ;;  %v7334_v3 = vstv %s6361_s7  ;;  %s6418_s9 = sld [smem:[#allocation12 + $0x280]] }
 0x476   :  { %3228 = vmatpush.msra.mxu0 %v7546_v29  ;;  %7587 = sst [smem:[#allocation73_spill]] %s6437_s11 }
 0x477   :  { %3020 = vmatmul.f32.vlgmr.msra.gmra.mxu1 %v7547_v28  ;;  %7588 = sst [smem:[#allocation75_spill]] %s6442_s12 }
 0x478   :  { %3256 = vmatpush.msra.mxu1 %v7548_v52  ;;  %7584 = sst [smem:[#allocation71_spill]] %s6395_s4 }
 0x479   :  { %s7619_s19 = sld [smem:[#allocation67_spill]] }
 0x47a   :  { %7585 = sst [smem:[#allocation74_spill]] %s6408_s27 }
 0x47b   :  { %2928 = vmatmul.f32.vlgmr.msrb.gmra.mxu2 %v2802_v49  ;;  %2958 = vmatmul.f32.gmra.mxu3 %v2810_v12  ;;  %v3734_v49 = vmul.f32 %v3733_v58, %v6261_v0  ;;  %7586 = sst [smem:[#allocation72_spill]] %s6418_s9 }
 0x47c   :  { %3163 = vmatpush.msrb.mxu2 %v7548_v52  ;;  %s7627_s29 = sld [smem:[#allocation55_spill]] }
 0x47d   :  { %2994 = vmatmul.f32.gmra.mxu0 %v7549_v43  ;;  %s6652_s13 = sld [smem:[#allocation12 + $0x81]] }
 0x47e   :  { %s7631_s26 = sld [smem:[#allocation54_spill]] }
 0x47f   :  { %3024 = vmatmul.f32.gmra.mxu1 %v7550_v45  ;;  %s7646_s28 = sld [smem:[#allocation71_spill]] }
 0x483   :  { %2932 = vmatmul.f32.gmra.mxu2 %v2810_v12  ;;  %3077 = vmatmul.f32.vlgmr.msra.gmra.mxu3 %v7551_v15  ;;  %v3730_v12 = vadd.f32 %v3728_v62, %v3724_v39  ;;  %v3996_v39 = vmul.f32 %v7297_v47, %v6191_v41  ;;  %v7307_v62 = vstv %s6259_s5  ;;  %v7315_v47 = vstv %s6197_s0  ;;  %s6379_s5 = sld [smem:[#allocation9 + $0x304]] }
 0x484   :  { %3314 = vmatpush.msra.mxu3 %v7548_v52  ;;  %s6402_s0 = sld [smem:[#allocation9 + $0x383]] }
 0x485   :  { %3107 = vmatmul.f32.vlgmr.msrb.gmra.mxu0 %v7547_v28  ;;  %v6348_v63 = vadd.f32 %v3734_v49, %v3730_v12  ;;  %v4002_v49 = vmul.f32 %v7307_v62, %v6209_v34  ;;  %v4136_v12 = vmul.f32 %v7310_v22, %v6189_v57  ;;  %v3998_v27 = vadd.f32 %v3996_v39, %v3992_v30 }
 0x486   :  { %v7321_v62 = vstv %s6307_s21  ;;  %v3876_v22 = vmul.f32 %v7315_v47, %v6261_v0  ;;  %v3932_v30 = vadd.f32 %v3930_v25, %v3926_v44  ;;  %v3936_v39 = vmul.f32 %v7319_v2, %v6225_v54  ;;  %s6415_s21 = sld [smem:[#allocation9 + $0x384]] }
 0x487   :  { %3133 = vmatmul.f32.vlgmr.msrb.gmra.mxu1 %v7547_v28  ;;  %v4142_v56 = vadd.f32 %v4140_v31, %v4136_v12  ;;  %v4146_v61 = vmul.f32 %v7321_v62, %v6209_v34  ;;  %v7327_v47 = vstv %s6326_s30  ;;  %v4211_v25 = vstv %s6336_s22  ;;  %s6645_s22 = sld [smem:[#allocation12 + $0x1]] }
 0x488   :  { %v4004_v44 = vadd.f32 %v4002_v49, %v3998_v27  ;;  %v7331_v2 = vstv %s6346_s10  ;;  %v3866_v12 = vadd.f32 %v3864_v17, %v3860_v18  ;;  %v3942_v31 = vmul.f32 %v7326_v40, %v6246_v9 }
 0x489   :  { %v7339_v62 = vstv %s6234_s20  ;;  %v3938_v49 = vadd.f32 %v3936_v39, %v3932_v30  ;;  %v4208_v27 = vmul.f32 %v7327_v47, %v6189_v57  ;;  %v4212_v17 = vmul.f32 %v4211_v25, %v6191_v41 }
 0x48a   :  { %v4014_v18 = vmul.f32 %v7329_v33, %v6246_v9  ;;  %v4148_v53 = vadd.f32 %v4146_v61, %v4142_v56  ;;  %v4152_v30 = vmul.f32 %v7331_v2, %v6225_v54  ;;  %v7355_v39 = vstv %s6373_s15 }
 0x48b   :  { %3048 = vmatmul.f32.vlgmr.msra.gmra.mxu2 %v7552_v16  ;;  %3083 = vmatmul.f32.gmra.mxu3 %v7553_v42  ;;  %v4010_v10 = vadd.f32 %v4008_v37, %v4004_v44  ;;  %v4082_v40 = vadd.f32 %v4080_v23, %v4076_v7  ;;  %v4086_v57 = vmul.f32 %v7336_v38, %v6246_v9  ;;  %v7335_v47 = vstv %s6379_s5 }
 0x48c   :  { %3288 = vmatpush.msra.mxu2 %v7554_v19  ;;  %v3806_v41 = vadd.f32 %v6303_v5, %v3800_v13  ;;  %v3872_v56 = vadd.f32 %v3870_v1, %v3866_v12  ;;  %v7340_v61 = vstv %s6199_s14  ;;  %v7333_v33 = vstv %s6386_s16  ;;  %s7596_s16 = sld [smem:[#allocation51_spill]] }
 0x48d   :  { %3111 = vmatmul.f32.gmra.mxu0 %v7550_v45  ;;  %v3944_v2 = vadd.f32 %v3942_v31, %v3938_v49  ;;  %v3948_v7 = vmul.f32 %v7339_v62, %v6261_v0  ;;  %v4214_v23 = vadd.f32 %v4212_v17, %v4208_v27  ;;  %v4218_v37 = vmul.f32 %v7355_v39, %v6209_v34  ;;  %v6463_v34 = vld [vmem:[#allocation3 + $0x68] sm:$0xff]  ;;  %v6465_v17 = vld [vmem:[#allocation3 + $0x78] sm:$0xff] }
 0x48e   :  { %v4020_v13 = vmul.f32 %v7334_v3, %v6261_v0  ;;  %v4154_v5 = vadd.f32 %v4152_v30, %v4148_v53  ;;  %v4158_v1 = vmul.f32 %v7335_v47, %v6246_v9  ;;  %v7341_v44 = vstv %s6402_s0 }
 0x48f   :  { %3137 = vmatmul.f32.gmra.mxu1 %v7550_v45  ;;  %v4016_v12 = vadd.f32 %v4014_v18, %v4010_v10  ;;  %v4088_v31 = vadd.f32 %v4086_v57, %v4082_v40  ;;  %v4092_v49 = vmul.f32 %v7333_v33, %v6261_v0  ;;  %v7337_v27 = vstv %s6408_s27  ;;  %s7600_s27 = sld [smem:[#allocation60_spill]] }
 0x490   :  { %v3878_v53 = vadd.f32 %v3876_v22, %v3872_v56  ;;  %v7354_v30 = vstv %s6237_s3  ;;  %v7342_v10 = vstv %s6395_s4  ;;  %v7338_v40 = vstv %s6415_s21  ;;  %s7597_s4 = sld [smem:[#allocation52_spill]] }
 0x491   :  { %v3950_v18 = vadd.f32 %v3948_v7, %v3944_v2  ;;  %v7344_v57 = vstv %s6418_s9  ;;  %v4220_v33 = vadd.f32 %v4218_v37, %v4214_v23  ;;  %v4224_v3 = vmul.f32 %v7341_v44, %v6225_v54  ;;  %v6487_v37 = vld [vmem:[#allocation3 + $0x88] sm:$0xff]  ;;  %v6515_v44 = vld [vmem:[#allocation3 + $0x98] sm:$0xff]  ;;  %s7594_s9 = sld [smem:[#allocation47_spill]] }
 0x492   :  { %v4160_v47 = vadd.f32 %v4158_v1, %v4154_v5  ;;  %v4164_v22 = vmul.f32 %v7337_v27, %v6261_v0  ;;  %v3707_v56 = vmul.f32 %v3705_v50, %v6463_v34  ;;  %v3711_v2 = vmul.f32 %v3709_v6, %v6465_v17  ;;  %s7598_s3 = sld [smem:[#allocation63_spill]] }
 0x493   :  { %3053 = vmatmul.f32.gmra.mxu2 %v7555_v46  ;;  %v4022_v7 = vadd.f32 %v4020_v13, %v4016_v12  ;;  %v4094_v38 = vadd.f32 %v4092_v49, %v4088_v31  ;;  %v7352_v23 = vstv %s6437_s11  ;;  %v4230_v54 = vmul.f32 %v7338_v40, %v6246_v9  ;;  %s7638_s11 = sld [smem:[#allocation68_spill]] }
 0x494   :  { %v3740_v5 = vmul.f32 %v3739_v59, %v6129_v11  ;;  %v3810_v50 = vmul.f32 %v3809_v8, %v6129_v11  ;;  %v3882_v6 = vmul.f32 %v7340_v61, %v6129_v11  ;;  %v7353_v13 = vstv %s6442_s12  ;;  %s7595_s12 = sld [smem:[#allocation50_spill]] }
 0x495   :  { %v3954_v1 = vmul.f32 %v7354_v30, %v6129_v11  ;;  %v4026_v12 = vmul.f32 %v7342_v10, %v6129_v11  ;;  %v4098_v9 = vmul.f32 %v7344_v57, %v6129_v11  ;;  %v4226_v31 = vadd.f32 %v4224_v3, %v4220_v33 }
 0x496   :  { %v4166_v49 = vadd.f32 %v4164_v22, %v4160_v47  ;;  %v4170_v27 = vmul.f32 %v7352_v23, %v6129_v11  ;;  %v3713_v40 = vadd.f32 %v3711_v2, %v3707_v56  ;;  %v3717_v62 = vmul.f32 %v3715_v35, %v6487_v37  ;;  %v6535_v56 = vld [vmem:[#allocation3 + $0xb8] sm:$0xff] }
 0x497   :  { %v7351_v61 = vstv %s6461_s17  ;;  %v6518_v10 = vadd.f32 %v3740_v5, %v6348_v63  ;;  %v6520_v57 = vadd.f32 %v3810_v50, %v3806_v41  ;;  %v6522_v47 = vadd.f32 %v3882_v6, %v3878_v53  ;;  %v6533_v41 = vld [vmem:[#allocation3 + $0xa8] sm:$0xff] }
 0x498   :  { %v4236_v33 = vmul.f32 %v7353_v13, %v6261_v0  ;;  %v6527_v3 = vadd.f32 %v3954_v1, %v3950_v18  ;;  %v6529_v35 = vadd.f32 %v4026_v12, %v4022_v7  ;;  %v6531_v22 = vadd.f32 %v4098_v9, %v4094_v38 }
 0x499   :  { %v4232_v63 = vadd.f32 %v4230_v54, %v4226_v31  ;;  %v6537_v2 = vadd.f32 %v4170_v27, %v4166_v49  ;;  %v4242_v0 = vmul.f32 %v7351_v61, %v6129_v11  ;;  %v3719_v18 = vadd.f32 %v3717_v62, %v3713_v40 }
 0x49a   :  { %v3723_v38 = vmul.f32 %v3721_v32, %v6515_v44  ;;  %v3777_v7 = vmul.f32 %v3775_v60, %v6463_v34  ;;  %v3781_v54 = vmul.f32 %v3779_v26, %v6465_v17  ;;  %v3849_v27 = vmul.f32 %v3847_v55, %v6463_v34 }
 0x49b   :  { %v3853_v5 = vmul.f32 %v3851_v24, %v6465_v17  ;;  %v3729_v32 = vmul.f32 %v3727_v36, %v6533_v41  ;;  %v6563_v40 = vmul.f32 %v3733_v58, %v6535_v56  ;;  %v3921_v60 = vmul.f32 %v3919_v21, %v6463_v34 }
 0x49c   :  { %v3925_v26 = vmul.f32 %v3923_v20, %v6465_v17  ;;  %v4238_v55 = vadd.f32 %v4236_v33, %v4232_v63  ;;  %v7601_v24 = vstv %s7594_s9  ;;  %v7603_v6 = vstv %s7595_s12  ;;  %s7617_s12 = sld [smem:[#allocation61_spill]] }
 0x49d   :  { %v3787_v50 = vmul.f32 %v7601_v24, %v6487_v37  ;;  %v3793_v36 = vmul.f32 %v7603_v6, %v6515_v44  ;;  %v7604_v58 = vstv %s7596_s16  ;;  %v3725_v21 = vadd.f32 %v3723_v38, %v3719_v18  ;;  %s7609_s16 = sld [smem:[#allocation58_spill]] }
 0x49e   :  { %v6580_v1 = vmul.f32 %v7604_v58, %v6533_v41  ;;  %v7606_v12 = vstv %s7597_s4  ;;  %v7607_v9 = vstv %s7598_s3  ;;  %v7608_v49 = vstv %s6244_s6  ;;  %s7611_s4 = sld [smem:[#allocation56_spill]] }
 0x49f   :  { %v6585_v20 = vmul.f32 %v7606_v12, %v6535_v56  ;;  %v3993_v31 = vmul.f32 %v7607_v9, %v6463_v34  ;;  %v3997_v33 = vmul.f32 %v7608_v49, %v6465_v17  ;;  %v6596_v63 = vmul.f32 %v3739_v59, %v6131_v14  ;;  %s7625_s9 = sld [smem:[#allocation59_spill]] }
 0x4a0   :  { %v3783_v24 = vadd.f32 %v3781_v54, %v3777_v7  ;;  %v3855_v6 = vadd.f32 %v3853_v5, %v3849_v27  ;;  %v7610_v18 = vstv %s7599_s2  ;;  %v3927_v12 = vadd.f32 %v3925_v26, %v3921_v60  ;;  %s6673_s3 = sld [smem:[#allocation12 + $0x201]] }
 0x4a1   :  { %v3859_v38 = vmul.f32 %v7610_v18, %v6487_v37  ;;  %v7612_v61 = vstv %s6216_s1  ;;  %v7613_v23 = vstv %s7600_s27  ;;  %v7614_v13 = vstv %s7602_s23  ;;  %s6657_s1 = sld [smem:[#allocation12 + $0x101]] }
 0x4a2   :  { %v3931_v9 = vmul.f32 %v7612_v61, %v6487_v37  ;;  %v4065_v49 = vmul.f32 %v7613_v23, %v6463_v34  ;;  %v4069_v59 = vmul.f32 %v7614_v13, %v6465_v17  ;;  %v7615_v30 = vstv %s6268_s24  ;;  %s7622_s24 = sld [smem:[#allocation66_spill]] }
 0x4a3   :  { %v4137_v7 = vmul.f32 %v7615_v30, %v6463_v34  ;;  %v7616_v54 = vstv %s7605_s8  ;;  %v7618_v5 = vstv %s6326_s30  ;;  %v4213_v26 = vmul.f32 %v4211_v25, %v6465_v17  ;;  %s7629_s30 = sld [smem:[#allocation69_spill]] }
 0x4a4   :  { %v4141_v27 = vmul.f32 %v7616_v54, %v6465_v17  ;;  %v4209_v60 = vmul.f32 %v7618_v5, %v6463_v34  ;;  %v6625_v23 = vmul.f32 %v3809_v8, %v6131_v14  ;;  %v3999_v13 = vadd.f32 %v3997_v33, %v3993_v31  ;;  %s7645_s6 = sld [smem:[#allocation62_spill]] }
 0x4a5   :  { %v7620_v30 = vstv %s7609_s16  ;;  %v3789_v11 = vadd.f32 %v3787_v50, %v3783_v24  ;;  %v3861_v54 = vadd.f32 %v3859_v38, %v3855_v6  ;;  %v7621_v4 = vstv %s7611_s4  ;;  %s7648_s2 = sld [smem:[#allocation72_spill]] }
 0x4a6   :  { %v4003_v18 = vmul.f32 %v7620_v30, %v6487_v37  ;;  %v3865_v34 = vmul.f32 %v7621_v4, %v6515_v44  ;;  %v7623_v25 = vstv %s6218_s18  ;;  %v3933_v46 = vadd.f32 %v3931_v9, %v3927_v12  ;;  %s6665_s18 = sld [smem:[#allocation12 + $0x181]] }
 0x4a7   :  { %v3937_v17 = vmul.f32 %v7623_v25, %v6515_v44  ;;  %v4071_v19 = vadd.f32 %v4069_v59, %v4065_v49  ;;  %v7624_v8 = vstv %s7617_s12  ;;  %v4143_v33 = vadd.f32 %v4141_v27, %v4137_v7  ;;  %s7653_s27 = sld [smem:[#allocation73_spill]] }
 0x4a8   :  { %v4075_v42 = vmul.f32 %v7624_v8, %v6487_v37  ;;  %v4215_v24 = vadd.f32 %v4213_v26, %v4209_v60  ;;  %v7628_v6 = vstv %s6373_s15  ;;  %v6647_v12 = vadd.f32 %v4242_v0, %v4238_v55  ;;  %s7633_s15 = sld [smem:[#allocation65_spill]] }
 0x4a9   :  { %v4219_v4 = vmul.f32 %v7628_v6, %v6487_v37  ;;  %v4005_v9 = vadd.f32 %v4003_v18, %v3999_v13  ;;  %v7630_v49 = vstv %s7622_s24  ;;  %v3731_v59 = vadd.f32 %v3729_v32, %v3725_v21  ;;  %s6834_s23 = sld [smem:[#allocation12 + $0x182]] }
 0x4aa   :  { %v3795_v7 = vadd.f32 %v3793_v36, %v3789_v11  ;;  %v3867_v27 = vadd.f32 %v3865_v34, %v3861_v54  ;;  %v3939_v0 = vadd.f32 %v3937_v17, %v3933_v46  ;;  %v7634_v55 = vstv %s7627_s29  ;;  %s6836_s8 = sld [smem:[#allocation12 + $0x202]] }
 0x4ab   :  { %v3943_v26 = vmul.f32 %v7634_v55, %v6533_v41  ;;  %v7635_v13 = vstv %s7629_s30  ;;  %v7636_v32 = vstv %s6346_s10  ;;  %v4221_v21 = vadd.f32 %v4219_v4, %v4215_v24  ;;  %s6681_s10 = sld [smem:[#allocation12 + $0x281]] }
 0x4ac   :  { %v4153_v36 = vmul.f32 %v7636_v32, %v6515_v44  ;;  %v7637_v30 = vstv %s6402_s0  ;;  %s6692_s0 = sld [smem:[#allocation12 + $0x301]]  ;;  %v7643_v4 = vstv %s7638_s11 }
 0x4ad   :  { %v4225_v46 = vmul.f32 %v7637_v30, %v6515_v44  ;;  %v3945_v6 = vadd.f32 %v3943_v26, %v3939_v0  ;;  %v3737_v26 = vadd.f32 %v6563_v40, %v3731_v59  ;;  %s6838_s16 = sld [smem:[#allocation12 + $0x282]] }
 0x4ae   :  { %v7640_v25 = vstv %s7633_s15  ;;  %s6840_s4 = sld [smem:[#allocation12 + $0x302]] }
 0x4af   :  { %v4015_v17 = vmul.f32 %v7640_v25, %v6533_v41  ;;  %s6842_s12 = sld [smem:[#allocation12 + $0x382]] }
 0x4b0   :  { %s6924_s24 = sld [smem:[#allocation10]] }
 0x4b1   :  { %s6928_s29 = sld [smem:[#allocation12 + $0x83]] }
 0x4b2   :  { %s6930_s30 = sld [smem:[#allocation12 + $0x103]] }
 0x4b3   :  { %s6938_s15 = sld [smem:[#allocation13 + $0x2]] }
 0x4b4   :  { %s6944_s11 = sld [smem:[#allocation10 + $0x3]] }
 0x4e2   :  { %v2870_v62 = vpop.f32.mrf.mxu0 }
 0x4e4   :  { %v2899_v58 = vpop.f32.mrf.mxu1 }
 0x4e6   :  { %v2842_v53 = vpop.f32.mrf.mxu3 }
 0x4ea   :  { %v2875_v38 = vpop.f32.mrf.mxu0 }
 0x4ec   :  { %v2905_v18 = vpop.f32.mrf.mxu1 }
 0x4ee   :  { %v2808_v61 = vpop.f32.mrf.mxu2  ;;  %v2846_v5 = vpop.f32.mrf.mxu3 }
 0x4ef   :  { %v2843_v39 = vadd.f32 %v2842_v53, %v2808_v61  ;;  %v7626_v53 = vstv %s7619_s19  ;;  %v4077_v61 = vadd.f32 %v4075_v42, %v4071_v19  ;;  %v7639_v42 = vstv %s7631_s26  ;;  %s6922_s19 = sld [smem:[#allocation12 + $0x3]] }
 0x4f0   :  { %v4147_v50 = vmul.f32 %v7626_v53, %v6487_v37  ;;  %v7632_v37 = vstv %s7625_s9  ;;  %v3877_v19 = vmul.f32 %v7639_v42, %v6535_v56  ;;  %s6926_s9 = sld [smem:[#allocation13]] }
 0x4f1   :  { %v2871_v31 = vadd.f32 %v2870_v62, %v2843_v39  ;;  %v4009_v39 = vmul.f32 %v7630_v49, %v6515_v44  ;;  %v3871_v60 = vmul.f32 %v7632_v37, %v6533_v41  ;;  %v7650_v37 = vstv %s6415_s21  ;;  %s6830_s21 = sld [smem:[#allocation12 + $0x82]] }
 0x4f2   :  { %v4149_v11 = vadd.f32 %v4147_v50, %v4143_v33  ;;  %v7642_v50 = vstv %s6234_s20  ;;  %s7649_s20 = sld [smem:[#allocation74_spill]]  ;;  %v6705_v55 = vpop.f32.mrf.mxu0 }
 0x4f3   :  { %v2900_v62 = vadd.f32 %v2899_v58, %v2871_v31  ;;  %v4081_v58 = vmul.f32 %v7635_v13, %v6515_v44  ;;  %v4011_v34 = vadd.f32 %v4009_v39, %v4005_v9  ;;  %v3801_v31 = vadd.f32 %v6580_v1, %v3795_v7  ;;  %s6936_s26 = sld [smem:[#allocation10 + $0x2]] }
 0x4f4   :  { %v3873_v33 = vadd.f32 %v3871_v60, %v3867_v27  ;;  %v7641_v44 = vstv %s6199_s14  ;;  %v3949_v24 = vmul.f32 %v7642_v50, %v6535_v56  ;;  %v4087_v9 = vmul.f32 %v7643_v4, %v6533_v41  ;;  %s7647_s14 = sld [smem:[#allocation70_spill]] }
 0x4f5   :  { %v6687_v53 = vmul.f32 %v7641_v44, %v6131_v14  ;;  %v4083_v39 = vadd.f32 %v4081_v58, %v4077_v61  ;;  %v4155_v7 = vadd.f32 %v4153_v36, %v4149_v11  ;;  %v4227_v27 = vadd.f32 %v4225_v46, %v4221_v21 }
 0x4f6   :  { %v2816_v54 = vpop.f32.mrf.mxu2  ;;  %v4231_v60 = vmul.f32 %v7650_v37, %v6533_v41  ;;  %v2955_v0 = vpop.f32.mrf.mxu3  ;;  %v4017_v13 = vadd.f32 %v4015_v17, %v4011_v34  ;;  %v3807_v61 = vadd.f32 %v6585_v20, %v3801_v31  ;;  %v3879_v58 = vadd.f32 %v3877_v19, %v3873_v33 }
 0x4f7   :  { %v2847_v8 = vadd.f32 %v2846_v5, %v2816_v54  ;;  %v7644_v5 = vstv %s6379_s5  ;;  %s7651_s5 = sld [smem:[#allocation75_spill]]  ;;  %v7654_v11 = vstv %s7645_s6  ;;  %v3951_v46 = vadd.f32 %v3949_v24, %v3945_v6  ;;  %v3021_v33 = vpop.f32.mrf.mxu1 }
 0x4f8   :  { %v4159_v49 = vmul.f32 %v7644_v5, %v6533_v41  ;;  %v3955_v36 = vmul.f32 %v7654_v11, %v6131_v14  ;;  %v7655_v41 = vstv %s7646_s28  ;;  %v7658_v20 = vstv %s7649_s20  ;;  %s6952_s6 = sld [smem:[#allocation12 + $0x183]] }
 0x4f9   :  { %v2876_v1 = vadd.f32 %v2875_v38, %v2847_v8  ;;  %v7652_v38 = vstv %s6361_s7  ;;  %v4027_v21 = vmul.f32 %v7655_v41, %v6131_v14  ;;  %v4165_v42 = vmul.f32 %v7658_v20, %v6535_v56  ;;  %s6828_s7 = sld [smem:[#allocation12 + $0x2]] }
 0x4fa   :  { %v4021_v32 = vmul.f32 %v7652_v38, %v6535_v56  ;;  %v7656_v40 = vstv %s7647_s14  ;;  %v4089_v19 = vadd.f32 %v4087_v9, %v4083_v39  ;;  %v4161_v34 = vadd.f32 %v4159_v49, %v4155_v7  ;;  %s3906_s28 = sadd.f32 %s6938_s15, %s6936_s26 }
 0x4fb   :  { %v2906_v30 = vadd.f32 %v2905_v18, %v2876_v1  ;;  %v4093_v59 = vmul.f32 %v7656_v40, %v6535_v56  ;;  %v7657_v18 = vstv %s7648_s2  ;;  %v4233_v25 = vadd.f32 %v4231_v60, %v4227_v27  ;;  %s6958_s14 = sld [smem:[#allocation10 + $0x4]] }
 0x4fc   :  { %v4099_v54 = vmul.f32 %v7657_v18, %v6131_v14  ;;  %v4023_v44 = vadd.f32 %v4021_v32, %v4017_v13  ;;  %v7660_v50 = vstv %s7653_s27  ;;  %v3745_v4 = vstv %s6645_s22  ;;  %s6932_s22 = sld [smem:[#allocation10 + $0x1]] }
 0x4fd   :  { %v7659_v17 = vstv %s7651_s5  ;;  %v4171_v24 = vmul.f32 %v7660_v50, %v6131_v14  ;;  %v3815_v5 = vstv %s6652_s13  ;;  %v3887_v1 = vstv %s6657_s1  ;;  %s6934_s13 = sld [smem:[#allocation13 + $0x1]] }
 0x4fe   :  { %v4237_v8 = vmul.f32 %v7659_v17, %v6535_v56  ;;  %v2929_v31 = vpop.f32.mrf.mxu2  ;;  %v3959_v37 = vstv %s6665_s18  ;;  %v4031_v9 = vstv %s6673_s3  ;;  %v4103_v49 = vstv %s6681_s10  ;;  %s6940_s1 = sld [smem:[#allocation15]] }
 0x4ff   :  { %v2930_v6 = vadd.f32 %v2929_v31, %v2900_v62  ;;  %v4175_v7 = vstv %s6692_s0  ;;  %v4247_v27 = vstv %s6700_s25  ;;  %v4095_v60 = vadd.f32 %v4093_v59, %v4089_v19  ;;  %v2995_v19 = vpop.f32.mrf.mxu0  ;;  %s3764_s18 = sadd.f32 %s6926_s9, %s6924_s24 }
 0x500   :  { %v4167_v56 = vadd.f32 %v4165_v42, %v4161_v34  ;;  %v4239_v38 = vadd.f32 %v4237_v8, %v4233_v25  ;;  %v7661_v11 = vstv %s6461_s17  ;;  %v2959_v42 = vpop.f32.mrf.mxu3  ;;  %s6832_s17 = sld [smem:[#allocation12 + $0x102]] }
 0x501   :  { %v6738_v39 = vadd.f32 %v2955_v0, %v2930_v6  ;;  %v4243_v13 = vmul.f32 %v7661_v11, %v6131_v14  ;;  %s6946_s3 = sld [smem:[#allocation13 + $0x3]] }
 0x502   :  { %s6948_s10 = sld [smem:[#allocation15 + $0x1]] }
 0x503   :  { %v3746_v32 = vmul.f32 %v3745_v4, %v6738_v39  ;;  %v3816_v62 = vmul.f32 %v3815_v5, %v6738_v39  ;;  %v3888_v41 = vmul.f32 %v3887_v1, %v6738_v39  ;;  %v3960_v40 = vmul.f32 %v3959_v37, %v6738_v39  ;;  %s3834_s0 = sadd.f32 %s6934_s13, %s6932_s22 }
 0x504   :  { %v4032_v0 = vmul.f32 %v4031_v9, %v6738_v39  ;;  %v4104_v18 = vmul.f32 %v4103_v49, %v6738_v39  ;;  %v4176_v20 = vmul.f32 %v4175_v7, %v6738_v39  ;;  %v4248_v59 = vmul.f32 %v4247_v27, %v6738_v39  ;;  %s6956_s25 = sld [smem:[#allocation12 + $0x203]] }
 0x505   :  { %v6755_v34 = vadd.f32 %v3746_v32, %v6518_v10  ;;  %v6758_v25 = vadd.f32 %v3816_v62, %v6520_v57  ;;  %v6761_v17 = vadd.f32 %v3888_v41, %v6522_v47  ;;  %v6764_v8 = vadd.f32 %v3960_v40, %v6527_v3  ;;  %v3025_v3 = vpop.f32.mrf.mxu1  ;;  %s6960_s2 = sld [smem:[#allocation13 + $0x4]] }
 0x506   :  { %v6767_v31 = vadd.f32 %v4032_v0, %v6529_v35  ;;  %v6770_v50 = vadd.f32 %v4104_v18, %v6531_v22  ;;  %v6773_v6 = vadd.f32 %v4176_v20, %v6537_v2  ;;  %v6776_v10 = vadd.f32 %v4248_v59, %v6647_v12  ;;  %v2933_v57 = vpop.f32.mrf.mxu2  ;;  %s6964_s5 = sld [smem:[#allocation12 + $0x283]] }
 0x507   :  { %v2934_v11 = vadd.f32 %v2933_v57, %v2906_v30  ;;  %v3743_v47 = vadd.f32 %v6596_v63, %v3737_v26  ;;  %v3813_v32 = vadd.f32 %v6625_v23, %v3807_v61  ;;  %v3885_v62 = vadd.f32 %v6687_v53, %v3879_v58  ;;  %s3978_s20 = sadd.f32 %s6946_s3, %s6944_s11 }
 0x508   :  { %v3957_v35 = vadd.f32 %v3955_v36, %v3951_v46  ;;  %v4029_v41 = vadd.f32 %v4027_v21, %v4023_v44  ;;  %v4101_v22 = vadd.f32 %v4099_v54, %v4095_v60  ;;  %v4173_v0 = vadd.f32 %v4171_v24, %v4167_v56  ;;  %v3078_v36 = vpop.f32.mrf.mxu3  ;;  %v3325_v21 = vld [vmem:[#allocation7 + $0x38] sm:$0xff]  ;;  %s6966_s27 = sld [smem:[#allocation10 + $0x5]] }
 0x509   :  { %v6781_v40 = vadd.f32 %v2959_v42, %v2934_v11  ;;  %v4245_v2 = vadd.f32 %v4243_v13, %v4239_v38  ;;  %v3022_v18 = vadd.f32 %v3021_v33, %v6705_v55  ;;  %v3026_v13 = vadd.f32 %v3025_v3, %v2995_v19  ;;  %s7009_s24 = sld [smem:[#allocation15 + $0x3]] }
 0x50a   :  { %s7014_s9 = sld [smem:[#allocation15 + $0x4]] }
 0x50b   :  { %v3747_v12 = vmul.f32 %v3745_v4, %v6781_v40  ;;  %v3817_v30 = vmul.f32 %v3815_v5, %v6781_v40  ;;  %v3889_v63 = vmul.f32 %v3887_v1, %v6781_v40  ;;  %v3961_v23 = vmul.f32 %v3959_v37, %v6781_v40  ;;  %v3108_v37 = vpop.f32.mrf.mxu0  ;;  %s7048_s13 = sld [smem:[#allocation15 + $0x5]] }
 0x50c   :  { %v4033_v26 = vmul.f32 %v4031_v9, %v6781_v40  ;;  %v4105_v53 = vmul.f32 %v4103_v49, %v6781_v40  ;;  %v4177_v61 = vmul.f32 %v4175_v7, %v6781_v40  ;;  %v4249_v58 = vmul.f32 %v4247_v27, %v6781_v40  ;;  %s7066_s15 = sld [smem:[#allocation15 + $0x6]] }
 0x50d   :  { %v6792_v46 = vadd.f32 %v3747_v12, %v3743_v47  ;;  %v6794_v55 = vadd.f32 %v3817_v30, %v3813_v32  ;;  %v6796_v54 = vadd.f32 %v3889_v63, %v3885_v62  ;;  %v6798_v33 = vadd.f32 %v3961_v23, %v3957_v35  ;;  %v3134_v7 = vpop.f32.mrf.mxu1  ;;  %s7667_s11 = sld [smem:[#allocation77_spill]] }
 0x50e   :  { %v6800_v44 = vadd.f32 %v4033_v26, %v4029_v41  ;;  %v6802_v24 = vadd.f32 %v4105_v53, %v4101_v22  ;;  %v6804_v4 = vadd.f32 %v4177_v61, %v4173_v0  ;;  %v6806_v5 = vadd.f32 %v4249_v58, %v4245_v2  ;;  %v3049_v1 = vpop.f32.mrf.mxu2 }
 0x50f   :  { %v3050_v9 = vadd.f32 %v3049_v1, %v3022_v18  ;;  %v3341_v49 = vand.u32 4294901760, %v3325_v21 }
 0x510   :  { %v3084_v57 = vpop.f32.mrf.mxu3 }
 0x511   :  { %v3079_v27 = vadd.f32 %v3078_v36, %v3050_v9  ;;  %3342 = vmatpush.msrb.mxu0 %v3341_v49  ;;  %v3376_v60 = vsub.f32 %v3325_v21, %v3341_v49 }
 0x513   :  { %v3109_v56 = vadd.f32 %v3108_v37, %v3079_v27  ;;  %v3377_v38 = vand.u32 4294901760, %v3376_v60  ;;  %v3112_v35 = vpop.f32.mrf.mxu0  ;;  %s4346_s3 = sshll.u32 %s7667_s11, 4  ;;  %s4347_s3 = int_to_ptr.hbm [resolvable:$true] %s4346_s3 }
 0x515   :  { %v3135_v20 = vadd.f32 %v3134_v7, %v3109_v56  ;;  %v3378_v59 = vsub.f32 %v3376_v60, %v3377_v38  ;;  %v3138_v0 = vpop.f32.mrf.mxu1 }
 0x516   :  { %v3054_v42 = vpop.f32.mrf.mxu2 }
 0x517   :  { %v3142_v11 = vsel %vm132_vm0, %v3135_v20, 0  ;;  %v3055_v47 = vadd.f32 %v3054_v42, %v3026_v13  ;;  %v3379_v32 = vand.u32 4294901760, %v3378_v59  ;;  %v3751_v20 = vstv %s6828_s7  ;;  %s6968_s7 = sld [smem:[#allocation13 + $0x5]] }
 0x518   :  { %v3164_v62 = vand.u32 4294901760, %v3142_v11  ;;  %v3821_v59 = vstv %s6830_s21  ;;  %v3893_v42 = vstv %s6832_s17  ;;  %s6970_s21 = sld [smem:[#allocation12 + $0x303]] }
 0x519   :  { %v3085_v41 = vadd.f32 %v3084_v57, %v3055_v47  ;;  %3380 = vmatpush.msrb.mxu1 %v3379_v32  ;;  %v3965_v57 = vstv %s6834_s23  ;;  %v4109_v32 = vstv %s6838_s16  ;;  %s6972_s17 = sld [smem:[#allocation10 + $0x6]] }
 0x51a   :  { %v3165_v22 = vsub.f32 %v3142_v11, %v3164_v62  ;;  %3203 = vmatmul.f32.vlgmr.msrb.gmra.mxu3 %v3164_v62  ;;  %v4037_v11 = vstv %s6836_s8  ;;  %s6974_s23 = sld [smem:[#allocation12 + $0x383]] }
 0x51b   :  { %v3113_v2 = vadd.f32 %v3112_v35, %v3085_v41  ;;  %3435 = vmatpush.msrb.mxu3 %v3341_v49  ;;  %v4253_v35 = vstv %s6842_s12  ;;  %s6976_s8 = sld [smem:[#allocation13 + $0x6]] }
 0x51c   :  { %v3166_v18 = vand.u32 4294901760, %v3165_v22  ;;  %3231 = vmatmul.f32.vlgmr.msra.gmra.mxu0 %v3165_v22  ;;  %s4050_s16 = sadd.f32 %s6960_s2, %s6958_s14 }
 0x51d   :  { %v3139_v19 = vadd.f32 %v3138_v0, %v3113_v2  ;;  %3467 = vmatpush.msra.mxu0 %v3377_v38  ;;  %s6982_s12 = sld [smem:[#allocation13 + $0x7]] }
 0x51e   :  { %v3167_v3 = vsub.f32 %v3165_v22, %v3166_v18  ;;  %3260 = vmatmul.f32.vlgmr.msra.gmra.mxu1 %v3166_v18  ;;  %s4122_s14 = sadd.f32 %s6968_s7, %s6966_s27 }
 0x51f   :  { %v3145_v12 = vsel %vm132_vm0, %v3139_v19, 0  ;;  %3493 = vmatpush.msra.mxu1 %v3341_v49  ;;  %s7000_s2 = sld [smem:[#allocation15 + $0x2]] }
 0x520   :  { %v3168_v30 = vand.u32 4294901760, %v3167_v3  ;;  %v3172_v63 = vand.u32 4294901760, %v3145_v12 }
 0x521   :  { %s4194_s22 = sadd.f32 %s6976_s8, %s6972_s17 }
 0x522   :  { %v3173_v23 = vsub.f32 %v3145_v12, %v3172_v63  ;;  %3169 = vmatmul.f32.vlgmr.msrb.gmra.mxu2 %v3168_v30  ;;  %3207 = vmatmul.f32.gmra.mxu3 %v3172_v63 }
 0x523   :  { %3407 = vmatpush.msrb.mxu2 %v3376_v60 }
 0x524   :  { %3236 = vmatmul.f32.gmra.mxu0 %v3173_v23  ;;  %v3174_v26 = vand.u32 4294901760, %v3173_v23 }
 0x526   :  { %3266 = vmatmul.f32.gmra.mxu1 %v3174_v26  ;;  %v3175_v53 = vsub.f32 %v3173_v23, %v3174_v26 }
 0x528   :  { %v3176_v61 = vand.u32 4294901760, %v3175_v53 }
 0x52a   :  { %3177 = vmatmul.f32.gmra.mxu2 %v3176_v61  ;;  %3316 = vmatmul.f32.vlgmr.msra.gmra.mxu3 %v3164_v62 }
 0x52b   :  { %3563 = vmatpush.msra.mxu3 %v7544_v48  ;;  %v7662_v48 = vld [vmem:[#allocation28_spill] sm:$0xff] }
 0x52c   :  { %3348 = vmatmul.f32.vlgmr.msrb.gmra.mxu0 %v7545_v51  ;;  %v7663_v51 = vld [vmem:[#allocation33_spill] sm:$0xff] }
 0x52d   :  { %3590 = vmatpush.msrb.mxu0 %v7546_v29  ;;  %v7664_v29 = vld [vmem:[#allocation26_spill] sm:$0xff] }
 0x52e   :  { %3382 = vmatmul.f32.vlgmr.msrb.gmra.mxu1 %v7547_v28 }
 0x52f   :  { %3618 = vmatpush.msrb.mxu1 %v7548_v52 }
 0x532   :  { %3290 = vmatmul.f32.vlgmr.msra.gmra.mxu2 %v3164_v62  ;;  %3320 = vmatmul.f32.gmra.mxu3 %v3172_v63  ;;  %v4181_v62 = vstv %s6840_s4  ;;  %s6980_s4 = sld [smem:[#allocation10 + $0x7]] }
 0x533   :  { %3525 = vmatpush.msra.mxu2 %v7548_v52 }
 0x534   :  { %3356 = vmatmul.f32.gmra.mxu0 %v7549_v43 }
 0x536   :  { %3386 = vmatmul.f32.gmra.mxu1 %v7550_v45 }
 0x538   :  { %s4266_s26 = sadd.f32 %s6982_s12, %s6980_s4 }
 0x53a   :  { %3294 = vmatmul.f32.gmra.mxu2 %v3172_v63  ;;  %3439 = vmatmul.f32.vlgmr.msrb.gmra.mxu3 %v7551_v15 }
 0x53b   :  { %3676 = vmatpush.msrb.mxu3 %v7548_v52 }
 0x53c   :  { %3469 = vmatmul.f32.vlgmr.msra.gmra.mxu0 %v7547_v28 }
 0x53e   :  { %3495 = vmatmul.f32.vlgmr.msra.gmra.mxu1 %v7547_v28 }
 0x542   :  { %3410 = vmatmul.f32.vlgmr.msrb.gmra.mxu2 %v7552_v16  ;;  %3445 = vmatmul.f32.gmra.mxu3 %v7662_v48 }
 0x543   :  { %3650 = vmatpush.msrb.mxu2 %v7663_v51 }
 0x544   :  { %3473 = vmatmul.f32.gmra.mxu0 %v7550_v45 }
 0x546   :  { %3499 = vmatmul.f32.gmra.mxu1 %v7550_v45 }
 0x54a   :  { %3415 = vmatmul.f32.gmra.mxu2 %v7664_v29 }
 0x599   :  { %v3232_v15 = vpop.f32.mrf.mxu0 }
 0x59b   :  { %v3261_v58 = vpop.f32.mrf.mxu1 }
 0x59d   :  { %v3204_v43 = vpop.f32.mrf.mxu3 }
 0x5a1   :  { %v3237_v28 = vpop.f32.mrf.mxu0 }
 0x5a3   :  { %v3267_v45 = vpop.f32.mrf.mxu1 }
 0x5a5   :  { %v3170_v52 = vpop.f32.mrf.mxu2  ;;  %v3208_v21 = vpop.f32.mrf.mxu3 }
 0x5a6   :  { %v3205_v36 = vadd.f32 %v3204_v43, %v3170_v52 }
 0x5a8   :  { %v3233_v1 = vadd.f32 %v3232_v15, %v3205_v36 }
 0x5a9   :  { %v3349_v27 = vpop.f32.mrf.mxu0 }
 0x5aa   :  { %v3262_v16 = vadd.f32 %v3261_v58, %v3233_v1 }
 0x5ab   :  { %v3383_v38 = vpop.f32.mrf.mxu1 }
 0x5ac   :  { %v3384_v58 = vadd.f32 %v3383_v38, %v3349_v27 }
 0x5ad   :  { %v3178_v37 = vpop.f32.mrf.mxu2  ;;  %v3317_v7 = vpop.f32.mrf.mxu3 }
 0x5ae   :  { %v3209_v9 = vadd.f32 %v3208_v21, %v3178_v37 }
 0x5b0   :  { %v3238_v49 = vadd.f32 %v3237_v28, %v3209_v9 }
 0x5b1   :  { %v3357_v63 = vpop.f32.mrf.mxu0 }
 0x5b2   :  { %v3268_v60 = vadd.f32 %v3267_v45, %v3238_v49 }
 0x5b3   :  { %v3387_v15 = vpop.f32.mrf.mxu1 }
 0x5b5   :  { %v3291_v56 = vpop.f32.mrf.mxu2  ;;  %v3321_v30 = vpop.f32.mrf.mxu3 }
 0x5b6   :  { %v3292_v13 = vadd.f32 %v3291_v56, %v3262_v16 }
 0x5b8   :  { %v6849_v47 = vadd.f32 %v3317_v7, %v3292_v13 }
 0x5b9   :  { %v3470_v27 = vpop.f32.mrf.mxu0 }
 0x5ba   :  { %v3752_v41 = vmul.f32 %v3751_v20, %v6849_v47  ;;  %v3822_v22 = vmul.f32 %v3821_v59, %v6849_v47  ;;  %v3894_v0 = vmul.f32 %v3893_v42, %v6849_v47  ;;  %v3966_v2 = vmul.f32 %v3965_v57, %v6849_v47 }
 0x5bb   :  { %v4038_v18 = vmul.f32 %v4037_v11, %v6849_v47  ;;  %v4110_v19 = vmul.f32 %v4109_v32, %v6849_v47  ;;  %v4182_v3 = vmul.f32 %v4181_v62, %v6849_v47  ;;  %v4254_v12 = vmul.f32 %v4253_v35, %v6849_v47 }
 0x5bc   :  { %v6863_v23 = vadd.f32 %v3752_v41, %v6755_v34  ;;  %v6866_v26 = vadd.f32 %v3822_v22, %v6758_v25  ;;  %v6869_v53 = vadd.f32 %v3894_v0, %v6761_v17  ;;  %v6872_v61 = vadd.f32 %v3966_v2, %v6764_v8 }
 0x5bd   :  { %v6875_v48 = vadd.f32 %v4038_v18, %v6767_v31  ;;  %v6878_v51 = vadd.f32 %v4110_v19, %v6770_v50  ;;  %v6881_v29 = vadd.f32 %v4182_v3, %v6773_v6  ;;  %v6884_v34 = vadd.f32 %v4254_v12, %v6776_v10  ;;  %v3295_v25 = vpop.f32.mrf.mxu2  ;;  %v3440_v1 = vpop.f32.mrf.mxu3 }
 0x5be   :  { %v3296_v43 = vadd.f32 %v3295_v25, %v3268_v60 }
 0x5c0   :  { %v6886_v17 = vadd.f32 %v3321_v30, %v3296_v43 }
 0x5c2   :  { %v3753_v8 = vmul.f32 %v3751_v20, %v6886_v17  ;;  %v3823_v31 = vmul.f32 %v3821_v59, %v6886_v17  ;;  %v3895_v52 = vmul.f32 %v3893_v42, %v6886_v17  ;;  %v3967_v50 = vmul.f32 %v3965_v57, %v6886_v17  ;;  %v3474_v57 = vpop.f32.mrf.mxu0 }
 0x5c3   :  { %v4039_v6 = vmul.f32 %v4037_v11, %v6886_v17  ;;  %v4111_v36 = vmul.f32 %v4109_v32, %v6886_v17  ;;  %v4183_v10 = vmul.f32 %v4181_v62, %v6886_v17  ;;  %v4255_v21 = vmul.f32 %v4253_v35, %v6886_v17 }
 0x5c4   :  { %v6897_v28 = vadd.f32 %v3753_v8, %v6792_v46  ;;  %v6900_v16 = vadd.f32 %v3823_v31, %v6794_v55  ;;  %v6903_v45 = vadd.f32 %v3895_v52, %v6796_v54  ;;  %v6906_v37 = vadd.f32 %v3967_v50, %v6798_v33  ;;  %v3496_v54 = vpop.f32.mrf.mxu1 }
 0x5c5   :  { %v6909_v9 = vadd.f32 %v4039_v6, %v6800_v44  ;;  %v6912_v49 = vadd.f32 %v4111_v36, %v6802_v24  ;;  %v6915_v7 = vadd.f32 %v4183_v10, %v6804_v4  ;;  %v6918_v46 = vadd.f32 %v4255_v21, %v6806_v5  ;;  %v3411_v55 = vpop.f32.mrf.mxu2  ;;  %v3446_v44 = vpop.f32.mrf.mxu3 }
 0x5c6   :  { %v3412_v60 = vadd.f32 %v3411_v55, %v3384_v58  ;;  %v3388_v33 = vadd.f32 %v3387_v15, %v3357_v63  ;;  %v3757_v6 = vstv %s6922_s19  ;;  %v6988_v36 = vstv %s3764_s18  ;;  %s7072_s18 = sld [smem:[#allocation15 + $0x7]]  ;;  %s4744_s19 = smov [#allocation16]  }
 0x5c7   :  { %v3771_v10 = vstv %s6940_s1  ;;  %v6997_v55 = vstv %s3834_s0  ;;  %s7669_s0 = smov 128  }
 0x5c8   :  { %v3441_v56 = vadd.f32 %v3440_v1, %v3412_v60  ;;  %v3827_v1 = vstv %s6928_s29  ;;  %s4344_s29 = sshll.u32 %s4744_s19, 4  ;;  %s4345_s29 = int_to_ptr.vmem [resolvable:$true] %s4344_s29 }
 0x5ca   :  { %v3471_v38 = vadd.f32 %v3470_v27, %v3441_v56  ;;  %v3841_v27 = vstv %s6948_s10  ;;  %v7006_v56 = vstv %s3906_s28  ;;  %s7668_s10 = smov 8  }
 0x5cc   :  { %v3497_v13 = vadd.f32 %v3496_v54, %v3471_v38  ;;  %v3500_v5 = vpop.f32.mrf.mxu1  ;;  %v3899_v54 = vstv %s6930_s30  ;;  %v3971_v38 = vstv %s6952_s6 }
 0x5cd   :  { %v3416_v20 = vpop.f32.mrf.mxu2 }
 0x5ce   :  { %v3504_v59 = vsel %vm132_vm0, %v3497_v13, 0  ;;  %v3417_v24 = vadd.f32 %v3416_v20, %v3388_v33  ;;  %v4043_v33 = vstv %s6956_s25  ;;  %v4115_v20 = vstv %s6964_s5 }
 0x5cf   :  { %v3526_v42 = vand.u32 4294901760, %v3504_v59 }
 0x5d0   :  { %v3447_v4 = vadd.f32 %v3446_v44, %v3417_v24  ;;  %v4187_v44 = vstv %s6970_s21 }
 0x5d1   :  { %v3527_v11 = vsub.f32 %v3504_v59, %v3526_v42  ;;  %3565 = vmatmul.f32.vlgmr.msra.gmra.mxu3 %v3526_v42  ;;  %v4259_v59 = vstv %s6974_s23 }
 0x5d2   :  { %v3475_v32 = vadd.f32 %v3474_v57, %v3447_v4  ;;  %v7024_v57 = vstv %s4050_s16  ;;  %v7026_v4 = vstv %s4122_s14 }
 0x5d3   :  { %v3528_v62 = vand.u32 4294901760, %v3527_v11  ;;  %3593 = vmatmul.f32.vlgmr.msrb.gmra.mxu0 %v3527_v11 }
 0x5d4   :  { %v3501_v35 = vadd.f32 %v3500_v5, %v3475_v32 }
 0x5d5   :  { %v3529_v41 = vsub.f32 %v3527_v11, %v3528_v62  ;;  %3622 = vmatmul.f32.vlgmr.msrb.gmra.mxu1 %v3528_v62 }
 0x5d6   :  { %v3507_v22 = vsel %vm132_vm0, %v3501_v35, 0 }
 0x5d7   :  { %v3530_v0 = vand.u32 4294901760, %v3529_v41  ;;  %v3534_v2 = vand.u32 4294901760, %v3507_v22 }
 0x5d9   :  { %v3535_v18 = vsub.f32 %v3507_v22, %v3534_v2  ;;  %3531 = vmatmul.f32.vlgmr.msra.gmra.mxu2 %v3530_v0  ;;  %3569 = vmatmul.f32.gmra.mxu3 %v3534_v2 }
 0x5db   :  { %3598 = vmatmul.f32.gmra.mxu0 %v3535_v18  ;;  %v3536_v19 = vand.u32 4294901760, %v3535_v18 }
 0x5dd   :  { %3628 = vmatmul.f32.gmra.mxu1 %v3536_v19  ;;  %v3537_v3 = vsub.f32 %v3535_v18, %v3536_v19 }
 0x5df   :  { %v3538_v12 = vand.u32 4294901760, %v3537_v3 }
 0x5e1   :  { %3539 = vmatmul.f32.gmra.mxu2 %v3538_v12  ;;  %3678 = vmatmul.f32.vlgmr.msrb.gmra.mxu3 %v3526_v42 }
 0x5e9   :  { %3652 = vmatmul.f32.vlgmr.msrb.gmra.mxu2 %v3526_v42  ;;  %3682 = vmatmul.f32.gmra.mxu3 %v3534_v2  ;;  %v7022_v42 = vstv %s3978_s20 }
 0x5f1   :  { %3656 = vmatmul.f32.gmra.mxu2 %v3534_v2 }
 0x650   :  { %v3594_v58 = vpop.f32.mrf.mxu0 }
 0x652   :  { %v3623_v31 = vpop.f32.mrf.mxu1 }
 0x654   :  { %v3566_v30 = vpop.f32.mrf.mxu3 }
 0x658   :  { %v3599_v2 = vpop.f32.mrf.mxu0 }
 0x65c   :  { %v3532_v63 = vpop.f32.mrf.mxu2  ;;  %v3570_v43 = vpop.f32.mrf.mxu3 }
 0x65d   :  { %v3567_v25 = vadd.f32 %v3566_v30, %v3532_v63 }
 0x65f   :  { %v3595_v8 = vadd.f32 %v3594_v58, %v3567_v25 }
 0x661   :  { %v3624_v52 = vadd.f32 %v3623_v31, %v3595_v8 }
 0x664   :  { %v3540_v15 = vpop.f32.mrf.mxu2  ;;  %v3679_v60 = vpop.f32.mrf.mxu3 }
 0x665   :  { %v3571_v24 = vadd.f32 %v3570_v43, %v3540_v15  ;;  %v7064_v43 = vstv %s4194_s22 }
 0x667   :  { %v3600_v30 = vadd.f32 %v3599_v2, %v3571_v24  ;;  %v3985_v24 = vstv %s7009_s24 }
 0x66c   :  { %v3653_v50 = vpop.f32.mrf.mxu2 }
 0x66d   :  { %v3654_v21 = vadd.f32 %v3653_v50, %v3624_v52  ;;  %v7078_v50 = vstv %s4266_s26 }
 0x66f   :  { %v7012_v13 = vadd.f32 %v3679_v60, %v3654_v21  ;;  %v3629_v21 = vpop.f32.mrf.mxu1  ;;  %v3913_v60 = vstv %s7000_s2 }
 0x671   :  { %v3758_v11 = vmul.f32 %v3757_v6, %v7012_v13  ;;  %v3828_v5 = vmul.f32 %v3827_v1, %v7012_v13  ;;  %v3900_v32 = vmul.f32 %v3899_v54, %v7012_v13  ;;  %v3972_v62 = vmul.f32 %v3971_v38, %v7012_v13 }
 0x672   :  { %v4044_v35 = vmul.f32 %v4043_v33, %v7012_v13  ;;  %v4116_v41 = vmul.f32 %v4115_v20, %v7012_v13  ;;  %v4188_v22 = vmul.f32 %v4187_v44, %v7012_v13  ;;  %v4260_v0 = vmul.f32 %v4259_v59, %v7012_v13 }
 0x673   :  { %v3760_v18 = vadd.f32 %v3758_v11, %v6863_v23  ;;  %v3830_v19 = vadd.f32 %v3828_v5, %v6866_v26  ;;  %v3902_v3 = vadd.f32 %v3900_v32, %v6869_v53  ;;  %v3974_v12 = vadd.f32 %v3972_v62, %v6872_v61 }
 0x674   :  { %v4046_v63 = vadd.f32 %v4044_v35, %v6875_v48  ;;  %v4118_v25 = vadd.f32 %v4116_v41, %v6878_v51  ;;  %v4190_v15 = vadd.f32 %v4188_v22, %v6881_v29  ;;  %v4262_v58 = vadd.f32 %v4260_v0, %v6884_v34  ;;  %v3657_v5 = vpop.f32.mrf.mxu2 }
 0x675   :  { %v3766_v23 = vadd.f32 %v6988_v36, %v3760_v18  ;;  %v3836_v26 = vadd.f32 %v6997_v55, %v3830_v19  ;;  %v3908_v53 = vadd.f32 %v7006_v56, %v3902_v3  ;;  %v3980_v61 = vadd.f32 %v7022_v42, %v3974_v12 }
 0x676   :  { %v4052_v48 = vadd.f32 %v7024_v57, %v4046_v63  ;;  %v4124_v51 = vadd.f32 %v7026_v4, %v4118_v25  ;;  %v4057_v11 = vstv %s7014_s9  ;;  %v3630_v62 = vadd.f32 %v3629_v21, %v3600_v30  ;;  %v3683_v63 = vpop.f32.mrf.mxu3 }
 0x677   :  { %v3768_v8 = vmax.f32 %v3766_v23, 0.0  ;;  %v3838_v31 = vmax.f32 %v3836_v26, 0.0  ;;  %v3910_v52 = vmax.f32 %v3908_v53, 0.0  ;;  %v3982_v34 = vmax.f32 %v3980_v61, 0.0 }
 0x678   :  { %v4054_v35 = vmax.f32 %v4052_v48, 0.0  ;;  %v4126_v41 = vmax.f32 %v4124_v51, 0.0  ;;  %v4196_v22 = vadd.f32 %v7064_v43, %v4190_v15  ;;  %v4268_v0 = vadd.f32 %v7078_v50, %v4262_v58 }
 0x679   :  { %v3772_v32 = vmul.f32 %v3771_v10, %v3768_v8  ;;  %v3842_v29 = vmul.f32 %v3841_v27, %v3838_v31  ;;  %v3914_v18 = vmul.f32 %v3913_v60, %v3910_v52  ;;  %v4129_v19 = vstv %s7048_s13 }
 0x67a   :  { %v3658_v3 = vadd.f32 %v3657_v5, %v3630_v62  ;;  %v4201_v12 = vstv %s7066_s15  ;;  %v3986_v25 = vmul.f32 %v3985_v24, %v3982_v34  ;;  %v4273_v23 = vstv %s7072_s18 }
 0x67b   :  { %v3844_v2 = vadd.f32 %v3842_v29, %v3772_v32  ;;  %v4058_v53 = vmul.f32 %v4057_v11, %v4054_v35  ;;  %v4130_v61 = vmul.f32 %v4129_v19, %v4126_v41  ;;  %v4198_v48 = vmax.f32 %v4196_v22, 0.0 }
 0x67c   :  { %v7096_v26 = vadd.f32 %v3683_v63, %v3658_v3  ;;  %v4270_v51 = vmax.f32 %v4268_v0, 0.0  ;;  %v7665_v3 = vld [vmem:[#allocation37_spill] sm:$0xff] }
 0x67d   :  { %v3916_v30 = vadd.f32 %v3914_v18, %v3844_v2 }
 0x67e   :  { %v3759_v58 = vmul.f32 %v3757_v6, %v7096_v26  ;;  %v3829_v8 = vmul.f32 %v3827_v1, %v7096_v26  ;;  %v3901_v31 = vmul.f32 %v3899_v54, %v7096_v26  ;;  %v3973_v52 = vmul.f32 %v3971_v38, %v7096_v26 }
 0x67f   :  { %v3988_v15 = vadd.f32 %v3986_v25, %v3916_v30  ;;  %v4045_v21 = vmul.f32 %v4043_v33, %v7096_v26  ;;  %v4117_v5 = vmul.f32 %v4115_v20, %v7096_v26  ;;  %v4189_v32 = vmul.f32 %v4187_v44, %v7096_v26 }
 0x680   :  { %v3761_v6 = vadd.f32 %v3759_v58, %v6897_v28  ;;  %v3831_v1 = vadd.f32 %v3829_v8, %v6900_v16  ;;  %v3903_v34 = vadd.f32 %v3901_v31, %v6903_v45  ;;  %v4202_v54 = vmul.f32 %v4201_v12, %v4198_v48 }
 0x681   :  { %v4060_v29 = vadd.f32 %v4058_v53, %v3988_v15  ;;  %v3975_v38 = vadd.f32 %v3973_v52, %v6906_v37  ;;  %v4047_v62 = vadd.f32 %v4045_v21, %v6909_v9  ;;  %v4119_v33 = vadd.f32 %v4117_v5, %v6912_v49 }
 0x682   :  { %v3767_v44 = vadd.f32 %v6988_v36, %v3761_v6  ;;  %v3837_v35 = vadd.f32 %v6997_v55, %v3831_v1  ;;  %v3909_v28 = vadd.f32 %v7006_v56, %v3903_v34  ;;  %v4274_v16 = vmul.f32 %v4273_v23, %v4270_v51 }
 0x683   :  { %v4132_v20 = vadd.f32 %v4130_v61, %v4060_v29  ;;  %v3981_v45 = vadd.f32 %v7022_v42, %v3975_v38  ;;  %v4053_v41 = vadd.f32 %v7024_v57, %v4047_v62  ;;  %v4191_v37 = vadd.f32 %v4189_v32, %v6915_v7 }
 0x684   :  { %v3769_v22 = vmax.f32 %v3767_v44, 0.0  ;;  %v3839_v49 = vmax.f32 %v3837_v35, 0.0  ;;  %v3911_v0 = vmax.f32 %v3909_v28, 0.0  ;;  %v4125_v36 = vadd.f32 %v7026_v4, %v4119_v33 }
 0x685   :  { %v4204_v9 = vadd.f32 %v4202_v54, %v4132_v20  ;;  %v3983_v42 = vmax.f32 %v3981_v45, 0.0  ;;  %v4055_v18 = vmax.f32 %v4053_v41, 0.0  ;;  %v4197_v57 = vadd.f32 %v7064_v43, %v4191_v37  ;;  %v7666_v20 = vld [vmem:[#allocation35_spill] sm:$0xff] }
 0x686   :  { %v3773_v55 = vmul.f32 %v3771_v10, %v3769_v22  ;;  %v3843_v56 = vmul.f32 %v3841_v27, %v3839_v49  ;;  %v3915_v30 = vmul.f32 %v3913_v60, %v3911_v0  ;;  %v4261_v25 = vmul.f32 %v4259_v59, %v7096_v26 }
 0x687   :  { %v4276_v2 = vadd.f32 %v4274_v16, %v4204_v9  ;;  %v4127_v4 = vmax.f32 %v4125_v36, 0.0  ;;  %v3987_v10 = vmul.f32 %v3985_v24, %v3983_v42  ;;  %v4199_v48 = vmax.f32 %v4197_v57, 0.0 }
 0x688   :  { %v3845_v7 = vadd.f32 %v3843_v56, %v3773_v55  ;;  %v4263_v27 = vadd.f32 %v4261_v25, %v6918_v46  ;;  %v4059_v43 = vmul.f32 %v4057_v11, %v4055_v18 }
 0x689   :  { %v4280_v63 = vadd.f32 %v4276_v2, %v7665_v3  ;;  %v4131_v60 = vmul.f32 %v4129_v19, %v4127_v4  ;;  %v4203_v59 = vmul.f32 %v4201_v12, %v4199_v48 }
 0x68a   :  { %v3917_v61 = vadd.f32 %v3915_v30, %v3845_v7  ;;  %v4269_v15 = vadd.f32 %v7078_v50, %v4263_v27 }
 0x68b   :  { %v4563_v53 = vmul.f32 -1.442695, %v4280_v63 }
 0x68c   :  { %v3989_v51 = vadd.f32 %v3987_v10, %v3917_v61  ;;  %v4271_v8 = vmax.f32 %v4269_v15, 0.0 }
 0x68d   :  { %4583 = vpow2.f32 %v4563_v53 }
 0x68e   :  { %v4061_v58 = vadd.f32 %v4059_v43, %v3989_v51  ;;  %v4275_v5 = vmul.f32 %v4273_v23, %v4271_v8 }
 0x690   :  { %v4133_v31 = vadd.f32 %v4131_v60, %v4061_v58 }
 0x692   :  { %v4205_v21 = vadd.f32 %v4203_v59, %v4133_v31 }
 0x693   :  { %v4584_v52 = vpop.eup %4583 }
 0x694   :  { %v4288_v32 = vadd.f32 1.0, %v4584_v52  ;;  %v4277_v24 = vadd.f32 %v4275_v5, %v4205_v21 }
 0x696   :  { %4585 = vrcp.f32 %v4288_v32  ;;  %v4281_v46 = vadd.f32 %v4277_v24, %v7665_v3  ;;  %v4301_v50 = vand.u32 2147483648, %v4288_v32  ;;  %v4299_v54 = vand.u32 2147483647, %v4288_v32 }
 0x697   :  { %vm4295_vm11 = vweird.f32 %v4288_v32 }
 0x698   :  { %v4564_v29 = vmul.f32 -1.442695, %v4281_v46  ;;  %v4302_v23 = vor.u32 1.1754944e-38, %v4301_v50  ;;  %vm4300_vm13 = vcmp.eq.f32.partialorder %v4299_v54, 8.507059e+37 }
 0x69a   :  { %4587 = vpow2.f32 %v4564_v29 }
 0x69c   :  { %v4586_v6 = vpop.eup %4585 }
 0x69d   :  { %v4291_v11 = vmul.f32 %v4586_v6, %v4288_v32  ;;  %vm4296_vm10 = vweird.f32 %v4586_v6 }
 0x69e   :  { %vm4297_vm12 = vmor %vm4295_vm11, %vm4296_vm10 }
 0x69f   :  { %v4292_v1 = vsub.f32 1.0, %v4291_v11 }
 0x6a0   :  { %v4588_v34 = vpop.eup %4587 }
 0x6a1   :  { %v4293_v19 = vmul.f32 %v4586_v6, %v4292_v1  ;;  %v4289_v38 = vadd.f32 1.0, %v4588_v34 }
 0x6a3   :  { %v4294_v12 = vadd.f32 %v4586_v6, %v4293_v19  ;;  %4589 = vrcp.f32 %v4289_v38  ;;  %v4316_v9 = vand.u32 2147483648, %v4289_v38  ;;  %v4314_v49 = vand.u32 2147483647, %v4289_v38 }
 0x6a4   :  { %vm4310_vm15 = vweird.f32 %v4289_v38 }
 0x6a5   :  { %v4298_v62 = vsel %vm4297_vm12, %v4586_v6, %v4294_v12  ;;  %vm4315_vm1 = vcmp.eq.f32.partialorder %v4314_v49, 8.507059e+37 }
 0x6a6   :  { %v4303_v33 = vsel %vm4300_vm13, %v4302_v23, %v4298_v62 }
 0x6a7   :  { %v4320_v44 = vmul.f32 %v4303_v33, %v7666_v20  ;;  %v4325_v35 = vmul.f32 %v4303_v33, %v6738_v39  ;;  %v4330_v28 = vmul.f32 %v4303_v33, %v6849_v47  ;;  %v4335_v16 = vmul.f32 %v4303_v33, %v7012_v13 }
 0x6a8   :  { %v4317_v47 = vor.u32 1.1754944e-38, %v4316_v9 }
 0x6a9   :  { %4323 = vst.msk [vmem:[#allocation16 + $0x40] sm:$0xff] %vm2220_vm5, %v4320_v44  ;;  %v4590_v45 = vpop.eup %4589 }
 0x6aa   :  { %4328 = vst.msk [vmem:[#allocation16 + $0x50] sm:$0xff] %vm2220_vm5, %v4325_v35  ;;  %v4306_v41 = vmul.f32 %v4590_v45, %v4289_v38  ;;  %vm4311_vm14 = vweird.f32 %v4590_v45 }
 0x6ab   :  { %4333 = vst.msk [vmem:[#allocation16 + $0x60] sm:$0xff] %vm2220_vm5, %v4330_v28  ;;  %vm4312_vm0 = vmor %vm4310_vm15, %vm4311_vm14 }
 0x6ac   :  { %4338 = vst.msk [vmem:[#allocation16 + $0x70] sm:$0xff] %vm2220_vm5, %v4335_v16  ;;  %v4307_v37 = vsub.f32 1.0, %v4306_v41 }
 0x6ae   :  { %v4308_v22 = vmul.f32 %v4590_v45, %v4307_v37 }
 0x6b0   :  { %v4309_v39 = vadd.f32 %v4590_v45, %v4308_v22 }
 0x6b2   :  { %v4313_v13 = vsel %vm4312_vm0, %v4590_v45, %v4309_v39 }
 0x6b3   :  { %v4318_v0 = vsel %vm4315_vm1, %v4317_v47, %v4313_v13 }
 0x6b4   :  { %v4321_v36 = vmul.f32 %v4318_v0, %v6131_v14  ;;  %v4326_v2 = vmul.f32 %v4318_v0, %v6781_v40  ;;  %v4331_v55 = vmul.f32 %v4318_v0, %v6886_v17  ;;  %v4336_v56 = vmul.f32 %v4318_v0, %v7096_v26 }
 0x6b6   :  { %4324 = vst.msk [vmem:[#allocation16 + $0x48] sm:$0xff] %vm2220_vm5, %v4321_v36 }
 0x6b7   :  { %4329 = vst.msk [vmem:[#allocation16 + $0x58] sm:$0xff] %vm2220_vm5, %v4326_v2 }
 0x6b8   :  { %4334 = vst.msk [vmem:[#allocation16 + $0x68] sm:$0xff] %vm2220_vm5, %v4331_v55 }
 0x6b9   :  { %4339 = vst.msk [vmem:[#allocation16 + $0x78] sm:$0xff] %vm2220_vm5, %v4336_v56 }
 0x6ba   :  { %4352 = dma.vmem_to_hbm [thread:$0]  %s4345_s29, 2048, %s4347_s3, [#allocation5], %s7669_s0, %s7669_s0, %s7668_s10  }
 0x6bb   :  { %4733 = dma.done.wait [#allocation5], 2048  }
 0x6bc   :  { %4734 = vsyncadd [#allocation5], 4294965248 }
 0x6bd   :  { %4357 = vsyncpa [#allocation4], 1 }
 0x6be   :  { %4358 = vsyncpa [#allocation8], 1 }
 0x6bf   :  { %4359 = vsyncpa [#allocation5], 1 }
 0x6c0   :  { %4360 = vsyncpa [#allocation6], 1 }
 0x6c1   :  { %4361 = vsyncpa [#allocation11], 1 }
 0x6c2   :  { %4362 = vsyncpa [#allocation14], 1 }

</bundles_post_ra>
